<compile_context>
chip_gen: v7x
topology: tpu7x:2x2x1
jax: 0.10.0
libtpu: 0.0.40
codegen_flags: <defaults>
</compile_context>

<pallas_src>
import math

import jax
import jax.numpy as jnp
from jax.experimental import pallas as pl
from jax.experimental.pallas import tpu as pltpu

MASK_RATIO = 0.5                      # fixed number of masked groups per sample (Point-MAE style)
ROW_TARGET = 256                      # MXU-native row tile (v6e/v7x 256-wide MXU; 128 saturates v5e)
MLP_HIDDEN_CHUNK = 256                # hidden-dim chunk -> bounds live (rows x HC) f32 intermediates
VMEM_LIMIT_BYTES = 32 * 1024 * 1024   # explicit scoped-VMEM budget (safe on v5e/v6e/v7x)


def _round_up(n, m):
    return ((n + m - 1) // m) * m


# ----------------------------- Pallas kernels -----------------------------

def _layernorm(x, g, b, eps=1e-5):
    mu = jnp.mean(x, axis=-1, keepdims=True)
    var = jnp.mean((x - mu) ** 2, axis=-1, keepdims=True)
    return (x - mu) * jax.lax.rsqrt(var + eps) * g + b


def _transformer_block_kernel(c_ref, x_ref, km_ref,
                              pw1_ref, pb1_ref, pw2_ref, pb2_ref,
                              ln_ref, wqkv_ref, bqkv_ref, wo_ref, bo_ref,
                              wm1_ref, bm1_ref, wm2_ref, bm2_ref,
                              lnf_ref, o_ref):
    # One batch-tile per grid step: x_ref block is (bt, N, D); dense matmuls run on
    # (bt*N, D) packed rows, attention runs batched per sample.
    Bt, N, D = x_ref.shape
    R = Bt * N
    scale = 1.0 / math.sqrt(float(D))

    x = x_ref[...].astype(jnp.float32).reshape(R, D)        # tokens, rows packed for the MXU
    c = c_ref[...].reshape(R, c_ref.shape[-1])               # coords (padded to 8 lanes), f32
    kmask = km_ref[...]                                      # (bt, 1, N) f32, 1.0 == padded key
    ln = ln_ref[...]                                         # (2, 2, D) f32  ln1/ln2 x gamma/beta
    lnf = lnf_ref[...]                                       # (2, 1, D) f32

    # --- fused positional-embedding MLP (3->D->D); layer 1 in bf16 (K=8, padded coords) ---
    p1 = jnp.dot(c.astype(jnp.bfloat16), pw1_ref[...],
                 preferred_element_type=jnp.float32) + pb1_ref[...]
    # TODO(synk): PyTorch nn.GELU default is exact erf GELU; tanh-approx used here.
    p1 = jax.nn.gelu(p1, approximate=True)
    pos = jnp.dot(p1.astype(jnp.bfloat16), pw2_ref[...],
                  preferred_element_type=jnp.float32) + pb2_ref[...]

    h = x + pos                                              # (R, D) f32

    # --- single-head self-attention (pre-LN), fused QKV projection, key padding mask ---
    hn = _layernorm(h, ln[0, 0], ln[0, 1]).astype(jnp.bfloat16)
    qkv = jnp.dot(hn, wqkv_ref[...], preferred_element_type=jnp.float32) + bqkv_ref[...]
    q = qkv[:, :D].reshape(Bt, N, D).astype(jnp.bfloat16)
    k = qkv[:, D:2 * D].reshape(Bt, N, D).astype(jnp.bfloat16)
    v = qkv[:, 2 * D:].reshape(Bt, N, D).astype(jnp.bfloat16)
    scores = jnp.einsum('bnd,bmd->bnm', q, k,                # contract last dims, no K transpose
                        preferred_element_type=jnp.float32) * scale
    scores = jnp.where(kmask > 0.5, -1e30, scores)           # mask padded keys
    mx = jnp.max(scores, axis=-1, keepdims=True)
    e = jnp.exp(scores - mx)
    p = e * pl.reciprocal(jnp.sum(e, axis=-1, keepdims=True), approx=True)
    att = jnp.einsum('bnm,bmd->bnd', p.astype(jnp.bfloat16), v,
                     preferred_element_type=jnp.float32).reshape(R, D)
    att = jnp.dot(att.astype(jnp.bfloat16), wo_ref[...],
                  preferred_element_type=jnp.float32) + bo_ref[...]
    h = h + att

    # --- MLP, hidden dim processed in chunks (rolled loop bounds (R, HC) live f32 values) ---
    hn = _layernorm(h, ln[1, 0], ln[1, 1]).astype(jnp.bfloat16)
    n_chunks = wm1_ref.shape[0]

    def mlp_chunk(ci, acc):
        m1 = jnp.dot(hn, wm1_ref[ci], preferred_element_type=jnp.float32) + bm1_ref[ci]
        m1 = jax.nn.gelu(m1, approximate=True).astype(jnp.bfloat16)
        return acc + jnp.dot(m1, wm2_ref[ci], preferred_element_type=jnp.float32)

    m2 = jax.lax.fori_loop(0, n_chunks, mlp_chunk,
                           jnp.zeros((R, D), jnp.float32) + bm2_ref[...])
    h = h + m2

    # --- final norm ---
    h = _layernorm(h, lnf[0], lnf[1])
    o_ref[...] = h.reshape(Bt, N, D).astype(o_ref.dtype)


def _head_kernel(x_ref, m_ref, w_ref, b_ref, o_ref):
    # Per-token linear (Conv1d(dim, 3*group_size, 1)) with padded-token zeroing fused in.
    y = jnp.dot(x_ref[...].astype(jnp.bfloat16), w_ref[...],
                preferred_element_type=jnp.float32) + b_ref[...]
    y = jnp.where(m_ref[...] > 0.5, 0.0, y)        # zero rows of padded masked-tokens
    o_ref[...] = y.astype(o_ref.dtype)


# ----------------------------- kernel wrappers -----------------------------

def _choose_batch_tile(B, N, row_target):
    """Rows per grid step = bt * N. Merge batches only when N is sublane-aligned
    (keeps in-kernel (bt,N,D)->(bt*N,D) reshapes pure layout re-associations) and
    keep >= 2 grid steps when B >= 2 so both v7x TensorCores get work."""
    bt = max(1, min(row_target // max(N, 1), B)) if N % 8 == 0 else 1
    if B >= 2 and B < 2 * bt:
        bt = (B + 1) // 2
    return max(1, bt)


def transformer_block(centers8, x, km, blk, posp, *, row_target=ROW_TARGET):
    """Fused pos-MLP + pre-LN single-head transformer block + final LN.

    centers8: (B, N, 8) f32 (coords padded to 8), x: (B, N, D) f32 or bf16,
    km: (B, 1, N) f32 key-padding mask (1.0 == padded). Output: (B, N, D) bf16.
    """
    B, N, Cin = centers8.shape
    D = x.shape[-1]
    n_chunks, _, HC = blk["w_mlp1"].shape

    bt = _choose_batch_tile(B, N, row_target)
    Bp = _round_up(B, bt)
    if Bp != B:
        pad = Bp - B
        centers8 = jnp.pad(centers8, ((0, pad), (0, 0), (0, 0)))
        x = jnp.pad(x, ((0, pad), (0, 0), (0, 0)))
        km = jnp.pad(km, ((0, pad), (0, 0), (0, 0)), constant_values=1.0)

    # NOTE: every weight BlockSpec below has a constant index_map (never re-fetched
    # across the grid).  TODO(synk): single-buffer them (pipeline_mode=pl.Buffered(1))
    # to halve their VMEM footprint once activation tiles grow on v7x (64 MiB VMEM).
    out = pl.pallas_call(
        _transformer_block_kernel,
        out_shape=jax.ShapeDtypeStruct((Bp, N, D), jnp.bfloat16),
        grid=(Bp // bt,),
        in_specs=[
            pl.BlockSpec((bt, N, Cin), lambda b: (b, 0, 0)),   # centers (padded to 8)
            pl.BlockSpec((bt, N, D), lambda b: (b, 0, 0)),     # x tokens
            pl.BlockSpec((bt, 1, N), lambda b: (b, 0, 0)),     # key-padding mask
            pl.BlockSpec((8, D), lambda b: (0, 0)),            # pos W1 (bf16, zero-padded rows)
            pl.BlockSpec((1, D), lambda b: (0, 0)),            # pos b1
            pl.BlockSpec((D, D), lambda b: (0, 0)),            # pos W2 (bf16)
            pl.BlockSpec((1, D), lambda b: (0, 0)),            # pos b2
            pl.BlockSpec((2, 2, D), lambda b: (0, 0, 0)),      # ln1/ln2 gamma/beta
            pl.BlockSpec((D, 3 * D), lambda b: (0, 0)),        # fused Wqkv (bf16)
            pl.BlockSpec((1, 3 * D), lambda b: (0, 0)),        # fused bqkv
            pl.BlockSpec((D, D), lambda b: (0, 0)),            # Wo (bf16)
            pl.BlockSpec((1, D), lambda b: (0, 0)),            # bo
            pl.BlockSpec((n_chunks, D, HC), lambda b: (0, 0, 0)),   # mlp W1 chunks (bf16)
            pl.BlockSpec((n_chunks, 1, HC), lambda b: (0, 0, 0)),   # mlp b1 chunks
            pl.BlockSpec((n_chunks, HC, D), lambda b: (0, 0, 0)),   # mlp W2 chunks (bf16)
            pl.BlockSpec((1, D), lambda b: (0, 0)),            # mlp b2
            pl.BlockSpec((2, 1, D), lambda b: (0, 0, 0)),      # final LN gamma/beta
        ],
        out_specs=pl.BlockSpec((bt, N, D), lambda b: (b, 0, 0)),
        compiler_params=pltpu.CompilerParams(
            dimension_semantics=("parallel",),
            vmem_limit_bytes=VMEM_LIMIT_BYTES),
    )(centers8, x, km,
      posp["w1"], posp["b1"], posp["w2"], posp["b2"],
      blk["ln"], blk["wqkv"], blk["bqkv"], blk["wo"], blk["bo"],
      blk["w_mlp1"], blk["b_mlp1"], blk["w_mlp2"], blk["b_mlp2"], blk["lnf"])
    return out[:B]


def prediction_head(x2d, maskf, w, b, out_dim):
    """Row-tiled linear with fused padded-token zeroing. w is lane-padded to mult of 128."""
    R, D = x2d.shape
    Dout_pad = w.shape[-1]
    R16 = _round_up(R, 16)                        # bf16 sublane tile
    tile_r = min(512, R16)                        # large row tiles amortize per-step overhead
    if R16 // tile_r < 2 and R16 >= 32:
        tile_r = _round_up(R16 // 2, 16)          # keep >= 2 grid steps when enough rows
    R_pad = _round_up(R16, tile_r)
    if R_pad != R:
        x2d = jnp.pad(x2d, ((0, R_pad - R), (0, 0)))
        maskf = jnp.pad(maskf, ((0, R_pad - R), (0, 0)), constant_values=1.0)
    out = pl.pallas_call(
        _head_kernel,
        out_shape=jax.ShapeDtypeStruct((R_pad, Dout_pad), jnp.float32),
        grid=(R_pad // tile_r,),
        in_specs=[
            pl.BlockSpec((tile_r, D), lambda i: (i, 0)),
            pl.BlockSpec((tile_r, 1), lambda i: (i, 0)),
            pl.BlockSpec((D, Dout_pad), lambda i: (0, 0)),
            pl.BlockSpec((1, Dout_pad), lambda i: (0, 0)),
        ],
        out_specs=pl.BlockSpec((tile_r, Dout_pad), lambda i: (i, 0)),
        compiler_params=pltpu.CompilerParams(
            dimension_semantics=("parallel",),
            vmem_limit_bytes=VMEM_LIMIT_BYTES),
    )(x2d, maskf, w, b)
    return out[:R, :out_dim]


# ----------------------------- parameters -----------------------------

def init_params(key, dim, group_size, hidden_mult=4):
    assert dim % 128 == 0, "feature dim must be a multiple of 128 (TPU lane width)"
    H = hidden_mult * dim
    HC = min(MLP_HIDDEN_CHUNK, H)
    assert H % HC == 0 and HC % 128 == 0
    n_chunks = H // HC
    out_dim = 3 * group_size
    out_pad = _round_up(out_dim, 128)

    def dense(k, shape, scale=0.02, dtype=jnp.float32):
        return (scale * jax.random.normal(k, shape)).astype(dtype)

    keys = jax.random.split(key, 16)

    def pos_params(k1, k2):
        # coord contraction padded 3 -> 8; rows 3..7 are zero so padded lanes contribute nothing
        w1 = jnp.zeros((8, dim), jnp.float32).at[:3].set(dense(k1, (3, dim)))
        return dict(w1=w1.astype(jnp.bfloat16),
                    b1=jnp.zeros((1, dim), jnp.float32),
                    w2=dense(k2, (dim, dim), dtype=jnp.bfloat16),
                    b2=jnp.zeros((1, dim), jnp.float32))

    def block_params(ks):
        ln_pair = jnp.stack([jnp.ones((dim,), jnp.float32),
                             jnp.zeros((dim,), jnp.float32)])
        return dict(
            ln=jnp.stack([ln_pair, ln_pair]),                       # (2, 2, D)
            wqkv=dense(ks[0], (dim, 3 * dim), dtype=jnp.bfloat16),  # fused Wq|Wk|Wv
            bqkv=jnp.zeros((1, 3 * dim), jnp.float32),
            wo=dense(ks[1], (dim, dim), dtype=jnp.bfloat16),
            bo=jnp.zeros((1, dim), jnp.float32),
            # MLP weights stored pre-chunked along the hidden dim for the in-kernel fori_loop
            w_mlp1=dense(ks[2], (n_chunks, dim, HC), dtype=jnp.bfloat16),
            b_mlp1=jnp.zeros((n_chunks, 1, HC), jnp.float32),
            w_mlp2=dense(ks[3], (n_chunks, HC, dim), dtype=jnp.bfloat16),
            b_mlp2=jnp.zeros((1, dim), jnp.float32),
            lnf=jnp.stack([jnp.ones((1, dim), jnp.float32),
                           jnp.zeros((1, dim), jnp.float32)]),      # (2, 1, D)
        )

    head_w = jnp.zeros((dim, out_pad), jnp.float32)
    head_w = head_w.at[:, :out_dim].set(dense(keys[13], (dim, out_dim))).astype(jnp.bfloat16)

    return dict(
        enc_pos=pos_params(keys[0], keys[1]),
        enc_block=block_params(keys[2:6]),
        dec_pos=pos_params(keys[6], keys[7]),
        dec_block=block_params(keys[8:12]),
        mask_token=dense(keys[12], (1, 1, dim)),
        head_w=head_w,
        head_b=jnp.zeros((1, out_pad), jnp.float32),
    )


# ----------------------------- module forward (glue + kernels) -----------------------------

def aux_mae_forward(params, x, neighborhoods, center_points, mask_key):
    B, G, D = x.shape
    S, C = neighborhoods.shape[-2], neighborhoods.shape[-1]
    M = int(round(G * MASK_RATIO))

    # groups whose center is the all-zero point are treated as padding
    padding_mask = jnp.all(center_points == 0.0, axis=-1)                  # (B, G) bool

    # deterministic random masking, exactly M masked groups per sample (Point-MAE style).
    rand = jax.random.uniform(mask_key, (B, G))
    order = jnp.argsort(rand, axis=-1)
    idx_msk = jnp.sort(order[:, :M], axis=-1)                              # (B, M)
    idx_vis = jnp.sort(order[:, M:], axis=-1)                              # (B, Nv)

    def take2(a, idx):
        return jnp.take_along_axis(a, idx, axis=1)

    def take3(a, idx):
        idx3 = jnp.broadcast_to(idx[:, :, None], (B, idx.shape[1], a.shape[-1]))
        return jnp.take_along_axis(a, idx3, axis=1)

    c_vis = take3(center_points, idx_vis)                                  # (B, Nv, 3)
    c_msk = take3(center_points, idx_msk)                                  # (B, M, 3)
    x_vis = take3(x, idx_vis)                                              # (B, Nv, D)
    pad_vis = take2(padding_mask, idx_vis)                                 # (B, Nv) bool
    pad_msk = take2(padding_mask, idx_msk)                                 # (B, M)  bool

    def pad_coords(c):                                                     # 3 -> 8 lanes
        return jnp.pad(c, ((0, 0), (0, 0), (0, 8 - c.shape[-1])))

    # ---- masked encoder: fused pos-MLP + transformer block + final LN (bf16 activations out) ----
    km_vis = pad_vis.astype(jnp.float32)[:, None, :]
    x_vis_enc = transformer_block(pad_coords(c_vis), x_vis, km_vis,
                                  params["enc_block"], params["enc_pos"])  # (B, Nv, D) bf16

    # ---- masked decoder ----
    mask_tok = jnp.broadcast_to(params["mask_token"].astype(jnp.bfloat16), (B, M, D))
    # TODO(synk): assemble x_full inside the decoder kernel (mask-token rows generated in
    # VMEM) to skip this extra (B, G, D) HBM round trip; bf16 activations already halve it.
    x_full = jnp.concatenate([x_vis_enc, mask_tok], axis=1)                # (B, G, D) bf16
    c_full = jnp.concatenate([c_vis, c_msk], axis=1)                       # (B, G, 3)
    km_full = jnp.concatenate([pad_vis, pad_msk], axis=1).astype(jnp.float32)[:, None, :]
    x_full = transformer_block(pad_coords(c_full), x_full, km_full,
                               params["dec_block"], params["dec_pos"])     # (B, G, D) bf16
    x_recovered = x_full[:, -M:, :]                                        # (B, M, D) bf16

    # ---- prediction head (padded-token zeroing fused into the kernel) ----
    maskf = pad_msk.astype(jnp.float32).reshape(B * M, 1)
    pred = prediction_head(x_recovered.reshape(B * M, D), maskf,
                           params["head_w"], params["head_b"], 3 * S)
    prediction = pred.reshape(B, M, S, C)

    # ---- ground truth gather + padded-token zeroing (plain JAX, pure elementwise) ----
    idx_nb = jnp.broadcast_to(idx_msk[:, :, None, None], (B, M, S, C))
    ground_truth = jnp.take_along_axis(neighborhoods, idx_nb, axis=1)      # (B, M, S, C)
    ground_truth = jnp.where(pad_msk[:, :, None, None], 0.0, ground_truth)
    return prediction, ground_truth


# ----------------------------- demo -----------------------------

if __name__ == "__main__":
    B, G, DIM, S, C = 4, 8, 128, 4, 3
    key = jax.random.PRNGKey(0)
    k_param, k_x, k_nb, k_c, k_mask = jax.random.split(key, 5)

    params = init_params(k_param, DIM, S)
    x = jax.random.normal(k_x, (B, G, DIM), jnp.float32)                   # token embeddings
    neighborhoods = jax.random.normal(k_nb, (B, G, S, C), jnp.float32)     # grouped points
    center_points = jax.random.normal(k_c, (B, G, C), jnp.float32)
    # mark the last two groups of batch element 1 as padding (all-zero centers)
    center_points = center_points.at[1, -2:, :].set(0.0)

    fwd = jax.jit(aux_mae_forward)
    prediction, ground_truth = fwd(params, x, neighborhoods, center_points, k_mask)
    jax.block_until_ready((prediction, ground_truth))

    M = int(round(G * MASK_RATIO))
    assert prediction.shape == (B, M, S, C), prediction.shape
    assert ground_truth.shape == (B, M, S, C), ground_truth.shape
    assert bool(jnp.all(jnp.isfinite(prediction)))
    assert bool(jnp.all(jnp.isfinite(ground_truth)))
    print("KERNEL_OK")
</pallas_src>

<mosaic_0001>
module attributes {stable_mosaic.version = 11 : i64} {
  func.func private @main(%arg0: i32) attributes {dimension_semantics = [#tpu.dimension_semantics<core_parallel>], iteration_bounds = array<i64: 2>, tpu.core_type = #tpu.core_type<sc_scalar_subcore>, window_params = []} {
    return
  }
}

module attributes {stable_mosaic.version = 11 : i64} {
  func.func private @main(%arg0: i32) attributes {dimension_semantics = [#tpu.dimension_semantics<core_parallel>], iteration_bounds = array<i64: 2>, tpu.core_type = #tpu.core_type<sc_scalar_subcore>, window_params = []} {
    return
  }
}

module attributes {stable_mosaic.version = 11 : i64} {
  func.func @_head_kernel(%arg0: i32, %arg1: memref<16x128xbf16, #tpu.memory_space<vmem>>, %arg2: memref<16x1xf32, #tpu.memory_space<vmem>>, %arg3: memref<128x128xbf16, #tpu.memory_space<vmem>>, %arg4: memref<1x128xf32, #tpu.memory_space<vmem>>, %arg5: memref<16x128xf32, #tpu.memory_space<vmem>>) attributes {dimension_semantics = [#tpu.dimension_semantics<parallel>], iteration_bounds = array<i64: 1>, scalar_prefetch = 0 : i64, scratch_operands = 0 : i64, tpu.core_type = #tpu.core_type<tc>, window_params = [{transform_indices = @transform_0, window_bounds = array<i64: 16, 128>}, {transform_indices = @transform_1, window_bounds = array<i64: 16, 1>}, {pipeline_mode = #tpu.pipeline_mode<synchronous>, transform_indices = @transform_2, window_bounds = array<i64: 128, 128>}, {pipeline_mode = #tpu.pipeline_mode<synchronous>, transform_indices = @transform_3, window_bounds = array<i64: 1, 128>}, {transform_indices = @transform_4, window_bounds = array<i64: 16, 128>}]} {
    %c0 = arith.constant 0 : index
    %c0_0 = arith.constant 0 : index
    %0 = vector.load %arg1[%c0, %c0_0] : memref<16x128xbf16, #tpu.memory_space<vmem>>, vector<16x128xbf16>
    %c0_1 = arith.constant 0 : index
    %c0_2 = arith.constant 0 : index
    %1 = vector.load %arg3[%c0_1, %c0_2] : memref<128x128xbf16, #tpu.memory_space<vmem>>, vector<128x128xbf16>
    %cst = arith.constant dense<0.000000e+00> : vector<16x128xf32>
    %2 = tpu.matmul %0, %1, %cst {dimension_numbers = #tpu.dot_dimension_numbers<[1], [0], [0], [1], [0, 0, 1, 1], [], []>} : vector<16x128xbf16>, vector<128x128xbf16>, vector<16x128xf32> -> vector<16x128xf32>
    %c0_3 = arith.constant 0 : index
    %c0_4 = arith.constant 0 : index
    %3 = vector.load %arg4[%c0_3, %c0_4] : memref<1x128xf32, #tpu.memory_space<vmem>>, vector<1x128xf32>
    %4 = vector.broadcast %3 : vector<1x128xf32> to vector<16x128xf32>
    %5 = arith.addf %2, %4 : vector<16x128xf32>
    %c0_5 = arith.constant 0 : index
    %c0_6 = arith.constant 0 : index
    %6 = vector.load %arg2[%c0_5, %c0_6] : memref<16x1xf32, #tpu.memory_space<vmem>>, vector<16x1xf32>
    %cst_7 = arith.constant 5.000000e-01 : f32
    %7 = vector.broadcast %cst_7 : f32 to vector<16x1xf32>
    %8 = arith.cmpf ogt, %6, %7 : vector<16x1xf32>
    %cst_8 = arith.constant 0.000000e+00 : f32
    %9 = vector.shape_cast %8 : vector<16x1xi1> to vector<16x1xi1>
    %10 = vector.broadcast %9 : vector<16x1xi1> to vector<16x128xi1>
    %11 = vector.broadcast %cst_8 : f32 to vector<16x128xf32>
    %12 = arith.select %10, %11, %5 : vector<16x128xi1>, vector<16x128xf32>
    %c0_9 = arith.constant 0 : index
    %c0_10 = arith.constant 0 : index
    %13 = vector.load %arg5[%c0_9, %c0_10] : memref<16x128xf32, #tpu.memory_space<vmem>>, vector<16x128xf32>
    tpu.vector_store %arg5[%c0_9, %c0_10], %12 {strides = array<i32>} : memref<16x128xf32, #tpu.memory_space<vmem>>, vector<16x128xf32>,
    return
  }
  func.func @transform_0(%arg0: i32) -> (i32, i32) {
    %c0_i32 = arith.constant 0 : i32
    %c0_i32_0 = arith.constant 0 : i32
    return %arg0, %c0_i32 : i32, i32
  }
  func.func @transform_1(%arg0: i32) -> (i32, i32) {
    %c0_i32 = arith.constant 0 : i32
    %c0_i32_0 = arith.constant 0 : i32
    return %arg0, %c0_i32 : i32, i32
  }
  func.func @transform_2(%arg0: i32) -> (i32, i32) {
    %c0_i32 = arith.constant 0 : i32
    %c0_i32_0 = arith.constant 0 : i32
    %c0_i32_1 = arith.constant 0 : i32
    return %c0_i32, %c0_i32_0 : i32, i32
  }
  func.func @transform_3(%arg0: i32) -> (i32, i32) {
    %c0_i32 = arith.constant 0 : i32
    %c0_i32_0 = arith.constant 0 : i32
    %c0_i32_1 = arith.constant 0 : i32
    return %c0_i32, %c0_i32_0 : i32, i32
  }
  func.func @transform_4(%arg0: i32) -> (i32, i32) {
    %c0_i32 = arith.constant 0 : i32
    %c0_i32_0 = arith.constant 0 : i32
    return %arg0, %c0_i32 : i32, i32
  }
}

module attributes {stable_mosaic.version = 11 : i64} {
  func.func @_transformer_block_kernel(%arg0: i32, %arg1: memref<1x4x8xf32, #tpu.memory_space<vmem>>, %arg2: memref<1x4x128xf32, #tpu.memory_space<vmem>>, %arg3: memref<1x1x4xf32, #tpu.memory_space<vmem>>, %arg4: memref<8x128xbf16, #tpu.memory_space<vmem>>, %arg5: memref<1x128xf32, #tpu.memory_space<vmem>>, %arg6: memref<128x128xbf16, #tpu.memory_space<vmem>>, %arg7: memref<1x128xf32, #tpu.memory_space<vmem>>, %arg8: memref<2x2x128xf32, #tpu.memory_space<vmem>>, %arg9: memref<128x384xbf16, #tpu.memory_space<vmem>>, %arg10: memref<1x384xf32, #tpu.memory_space<vmem>>, %arg11: memref<128x128xbf16, #tpu.memory_space<vmem>>, %arg12: memref<1x128xf32, #tpu.memory_space<vmem>>, %arg13: memref<2x128x256xbf16, #tpu.memory_space<vmem>>, %arg14: memref<2x1x256xf32, #tpu.memory_space<vmem>>, %arg15: memref<2x256x128xbf16, #tpu.memory_space<vmem>>, %arg16: memref<1x128xf32, #tpu.memory_space<vmem>>, %arg17: memref<2x1x128xf32, #tpu.memory_space<vmem>>, %arg18: memref<1x4x128xbf16, #tpu.memory_space<vmem>>) attributes {dimension_semantics = [#tpu.dimension_semantics<parallel>], iteration_bounds = array<i64: 4>, scalar_prefetch = 0 : i64, scratch_operands = 0 : i64, tpu.core_type = #tpu.core_type<tc>, window_params = [{transform_indices = @transform_0, window_bounds = array<i64: 1, 4, 8>}, {transform_indices = @transform_1, window_bounds = array<i64: 1, 4, 128>}, {transform_indices = @transform_2, window_bounds = array<i64: 1, 1, 4>}, {pipeline_mode = #tpu.pipeline_mode<synchronous>, transform_indices = @transform_3, window_bounds = array<i64: 8, 128>}, {pipeline_mode = #tpu.pipeline_mode<synchronous>, transform_indices = @transform_4, window_bounds = array<i64: 1, 128>}, {pipeline_mode = #tpu.pipeline_mode<synchronous>, transform_indices = @transform_5, window_bounds = array<i64: 128, 128>}, {pipeline_mode = #tpu.pipeline_mode<synchronous>, transform_indices = @transform_6, window_bounds = array<i64: 1, 128>}, {pipeline_mode = #tpu.pipeline_mode<synchronous>, transform_indices = @transform_7, window_bounds = array<i64: 2, 2, 128>}, {pipeline_mode = #tpu.pipeline_mode<synchronous>, transform_indices = @transform_8, window_bounds = array<i64: 128, 384>}, {pipeline_mode = #tpu.pipeline_mode<synchronous>, transform_indices = @transform_9, window_bounds = array<i64: 1, 384>}, {pipeline_mode = #tpu.pipeline_mode<synchronous>, transform_indices = @transform_10, window_bounds = array<i64: 128, 128>}, {pipeline_mode = #tpu.pipeline_mode<synchronous>, transform_indices = @transform_11, window_bounds = array<i64: 1, 128>}, {pipeline_mode = #tpu.pipeline_mode<synchronous>, transform_indices = @transform_12, window_bounds = array<i64: 2, 128, 256>}, {pipeline_mode = #tpu.pipeline_mode<synchronous>, transform_indices = @transform_13, window_bounds = array<i64: 2, 1, 256>}, {pipeline_mode = #tpu.pipeline_mode<synchronous>, transform_indices = @transform_14, window_bounds = array<i64: 2, 256, 128>}, {pipeline_mode = #tpu.pipeline_mode<synchronous>, transform_indices = @transform_15, window_bounds = array<i64: 1, 128>}, {pipeline_mode = #tpu.pipeline_mode<synchronous>, transform_indices = @transform_16, window_bounds = array<i64: 2, 1, 128>}, {transform_indices = @transform_17, window_bounds = array<i64: 1, 4, 128>}]} {
    %c0 = arith.constant 0 : index
    %c0_0 = arith.constant 0 : index
    %c0_1 = arith.constant 0 : index
    %0 = vector.load %arg2[%c0, %c0_0, %c0_1] : memref<1x4x128xf32, #tpu.memory_space<vmem>>, vector<1x4x128xf32>
    %1 = vector.shape_cast %0 : vector<1x4x128xf32> to vector<4x128xf32>
    %c0_2 = arith.constant 0 : index
    %c0_3 = arith.constant 0 : index
    %c0_4 = arith.constant 0 : index
    %2 = vector.load %arg1[%c0_2, %c0_3, %c0_4] : memref<1x4x8xf32, #tpu.memory_space<vmem>>, vector<1x4x8xf32>
    %3 = vector.shape_cast %2 : vector<1x4x8xf32> to vector<4x8xf32>
    %c0_5 = arith.constant 0 : index
    %c0_6 = arith.constant 0 : index
    %c0_7 = arith.constant 0 : index
    %4 = vector.load %arg3[%c0_5, %c0_6, %c0_7] : memref<1x1x4xf32, #tpu.memory_space<vmem>>, vector<1x1x4xf32>
    %c0_8 = arith.constant 0 : index
    %c0_9 = arith.constant 0 : index
    %c0_10 = arith.constant 0 : index
    %5 = vector.load %arg8[%c0_8, %c0_9, %c0_10] : memref<2x2x128xf32, #tpu.memory_space<vmem>>, vector<2x2x128xf32>
    %c0_11 = arith.constant 0 : index
    %c0_12 = arith.constant 0 : index
    %c0_13 = arith.constant 0 : index
    %6 = vector.load %arg17[%c0_11, %c0_12, %c0_13] : memref<2x1x128xf32, #tpu.memory_space<vmem>>, vector<2x1x128xf32>
    %7 = arith.truncf %3 : vector<4x8xf32> to vector<4x8xbf16>
    %c0_14 = arith.constant 0 : index
    %c0_15 = arith.constant 0 : index
    %8 = vector.load %arg4[%c0_14, %c0_15] : memref<8x128xbf16, #tpu.memory_space<vmem>>, vector<8x128xbf16>
    %cst = arith.constant dense<0.000000e+00> : vector<4x128xf32>
    %9 = tpu.matmul %7, %8, %cst {dimension_numbers = #tpu.dot_dimension_numbers<[1], [0], [0], [1], [0, 0, 1, 1], [], []>} : vector<4x8xbf16>, vector<8x128xbf16>, vector<4x128xf32> -> vector<4x128xf32>
    %c0_16 = arith.constant 0 : index
    %c0_17 = arith.constant 0 : index
    %10 = vector.load %arg5[%c0_16, %c0_17] : memref<1x128xf32, #tpu.memory_space<vmem>>, vector<1x128xf32>
    %11 = vector.broadcast %10 : vector<1x128xf32> to vector<4x128xf32>
    %12 = arith.addf %9, %11 : vector<4x128xf32>
    %13 = arith.mulf %12, %12 : vector<4x128xf32>
    %14 = arith.mulf %12, %13 : vector<4x128xf32>
    %cst_18 = arith.constant 4.471500e-02 : f32
    %15 = vector.broadcast %cst_18 : f32 to vector<4x128xf32>
    %16 = arith.mulf %15, %14 : vector<4x128xf32>
    %17 = arith.addf %12, %16 : vector<4x128xf32>
    %cst_19 = arith.constant 0.797884583 : f32
    %18 = vector.broadcast %cst_19 : f32 to vector<4x128xf32>
    %19 = arith.mulf %18, %17 : vector<4x128xf32>
    %20 = math.tanh %19 : vector<4x128xf32>
    %cst_20 = arith.constant 1.000000e+00 : f32
    %21 = vector.broadcast %cst_20 : f32 to vector<4x128xf32>
    %22 = arith.addf %21, %20 : vector<4x128xf32>
    %cst_21 = arith.constant 5.000000e-01 : f32
    %23 = vector.broadcast %cst_21 : f32 to vector<4x128xf32>
    %24 = arith.mulf %23, %22 : vector<4x128xf32>
    %25 = arith.mulf %12, %24 : vector<4x128xf32>
    %26 = arith.truncf %25 : vector<4x128xf32> to vector<4x128xbf16>
    %c0_22 = arith.constant 0 : index
    %c0_23 = arith.constant 0 : index
    %27 = vector.load %arg6[%c0_22, %c0_23] : memref<128x128xbf16, #tpu.memory_space<vmem>>, vector<128x128xbf16>
    %cst_24 = arith.constant dense<0.000000e+00> : vector<4x128xf32>
    %28 = tpu.matmul %26, %27, %cst_24 {dimension_numbers = #tpu.dot_dimension_numbers<[1], [0], [0], [1], [0, 0, 1, 1], [], []>} : vector<4x128xbf16>, vector<128x128xbf16>, vector<4x128xf32> -> vector<4x128xf32>
    %c0_25 = arith.constant 0 : index
    %c0_26 = arith.constant 0 : index
    %29 = vector.load %arg7[%c0_25, %c0_26] : memref<1x128xf32, #tpu.memory_space<vmem>>, vector<1x128xf32>
    %30 = vector.broadcast %29 : vector<1x128xf32> to vector<4x128xf32>
    %31 = arith.addf %28, %30 : vector<4x128xf32>
    %32 = arith.addf %1, %31 : vector<4x128xf32>
    %33 = vector.extract_strided_slice %5 {offsets = [0, 0, 0], sizes = [1, 1, 128], strides = [1, 1, 1]} : vector<2x2x128xf32> to vector<1x1x128xf32>
    %34 = vector.shape_cast %33 : vector<1x1x128xf32> to vector<128xf32>
    %35 = vector.extract_strided_slice %5 {offsets = [0, 1, 0], sizes = [1, 1, 128], strides = [1, 1, 1]} : vector<2x2x128xf32> to vector<1x1x128xf32>
    %36 = vector.shape_cast %35 : vector<1x1x128xf32> to vector<128xf32>
    %cst_27 = arith.constant dense<0.000000e+00> : vector<4xf32>
    %37 = vector.multi_reduction <add>, %32, %cst_27 [1] : vector<4x128xf32> to vector<4xf32>
    %38 = vector.shape_cast %37 : vector<4xf32> to vector<4x1xf32>
    %cst_28 = arith.constant 1.280000e+02 : f32
    %39 = vector.broadcast %cst_28 : f32 to vector<4x1xf32>
    %40 = arith.divf %38, %39 : vector<4x1xf32>
    %41 = vector.broadcast %40 : vector<4x1xf32> to vector<4x128xf32>
    %42 = arith.subf %32, %41 : vector<4x128xf32>
    %43 = arith.mulf %42, %42 : vector<4x128xf32>
    %cst_29 = arith.constant dense<0.000000e+00> : vector<4xf32>
    %44 = vector.multi_reduction <add>, %43, %cst_29 [1] : vector<4x128xf32> to vector<4xf32>
    %45 = vector.shape_cast %44 : vector<4xf32> to vector<4x1xf32>
    %cst_30 = arith.constant 1.280000e+02 : f32
    %46 = vector.broadcast %cst_30 : f32 to vector<4x1xf32>
    %47 = arith.divf %45, %46 : vector<4x1xf32>
    %48 = vector.broadcast %40 : vector<4x1xf32> to vector<4x128xf32>
    %49 = arith.subf %32, %48 : vector<4x128xf32>
    %cst_31 = arith.constant 9.99999974E-6 : f32
    %50 = vector.broadcast %cst_31 : f32 to vector<4x1xf32>
    %51 = arith.addf %47, %50 : vector<4x1xf32>
    %52 = math.rsqrt %51 : vector<4x1xf32>
    %53 = vector.broadcast %52 : vector<4x1xf32> to vector<4x128xf32>
    %54 = arith.mulf %49, %53 : vector<4x128xf32>
    %55 = vector.shape_cast %34 : vector<128xf32> to vector<1x128xf32>
    %56 = vector.broadcast %55 : vector<1x128xf32> to vector<4x128xf32>
    %57 = arith.mulf %54, %56 : vector<4x128xf32>
    %58 = vector.shape_cast %36 : vector<128xf32> to vector<1x128xf32>
    %59 = vector.broadcast %58 : vector<1x128xf32> to vector<4x128xf32>
    %60 = arith.addf %57, %59 : vector<4x128xf32>
    %61 = arith.truncf %60 : vector<4x128xf32> to vector<4x128xbf16>
    %c0_32 = arith.constant 0 : index
    %c0_33 = arith.constant 0 : index
    %62 = vector.load %arg9[%c0_32, %c0_33] : memref<128x384xbf16, #tpu.memory_space<vmem>>, vector<128x384xbf16>
    %cst_34 = arith.constant dense<0.000000e+00> : vector<4x384xf32>
    %63 = tpu.matmul %61, %62, %cst_34 {dimension_numbers = #tpu.dot_dimension_numbers<[1], [0], [0], [1], [0, 0, 1, 1], [], []>} : vector<4x128xbf16>, vector<128x384xbf16>, vector<4x384xf32> -> vector<4x384xf32>
    %c0_35 = arith.constant 0 : index
    %c0_36 = arith.constant 0 : index
    %64 = vector.load %arg10[%c0_35, %c0_36] : memref<1x384xf32, #tpu.memory_space<vmem>>, vector<1x384xf32>
    %65 = vector.broadcast %64 : vector<1x384xf32> to vector<4x384xf32>
    %66 = arith.addf %63, %65 : vector<4x384xf32>
    %67 = vector.extract_strided_slice %66 {offsets = [0, 0], sizes = [4, 128], strides = [1, 1]} : vector<4x384xf32> to vector<4x128xf32>
    %68 = vector.shape_cast %67 : vector<4x128xf32> to vector<1x4x128xf32>
    %69 = arith.truncf %68 : vector<1x4x128xf32> to vector<1x4x128xbf16>
    %70 = vector.extract_strided_slice %66 {offsets = [0, 128], sizes = [4, 128], strides = [1, 1]} : vector<4x384xf32> to vector<4x128xf32>
    %71 = vector.shape_cast %70 : vector<4x128xf32> to vector<1x4x128xf32>
    %72 = arith.truncf %71 : vector<1x4x128xf32> to vector<1x4x128xbf16>
    %73 = vector.extract_strided_slice %66 {offsets = [0, 256], sizes = [4, 128], strides = [1, 1]} : vector<4x384xf32> to vector<4x128xf32>
    %74 = vector.shape_cast %73 : vector<4x128xf32> to vector<1x4x128xf32>
    %75 = arith.truncf %74 : vector<1x4x128xf32> to vector<1x4x128xbf16>
    "tpu.trace_start"() <{level = 10 : i32, message = "bnd,bmd->bnm"}> : () -> ()
    %cst_37 = arith.constant dense<0.000000e+00> : vector<1x4x4xf32>
    %76 = tpu.matmul %69, %72, %cst_37 {dimension_numbers = #tpu.dot_dimension_numbers<[2], [2], [1], [1], [0, 0, 0, 1, 1, 1], [0], [0]>} : vector<1x4x128xbf16>, vector<1x4x128xbf16>, vector<1x4x4xf32> -> vector<1x4x4xf32>
    "tpu.trace_stop"() : () -> ()
    %cst_38 = arith.constant 0.0883883461 : f32
    %77 = vector.broadcast %cst_38 : f32 to vector<1x4x4xf32>
    %78 = arith.mulf %76, %77 : vector<1x4x4xf32>
    %cst_39 = arith.constant 5.000000e-01 : f32
    %79 = vector.broadcast %cst_39 : f32 to vector<1x1x4xf32>
    %80 = arith.cmpf ogt, %4, %79 : vector<1x1x4xf32>
    %cst_40 = arith.constant -1.000000e+30 : f32
    %81 = vector.shape_cast %80 : vector<1x1x4xi1> to vector<1x1x4xi1>
    %82 = vector.broadcast %81 : vector<1x1x4xi1> to vector<1x4x4xi1>
    %83 = vector.broadcast %cst_40 : f32 to vector<1x4x4xf32>
    %84 = arith.select %82, %83, %78 : vector<1x4x4xi1>, vector<1x4x4xf32>
    %cst_41 = arith.constant dense<0xFF800000> : vector<1x4xf32>
    %85 = vector.multi_reduction <maximumf>, %84, %cst_41 [2] : vector<1x4x4xf32> to vector<1x4xf32>
    %86 = vector.shape_cast %85 : vector<1x4xf32> to vector<1x4x1xf32>
    %87 = vector.broadcast %86 : vector<1x4x1xf32> to vector<1x4x4xf32>
    %88 = arith.subf %84, %87 : vector<1x4x4xf32>
    %89 = math.exp %88 : vector<1x4x4xf32>
    %cst_42 = arith.constant dense<0.000000e+00> : vector<1x4xf32>
    %90 = vector.multi_reduction <add>, %89, %cst_42 [2] : vector<1x4x4xf32> to vector<1x4xf32>
    %91 = vector.shape_cast %90 : vector<1x4xf32> to vector<1x4x1xf32>
    %92 = tpu.reciprocal %91 {approx = true} : vector<1x4x1xf32> -> vector<1x4x1xf32>
    %93 = vector.broadcast %92 : vector<1x4x1xf32> to vector<1x4x4xf32>
    %94 = arith.mulf %89, %93 : vector<1x4x4xf32>
    %95 = arith.truncf %94 : vector<1x4x4xf32> to vector<1x4x4xbf16>
    "tpu.trace_start"() <{level = 10 : i32, message = "bnm,bmd->bnd"}> : () -> ()
    %cst_43 = arith.constant dense<0.000000e+00> : vector<1x4x128xf32>
    %96 = tpu.matmul %95, %75, %cst_43 {dimension_numbers = #tpu.dot_dimension_numbers<[2], [1], [1], [2], [0, 0, 0, 1, 1, 2], [0], [0]>} : vector<1x4x4xbf16>, vector<1x4x128xbf16>, vector<1x4x128xf32> -> vector<1x4x128xf32>
    "tpu.trace_stop"() : () -> ()
    %97 = vector.shape_cast %96 : vector<1x4x128xf32> to vector<4x128xf32>
    %98 = arith.truncf %97 : vector<4x128xf32> to vector<4x128xbf16>
    %c0_44 = arith.constant 0 : index
    %c0_45 = arith.constant 0 : index
    %99 = vector.load %arg11[%c0_44, %c0_45] : memref<128x128xbf16, #tpu.memory_space<vmem>>, vector<128x128xbf16>
    %cst_46 = arith.constant dense<0.000000e+00> : vector<4x128xf32>
    %100 = tpu.matmul %98, %99, %cst_46 {dimension_numbers = #tpu.dot_dimension_numbers<[1], [0], [0], [1], [0, 0, 1, 1], [], []>} : vector<4x128xbf16>, vector<128x128xbf16>, vector<4x128xf32> -> vector<4x128xf32>
    %c0_47 = arith.constant 0 : index
    %c0_48 = arith.constant 0 : index
    %101 = vector.load %arg12[%c0_47, %c0_48] : memref<1x128xf32, #tpu.memory_space<vmem>>, vector<1x128xf32>
    %102 = vector.broadcast %101 : vector<1x128xf32> to vector<4x128xf32>
    %103 = arith.addf %100, %102 : vector<4x128xf32>
    %104 = arith.addf %32, %103 : vector<4x128xf32>
    %105 = vector.extract_strided_slice %5 {offsets = [1, 0, 0], sizes = [1, 1, 128], strides = [1, 1, 1]} : vector<2x2x128xf32> to vector<1x1x128xf32>
    %106 = vector.shape_cast %105 : vector<1x1x128xf32> to vector<128xf32>
    %107 = vector.extract_strided_slice %5 {offsets = [1, 1, 0], sizes = [1, 1, 128], strides = [1, 1, 1]} : vector<2x2x128xf32> to vector<1x1x128xf32>
    %108 = vector.shape_cast %107 : vector<1x1x128xf32> to vector<128xf32>
    %cst_49 = arith.constant dense<0.000000e+00> : vector<4xf32>
    %109 = vector.multi_reduction <add>, %104, %cst_49 [1] : vector<4x128xf32> to vector<4xf32>
    %110 = vector.shape_cast %109 : vector<4xf32> to vector<4x1xf32>
    %cst_50 = arith.constant 1.280000e+02 : f32
    %111 = vector.broadcast %cst_50 : f32 to vector<4x1xf32>
    %112 = arith.divf %110, %111 : vector<4x1xf32>
    %113 = vector.broadcast %112 : vector<4x1xf32> to vector<4x128xf32>
    %114 = arith.subf %104, %113 : vector<4x128xf32>
    %115 = arith.mulf %114, %114 : vector<4x128xf32>
    %cst_51 = arith.constant dense<0.000000e+00> : vector<4xf32>
    %116 = vector.multi_reduction <add>, %115, %cst_51 [1] : vector<4x128xf32> to vector<4xf32>
    %117 = vector.shape_cast %116 : vector<4xf32> to vector<4x1xf32>
    %cst_52 = arith.constant 1.280000e+02 : f32
    %118 = vector.broadcast %cst_52 : f32 to vector<4x1xf32>
    %119 = arith.divf %117, %118 : vector<4x1xf32>
    %120 = vector.broadcast %112 : vector<4x1xf32> to vector<4x128xf32>
    %121 = arith.subf %104, %120 : vector<4x128xf32>
    %cst_53 = arith.constant 9.99999974E-6 : f32
    %122 = vector.broadcast %cst_53 : f32 to vector<4x1xf32>
    %123 = arith.addf %119, %122 : vector<4x1xf32>
    %124 = math.rsqrt %123 : vector<4x1xf32>
    %125 = vector.broadcast %124 : vector<4x1xf32> to vector<4x128xf32>
    %126 = arith.mulf %121, %125 : vector<4x128xf32>
    %127 = vector.shape_cast %106 : vector<128xf32> to vector<1x128xf32>
    %128 = vector.broadcast %127 : vector<1x128xf32> to vector<4x128xf32>
    %129 = arith.mulf %126, %128 : vector<4x128xf32>
    %130 = vector.shape_cast %108 : vector<128xf32> to vector<1x128xf32>
    %131 = vector.broadcast %130 : vector<1x128xf32> to vector<4x128xf32>
    %132 = arith.addf %129, %131 : vector<4x128xf32>
    %133 = arith.truncf %132 : vector<4x128xf32> to vector<4x128xbf16>
    %cst_54 = arith.constant 0.000000e+00 : f32
    %134 = vector.broadcast %cst_54 : f32 to vector<4x128xf32>
    %c0_55 = arith.constant 0 : index
    %c0_56 = arith.constant 0 : index
    %135 = vector.load %arg16[%c0_55, %c0_56] : memref<1x128xf32, #tpu.memory_space<vmem>>, vector<1x128xf32>
    %136 = vector.broadcast %135 : vector<1x128xf32> to vector<4x128xf32>
    %137 = arith.addf %134, %136 : vector<4x128xf32>
    %c0_i32 = arith.constant 0 : i32
    %c2_i32 = arith.constant 2 : i32
    %138 = arith.addi %c0_i32, %c2_i32 : i32
    %c1_i32 = arith.constant 1 : i32
    %139 = scf.for %arg19 = %c0_i32 to %138 step %c1_i32 iter_args(%arg20 = %137) -> (vector<4x128xf32>)  : i32 {
      %170 = arith.index_cast %arg19 : i32 to index
      %c0_66 = arith.constant 0 : index
      %c0_67 = arith.constant 0 : index
      %171 = vector.load %arg13[%170, %c0_66, %c0_67] : memref<2x128x256xbf16, #tpu.memory_space<vmem>>, vector<1x128x256xbf16>
      %172 = vector.shape_cast %171 : vector<1x128x256xbf16> to vector<128x256xbf16>
      %cst_68 = arith.constant dense<0.000000e+00> : vector<4x256xf32>
      %173 = tpu.matmul %133, %172, %cst_68 {dimension_numbers = #tpu.dot_dimension_numbers<[1], [0], [0], [1], [0, 0, 1, 1], [], []>} : vector<4x128xbf16>, vector<128x256xbf16>, vector<4x256xf32> -> vector<4x256xf32>
      %174 = arith.index_cast %arg19 : i32 to index
      %c0_69 = arith.constant 0 : index
      %c0_70 = arith.constant 0 : index
      %175 = vector.load %arg14[%174, %c0_69, %c0_70] : memref<2x1x256xf32, #tpu.memory_space<vmem>>, vector<1x1x256xf32>
      %176 = vector.shape_cast %175 : vector<1x1x256xf32> to vector<1x256xf32>
      %177 = vector.broadcast %176 : vector<1x256xf32> to vector<4x256xf32>
      %178 = arith.addf %173, %177 : vector<4x256xf32>
      %179 = arith.mulf %178, %178 : vector<4x256xf32>
      %180 = arith.mulf %178, %179 : vector<4x256xf32>
      %cst_71 = arith.constant 4.471500e-02 : f32
      %181 = vector.broadcast %cst_71 : f32 to vector<4x256xf32>
      %182 = arith.mulf %181, %180 : vector<4x256xf32>
      %183 = arith.addf %178, %182 : vector<4x256xf32>
      %cst_72 = arith.constant 0.797884583 : f32
      %184 = vector.broadcast %cst_72 : f32 to vector<4x256xf32>
      %185 = arith.mulf %184, %183 : vector<4x256xf32>
      %186 = math.tanh %185 : vector<4x256xf32>
      %cst_73 = arith.constant 1.000000e+00 : f32
      %187 = vector.broadcast %cst_73 : f32 to vector<4x256xf32>
      %188 = arith.addf %187, %186 : vector<4x256xf32>
      %cst_74 = arith.constant 5.000000e-01 : f32
      %189 = vector.broadcast %cst_74 : f32 to vector<4x256xf32>
      %190 = arith.mulf %189, %188 : vector<4x256xf32>
      %191 = arith.mulf %178, %190 : vector<4x256xf32>
      %192 = arith.truncf %191 : vector<4x256xf32> to vector<4x256xbf16>
      %193 = arith.index_cast %arg19 : i32 to index
      %c0_75 = arith.constant 0 : index
      %c0_76 = arith.constant 0 : index
      %194 = vector.load %arg15[%193, %c0_75, %c0_76] : memref<2x256x128xbf16, #tpu.memory_space<vmem>>, vector<1x256x128xbf16>
      %195 = vector.shape_cast %194 : vector<1x256x128xbf16> to vector<256x128xbf16>
      %cst_77 = arith.constant dense<0.000000e+00> : vector<4x128xf32>
      %196 = tpu.matmul %192, %195, %cst_77 {dimension_numbers = #tpu.dot_dimension_numbers<[1], [0], [0], [1], [0, 0, 1, 1], [], []>} : vector<4x256xbf16>, vector<256x128xbf16>, vector<4x128xf32> -> vector<4x128xf32>
      %197 = arith.addf %arg20, %196 : vector<4x128xf32>
      scf.yield %197 : vector<4x128xf32>
    }
    %c2_i32_57 = arith.constant 2 : i32
    %140 = arith.addf %104, %139 : vector<4x128xf32>
    %141 = vector.extract_strided_slice %6 {offsets = [0, 0, 0], sizes = [1, 1, 128], strides = [1, 1, 1]} : vector<2x1x128xf32> to vector<1x1x128xf32>
    %142 = vector.shape_cast %141 : vector<1x1x128xf32> to vector<1x128xf32>
    %143 = vector.extract_strided_slice %6 {offsets = [1, 0, 0], sizes = [1, 1, 128], strides = [1, 1, 1]} : vector<2x1x128xf32> to vector<1x1x128xf32>
    %144 = vector.shape_cast %143 : vector<1x1x128xf32> to vector<1x128xf32>
    %cst_58 = arith.constant dense<0.000000e+00> : vector<4xf32>
    %145 = vector.multi_reduction <add>, %140, %cst_58 [1] : vector<4x128xf32> to vector<4xf32>
    %146 = vector.shape_cast %145 : vector<4xf32> to vector<4x1xf32>
    %cst_59 = arith.constant 1.280000e+02 : f32
    %147 = vector.broadcast %cst_59 : f32 to vector<4x1xf32>
    %148 = arith.divf %146, %147 : vector<4x1xf32>
    %149 = vector.broadcast %148 : vector<4x1xf32> to vector<4x128xf32>
    %150 = arith.subf %140, %149 : vector<4x128xf32>
    %151 = arith.mulf %150, %150 : vector<4x128xf32>
    %cst_60 = arith.constant dense<0.000000e+00> : vector<4xf32>
    %152 = vector.multi_reduction <add>, %151, %cst_60 [1] : vector<4x128xf32> to vector<4xf32>
    %153 = vector.shape_cast %152 : vector<4xf32> to vector<4x1xf32>
    %cst_61 = arith.constant 1.280000e+02 : f32
    %154 = vector.broadcast %cst_61 : f32 to vector<4x1xf32>
    %155 = arith.divf %153, %154 : vector<4x1xf32>
    %156 = vector.broadcast %148 : vector<4x1xf32> to vector<4x128xf32>
    %157 = arith.subf %140, %156 : vector<4x128xf32>
    %cst_62 = arith.constant 9.99999974E-6 : f32
    %158 = vector.broadcast %cst_62 : f32 to vector<4x1xf32>
    %159 = arith.addf %155, %158 : vector<4x1xf32>
    %160 = math.rsqrt %159 : vector<4x1xf32>
    %161 = vector.broadcast %160 : vector<4x1xf32> to vector<4x128xf32>
    %162 = arith.mulf %157, %161 : vector<4x128xf32>
    %163 = vector.broadcast %142 : vector<1x128xf32> to vector<4x128xf32>
    %164 = arith.mulf %162, %163 : vector<4x128xf32>
    %165 = vector.broadcast %144 : vector<1x128xf32> to vector<4x128xf32>
    %166 = arith.addf %164, %165 : vector<4x128xf32>
    %167 = vector.shape_cast %166 : vector<4x128xf32> to vector<1x4x128xf32>
    %168 = arith.truncf %167 : vector<1x4x128xf32> to vector<1x4x128xbf16>
    %c0_63 = arith.constant 0 : index
    %c0_64 = arith.constant 0 : index
    %c0_65 = arith.constant 0 : index
    %169 = vector.load %arg18[%c0_63, %c0_64, %c0_65] : memref<1x4x128xbf16, #tpu.memory_space<vmem>>, vector<1x4x128xbf16>
    tpu.vector_store %arg18[%c0_63, %c0_64, %c0_65], %168 {strides = array<i32>} : memref<1x4x128xbf16, #tpu.memory_space<vmem>>, vector<1x4x128xbf16>,
    return
  }
  func.func @transform_0(%arg0: i32) -> (i32, i32, i32) {
    %c0_i32 = arith.constant 0 : i32
    %c0_i32_0 = arith.constant 0 : i32
    %c0_i32_1 = arith.constant 0 : i32
    return %arg0, %c0_i32, %c0_i32_0 : i32, i32, i32
  }
  func.func @transform_1(%arg0: i32) -> (i32, i32, i32) {
    %c0_i32 = arith.constant 0 : i32
    %c0_i32_0 = arith.constant 0 : i32
    %c0_i32_1 = arith.constant 0 : i32
    return %arg0, %c0_i32, %c0_i32_0 : i32, i32, i32
  }
  func.func @transform_2(%arg0: i32) -> (i32, i32, i32) {
    %c0_i32 = arith.constant 0 : i32
    %c0_i32_0 = arith.constant 0 : i32
    %c0_i32_1 = arith.constant 0 : i32
    return %arg0, %c0_i32, %c0_i32_0 : i32, i32, i32
  }
  func.func @transform_3(%arg0: i32) -> (i32, i32) {
    %c0_i32 = arith.constant 0 : i32
    %c0_i32_0 = arith.constant 0 : i32
    %c0_i32_1 = arith.constant 0 : i32
    return %c0_i32, %c0_i32_0 : i32, i32
  }
  func.func @transform_4(%arg0: i32) -> (i32, i32) {
    %c0_i32 = arith.constant 0 : i32
    %c0_i32_0 = arith.constant 0 : i32
    %c0_i32_1 = arith.constant 0 : i32
    return %c0_i32, %c0_i32_0 : i32, i32
  }
  func.func @transform_5(%arg0: i32) -> (i32, i32) {
    %c0_i32 = arith.constant 0 : i32
    %c0_i32_0 = arith.constant 0 : i32
    %c0_i32_1 = arith.constant 0 : i32
    return %c0_i32, %c0_i32_0 : i32, i32
  }
  func.func @transform_6(%arg0: i32) -> (i32, i32) {
    %c0_i32 = arith.constant 0 : i32
    %c0_i32_0 = arith.constant 0 : i32
    %c0_i32_1 = arith.constant 0 : i32
    return %c0_i32, %c0_i32_0 : i32, i32
  }
  func.func @transform_7(%arg0: i32) -> (i32, i32, i32) {
    %c0_i32 = arith.constant 0 : i32
    %c0_i32_0 = arith.constant 0 : i32
    %c0_i32_1 = arith.constant 0 : i32
    %c0_i32_2 = arith.constant 0 : i32
    return %c0_i32, %c0_i32_0, %c0_i32_1 : i32, i32, i32
  }
  func.func @transform_8(%arg0: i32) -> (i32, i32) {
    %c0_i32 = arith.constant 0 : i32
    %c0_i32_0 = arith.constant 0 : i32
    %c0_i32_1 = arith.constant 0 : i32
    return %c0_i32, %c0_i32_0 : i32, i32
  }
  func.func @transform_9(%arg0: i32) -> (i32, i32) {
    %c0_i32 = arith.constant 0 : i32
    %c0_i32_0 = arith.constant 0 : i32
    %c0_i32_1 = arith.constant 0 : i32
    return %c0_i32, %c0_i32_0 : i32, i32
  }
  func.func @transform_10(%arg0: i32) -> (i32, i32) {
    %c0_i32 = arith.constant 0 : i32
    %c0_i32_0 = arith.constant 0 : i32
    %c0_i32_1 = arith.constant 0 : i32
    return %c0_i32, %c0_i32_0 : i32, i32
  }
  func.func @transform_11(%arg0: i32) -> (i32, i32) {
    %c0_i32 = arith.constant 0 : i32
    %c0_i32_0 = arith.constant 0 : i32
    %c0_i32_1 = arith.constant 0 : i32
    return %c0_i32, %c0_i32_0 : i32, i32
  }
  func.func @transform_12(%arg0: i32) -> (i32, i32, i32) {
    %c0_i32 = arith.constant 0 : i32
    %c0_i32_0 = arith.constant 0 : i32
    %c0_i32_1 = arith.constant 0 : i32
    %c0_i32_2 = arith.constant 0 : i32
    return %c0_i32, %c0_i32_0, %c0_i32_1 : i32, i32, i32
  }
  func.func @transform_13(%arg0: i32) -> (i32, i32, i32) {
    %c0_i32 = arith.constant 0 : i32
    %c0_i32_0 = arith.constant 0 : i32
    %c0_i32_1 = arith.constant 0 : i32
    %c0_i32_2 = arith.constant 0 : i32
    return %c0_i32, %c0_i32_0, %c0_i32_1 : i32, i32, i32
  }
  func.func @transform_14(%arg0: i32) -> (i32, i32, i32) {
    %c0_i32 = arith.constant 0 : i32
    %c0_i32_0 = arith.constant 0 : i32
    %c0_i32_1 = arith.constant 0 : i32
    %c0_i32_2 = arith.constant 0 : i32
    return %c0_i32, %c0_i32_0, %c0_i32_1 : i32, i32, i32
  }
  func.func @transform_15(%arg0: i32) -> (i32, i32) {
    %c0_i32 = arith.constant 0 : i32
    %c0_i32_0 = arith.constant 0 : i32
    %c0_i32_1 = arith.constant 0 : i32
    return %c0_i32, %c0_i32_0 : i32, i32
  }
  func.func @transform_16(%arg0: i32) -> (i32, i32, i32) {
    %c0_i32 = arith.constant 0 : i32
    %c0_i32_0 = arith.constant 0 : i32
    %c0_i32_1 = arith.constant 0 : i32
    %c0_i32_2 = arith.constant 0 : i32
    return %c0_i32, %c0_i32_0, %c0_i32_1 : i32, i32, i32
  }
  func.func @transform_17(%arg0: i32) -> (i32, i32, i32) {
    %c0_i32 = arith.constant 0 : i32
    %c0_i32_0 = arith.constant 0 : i32
    %c0_i32_1 = arith.constant 0 : i32
    return %arg0, %c0_i32, %c0_i32_0 : i32, i32, i32
  }
}

module attributes {stable_mosaic.version = 11 : i64} {
  func.func @_transformer_block_kernel(%arg0: i32, %arg1: memref<2x8x8xf32, #tpu.memory_space<vmem>>, %arg2: memref<2x8x128xbf16, #tpu.memory_space<vmem>>, %arg3: memref<2x1x8xf32, #tpu.memory_space<vmem>>, %arg4: memref<8x128xbf16, #tpu.memory_space<vmem>>, %arg5: memref<1x128xf32, #tpu.memory_space<vmem>>, %arg6: memref<128x128xbf16, #tpu.memory_space<vmem>>, %arg7: memref<1x128xf32, #tpu.memory_space<vmem>>, %arg8: memref<2x2x128xf32, #tpu.memory_space<vmem>>, %arg9: memref<128x384xbf16, #tpu.memory_space<vmem>>, %arg10: memref<1x384xf32, #tpu.memory_space<vmem>>, %arg11: memref<128x128xbf16, #tpu.memory_space<vmem>>, %arg12: memref<1x128xf32, #tpu.memory_space<vmem>>, %arg13: memref<2x128x256xbf16, #tpu.memory_space<vmem>>, %arg14: memref<2x1x256xf32, #tpu.memory_space<vmem>>, %arg15: memref<2x256x128xbf16, #tpu.memory_space<vmem>>, %arg16: memref<1x128xf32, #tpu.memory_space<vmem>>, %arg17: memref<2x1x128xf32, #tpu.memory_space<vmem>>, %arg18: memref<2x8x128xbf16, #tpu.memory_space<vmem>>) attributes {dimension_semantics = [#tpu.dimension_semantics<parallel>], iteration_bounds = array<i64: 2>, scalar_prefetch = 0 : i64, scratch_operands = 0 : i64, tpu.core_type = #tpu.core_type<tc>, window_params = [{transform_indices = @transform_0, window_bounds = array<i64: 2, 8, 8>}, {transform_indices = @transform_1, window_bounds = array<i64: 2, 8, 128>}, {transform_indices = @transform_2, window_bounds = array<i64: 2, 1, 8>}, {pipeline_mode = #tpu.pipeline_mode<synchronous>, transform_indices = @transform_3, window_bounds = array<i64: 8, 128>}, {pipeline_mode = #tpu.pipeline_mode<synchronous>, transform_indices = @transform_4, window_bounds = array<i64: 1, 128>}, {pipeline_mode = #tpu.pipeline_mode<synchronous>, transform_indices = @transform_5, window_bounds = array<i64: 128, 128>}, {pipeline_mode = #tpu.pipeline_mode<synchronous>, transform_indices = @transform_6, window_bounds = array<i64: 1, 128>}, {pipeline_mode = #tpu.pipeline_mode<synchronous>, transform_indices = @transform_7, window_bounds = array<i64: 2, 2, 128>}, {pipeline_mode = #tpu.pipeline_mode<synchronous>, transform_indices = @transform_8, window_bounds = array<i64: 128, 384>}, {pipeline_mode = #tpu.pipeline_mode<synchronous>, transform_indices = @transform_9, window_bounds = array<i64: 1, 384>}, {pipeline_mode = #tpu.pipeline_mode<synchronous>, transform_indices = @transform_10, window_bounds = array<i64: 128, 128>}, {pipeline_mode = #tpu.pipeline_mode<synchronous>, transform_indices = @transform_11, window_bounds = array<i64: 1, 128>}, {pipeline_mode = #tpu.pipeline_mode<synchronous>, transform_indices = @transform_12, window_bounds = array<i64: 2, 128, 256>}, {pipeline_mode = #tpu.pipeline_mode<synchronous>, transform_indices = @transform_13, window_bounds = array<i64: 2, 1, 256>}, {pipeline_mode = #tpu.pipeline_mode<synchronous>, transform_indices = @transform_14, window_bounds = array<i64: 2, 256, 128>}, {pipeline_mode = #tpu.pipeline_mode<synchronous>, transform_indices = @transform_15, window_bounds = array<i64: 1, 128>}, {pipeline_mode = #tpu.pipeline_mode<synchronous>, transform_indices = @transform_16, window_bounds = array<i64: 2, 1, 128>}, {transform_indices = @transform_17, window_bounds = array<i64: 2, 8, 128>}]} {
    %c0 = arith.constant 0 : index
    %c0_0 = arith.constant 0 : index
    %c0_1 = arith.constant 0 : index
    %0 = vector.load %arg2[%c0, %c0_0, %c0_1] : memref<2x8x128xbf16, #tpu.memory_space<vmem>>, vector<2x8x128xbf16>
    %1 = arith.extf %0 : vector<2x8x128xbf16> to vector<2x8x128xf32>
    %2 = vector.shape_cast %1 : vector<2x8x128xf32> to vector<16x128xf32>
    %c0_2 = arith.constant 0 : index
    %c0_3 = arith.constant 0 : index
    %c0_4 = arith.constant 0 : index
    %3 = vector.load %arg1[%c0_2, %c0_3, %c0_4] : memref<2x8x8xf32, #tpu.memory_space<vmem>>, vector<2x8x8xf32>
    %4 = vector.shape_cast %3 : vector<2x8x8xf32> to vector<16x8xf32>
    %c0_5 = arith.constant 0 : index
    %c0_6 = arith.constant 0 : index
    %c0_7 = arith.constant 0 : index
    %5 = vector.load %arg3[%c0_5, %c0_6, %c0_7] : memref<2x1x8xf32, #tpu.memory_space<vmem>>, vector<2x1x8xf32>
    %c0_8 = arith.constant 0 : index
    %c0_9 = arith.constant 0 : index
    %c0_10 = arith.constant 0 : index
    %6 = vector.load %arg8[%c0_8, %c0_9, %c0_10] : memref<2x2x128xf32, #tpu.memory_space<vmem>>, vector<2x2x128xf32>
    %c0_11 = arith.constant 0 : index
    %c0_12 = arith.constant 0 : index
    %c0_13 = arith.constant 0 : index
    %7 = vector.load %arg17[%c0_11, %c0_12, %c0_13] : memref<2x1x128xf32, #tpu.memory_space<vmem>>, vector<2x1x128xf32>
    %8 = arith.truncf %4 : vector<16x8xf32> to vector<16x8xbf16>
    %c0_14 = arith.constant 0 : index
    %c0_15 = arith.constant 0 : index
    %9 = vector.load %arg4[%c0_14, %c0_15] : memref<8x128xbf16, #tpu.memory_space<vmem>>, vector<8x128xbf16>
    %cst = arith.constant dense<0.000000e+00> : vector<16x128xf32>
    %10 = tpu.matmul %8, %9, %cst {dimension_numbers = #tpu.dot_dimension_numbers<[1], [0], [0], [1], [0, 0, 1, 1], [], []>} : vector<16x8xbf16>, vector<8x128xbf16>, vector<16x128xf32> -> vector<16x128xf32>
    %c0_16 = arith.constant 0 : index
    %c0_17 = arith.constant 0 : index
    %11 = vector.load %arg5[%c0_16, %c0_17] : memref<1x128xf32, #tpu.memory_space<vmem>>, vector<1x128xf32>
    %12 = vector.broadcast %11 : vector<1x128xf32> to vector<16x128xf32>
    %13 = arith.addf %10, %12 : vector<16x128xf32>
    %14 = arith.mulf %13, %13 : vector<16x128xf32>
    %15 = arith.mulf %13, %14 : vector<16x128xf32>
    %cst_18 = arith.constant 4.471500e-02 : f32
    %16 = vector.broadcast %cst_18 : f32 to vector<16x128xf32>
    %17 = arith.mulf %16, %15 : vector<16x128xf32>
    %18 = arith.addf %13, %17 : vector<16x128xf32>
    %cst_19 = arith.constant 0.797884583 : f32
    %19 = vector.broadcast %cst_19 : f32 to vector<16x128xf32>
    %20 = arith.mulf %19, %18 : vector<16x128xf32>
    %21 = math.tanh %20 : vector<16x128xf32>
    %cst_20 = arith.constant 1.000000e+00 : f32
    %22 = vector.broadcast %cst_20 : f32 to vector<16x128xf32>
    %23 = arith.addf %22, %21 : vector<16x128xf32>
    %cst_21 = arith.constant 5.000000e-01 : f32
    %24 = vector.broadcast %cst_21 : f32 to vector<16x128xf32>
    %25 = arith.mulf %24, %23 : vector<16x128xf32>
    %26 = arith.mulf %13, %25 : vector<16x128xf32>
    %27 = arith.truncf %26 : vector<16x128xf32> to vector<16x128xbf16>
    %c0_22 = arith.constant 0 : index
    %c0_23 = arith.constant 0 : index
    %28 = vector.load %arg6[%c0_22, %c0_23] : memref<128x128xbf16, #tpu.memory_space<vmem>>, vector<128x128xbf16>
    %cst_24 = arith.constant dense<0.000000e+00> : vector<16x128xf32>
    %29 = tpu.matmul %27, %28, %cst_24 {dimension_numbers = #tpu.dot_dimension_numbers<[1], [0], [0], [1], [0, 0, 1, 1], [], []>} : vector<16x128xbf16>, vector<128x128xbf16>, vector<16x128xf32> -> vector<16x128xf32>
    %c0_25 = arith.constant 0 : index
    %c0_26 = arith.constant 0 : index
    %30 = vector.load %arg7[%c0_25, %c0_26] : memref<1x128xf32, #tpu.memory_space<vmem>>, vector<1x128xf32>
    %31 = vector.broadcast %30 : vector<1x128xf32> to vector<16x128xf32>
    %32 = arith.addf %29, %31 : vector<16x128xf32>
    %33 = arith.addf %2, %32 : vector<16x128xf32>
    %34 = vector.extract_strided_slice %6 {offsets = [0, 0, 0], sizes = [1, 1, 128], strides = [1, 1, 1]} : vector<2x2x128xf32> to vector<1x1x128xf32>
    %35 = vector.shape_cast %34 : vector<1x1x128xf32> to vector<128xf32>
    %36 = vector.extract_strided_slice %6 {offsets = [0, 1, 0], sizes = [1, 1, 128], strides = [1, 1, 1]} : vector<2x2x128xf32> to vector<1x1x128xf32>
    %37 = vector.shape_cast %36 : vector<1x1x128xf32> to vector<128xf32>
    %cst_27 = arith.constant dense<0.000000e+00> : vector<16xf32>
    %38 = vector.multi_reduction <add>, %33, %cst_27 [1] : vector<16x128xf32> to vector<16xf32>
    %39 = vector.shape_cast %38 : vector<16xf32> to vector<16x1xf32>
    %cst_28 = arith.constant 1.280000e+02 : f32
    %40 = vector.broadcast %cst_28 : f32 to vector<16x1xf32>
    %41 = arith.divf %39, %40 : vector<16x1xf32>
    %42 = vector.broadcast %41 : vector<16x1xf32> to vector<16x128xf32>
    %43 = arith.subf %33, %42 : vector<16x128xf32>
    %44 = arith.mulf %43, %43 : vector<16x128xf32>
    %cst_29 = arith.constant dense<0.000000e+00> : vector<16xf32>
    %45 = vector.multi_reduction <add>, %44, %cst_29 [1] : vector<16x128xf32> to vector<16xf32>
    %46 = vector.shape_cast %45 : vector<16xf32> to vector<16x1xf32>
    %cst_30 = arith.constant 1.280000e+02 : f32
    %47 = vector.broadcast %cst_30 : f32 to vector<16x1xf32>
    %48 = arith.divf %46, %47 : vector<16x1xf32>
    %49 = vector.broadcast %41 : vector<16x1xf32> to vector<16x128xf32>
    %50 = arith.subf %33, %49 : vector<16x128xf32>
    %cst_31 = arith.constant 9.99999974E-6 : f32
    %51 = vector.broadcast %cst_31 : f32 to vector<16x1xf32>
    %52 = arith.addf %48, %51 : vector<16x1xf32>
    %53 = math.rsqrt %52 : vector<16x1xf32>
    %54 = vector.broadcast %53 : vector<16x1xf32> to vector<16x128xf32>
    %55 = arith.mulf %50, %54 : vector<16x128xf32>
    %56 = vector.shape_cast %35 : vector<128xf32> to vector<1x128xf32>
    %57 = vector.broadcast %56 : vector<1x128xf32> to vector<16x128xf32>
    %58 = arith.mulf %55, %57 : vector<16x128xf32>
    %59 = vector.shape_cast %37 : vector<128xf32> to vector<1x128xf32>
    %60 = vector.broadcast %59 : vector<1x128xf32> to vector<16x128xf32>
    %61 = arith.addf %58, %60 : vector<16x128xf32>
    %62 = arith.truncf %61 : vector<16x128xf32> to vector<16x128xbf16>
    %c0_32 = arith.constant 0 : index
    %c0_33 = arith.constant 0 : index
    %63 = vector.load %arg9[%c0_32, %c0_33] : memref<128x384xbf16, #tpu.memory_space<vmem>>, vector<128x384xbf16>
    %cst_34 = arith.constant dense<0.000000e+00> : vector<16x384xf32>
    %64 = tpu.matmul %62, %63, %cst_34 {dimension_numbers = #tpu.dot_dimension_numbers<[1], [0], [0], [1], [0, 0, 1, 1], [], []>} : vector<16x128xbf16>, vector<128x384xbf16>, vector<16x384xf32> -> vector<16x384xf32>
    %c0_35 = arith.constant 0 : index
    %c0_36 = arith.constant 0 : index
    %65 = vector.load %arg10[%c0_35, %c0_36] : memref<1x384xf32, #tpu.memory_space<vmem>>, vector<1x384xf32>
    %66 = vector.broadcast %65 : vector<1x384xf32> to vector<16x384xf32>
    %67 = arith.addf %64, %66 : vector<16x384xf32>
    %68 = vector.extract_strided_slice %67 {offsets = [0, 0], sizes = [16, 128], strides = [1, 1]} : vector<16x384xf32> to vector<16x128xf32>
    %69 = vector.shape_cast %68 : vector<16x128xf32> to vector<2x8x128xf32>
    %70 = arith.truncf %69 : vector<2x8x128xf32> to vector<2x8x128xbf16>
    %71 = vector.extract_strided_slice %67 {offsets = [0, 128], sizes = [16, 128], strides = [1, 1]} : vector<16x384xf32> to vector<16x128xf32>
    %72 = vector.shape_cast %71 : vector<16x128xf32> to vector<2x8x128xf32>
    %73 = arith.truncf %72 : vector<2x8x128xf32> to vector<2x8x128xbf16>
    %74 = vector.extract_strided_slice %67 {offsets = [0, 256], sizes = [16, 128], strides = [1, 1]} : vector<16x384xf32> to vector<16x128xf32>
    %75 = vector.shape_cast %74 : vector<16x128xf32> to vector<2x8x128xf32>
    %76 = arith.truncf %75 : vector<2x8x128xf32> to vector<2x8x128xbf16>
    "tpu.trace_start"() <{level = 10 : i32, message = "bnd,bmd->bnm"}> : () -> ()
    %cst_37 = arith.constant dense<0.000000e+00> : vector<2x8x8xf32>
    %77 = tpu.matmul %70, %73, %cst_37 {dimension_numbers = #tpu.dot_dimension_numbers<[2], [2], [1], [1], [0, 0, 0, 1, 1, 1], [0], [0]>} : vector<2x8x128xbf16>, vector<2x8x128xbf16>, vector<2x8x8xf32> -> vector<2x8x8xf32>
    "tpu.trace_stop"() : () -> ()
    %cst_38 = arith.constant 0.0883883461 : f32
    %78 = vector.broadcast %cst_38 : f32 to vector<2x8x8xf32>
    %79 = arith.mulf %77, %78 : vector<2x8x8xf32>
    %cst_39 = arith.constant 5.000000e-01 : f32
    %80 = vector.broadcast %cst_39 : f32 to vector<2x1x8xf32>
    %81 = arith.cmpf ogt, %5, %80 : vector<2x1x8xf32>
    %cst_40 = arith.constant -1.000000e+30 : f32
    %82 = vector.shape_cast %81 : vector<2x1x8xi1> to vector<2x1x8xi1>
    %83 = vector.broadcast %82 : vector<2x1x8xi1> to vector<2x8x8xi1>
    %84 = vector.broadcast %cst_40 : f32 to vector<2x8x8xf32>
    %85 = arith.select %83, %84, %79 : vector<2x8x8xi1>, vector<2x8x8xf32>
    %cst_41 = arith.constant dense<0xFF800000> : vector<2x8xf32>
    %86 = vector.multi_reduction <maximumf>, %85, %cst_41 [2] : vector<2x8x8xf32> to vector<2x8xf32>
    %87 = vector.shape_cast %86 : vector<2x8xf32> to vector<2x8x1xf32>
    %88 = vector.broadcast %87 : vector<2x8x1xf32> to vector<2x8x8xf32>
    %89 = arith.subf %85, %88 : vector<2x8x8xf32>
    %90 = math.exp %89 : vector<2x8x8xf32>
    %cst_42 = arith.constant dense<0.000000e+00> : vector<2x8xf32>
    %91 = vector.multi_reduction <add>, %90, %cst_42 [2] : vector<2x8x8xf32> to vector<2x8xf32>
    %92 = vector.shape_cast %91 : vector<2x8xf32> to vector<2x8x1xf32>
    %93 = tpu.reciprocal %92 {approx = true} : vector<2x8x1xf32> -> vector<2x8x1xf32>
    %94 = vector.broadcast %93 : vector<2x8x1xf32> to vector<2x8x8xf32>
    %95 = arith.mulf %90, %94 : vector<2x8x8xf32>
    %96 = arith.truncf %95 : vector<2x8x8xf32> to vector<2x8x8xbf16>
    "tpu.trace_start"() <{level = 10 : i32, message = "bnm,bmd->bnd"}> : () -> ()
    %cst_43 = arith.constant dense<0.000000e+00> : vector<2x8x128xf32>
    %97 = tpu.matmul %96, %76, %cst_43 {dimension_numbers = #tpu.dot_dimension_numbers<[2], [1], [1], [2], [0, 0, 0, 1, 1, 2], [0], [0]>} : vector<2x8x8xbf16>, vector<2x8x128xbf16>, vector<2x8x128xf32> -> vector<2x8x128xf32>
    "tpu.trace_stop"() : () -> ()
    %98 = vector.shape_cast %97 : vector<2x8x128xf32> to vector<16x128xf32>
    %99 = arith.truncf %98 : vector<16x128xf32> to vector<16x128xbf16>
    %c0_44 = arith.constant 0 : index
    %c0_45 = arith.constant 0 : index
    %100 = vector.load %arg11[%c0_44, %c0_45] : memref<128x128xbf16, #tpu.memory_space<vmem>>, vector<128x128xbf16>
    %cst_46 = arith.constant dense<0.000000e+00> : vector<16x128xf32>
    %101 = tpu.matmul %99, %100, %cst_46 {dimension_numbers = #tpu.dot_dimension_numbers<[1], [0], [0], [1], [0, 0, 1, 1], [], []>} : vector<16x128xbf16>, vector<128x128xbf16>, vector<16x128xf32> -> vector<16x128xf32>
    %c0_47 = arith.constant 0 : index
    %c0_48 = arith.constant 0 : index
    %102 = vector.load %arg12[%c0_47, %c0_48] : memref<1x128xf32, #tpu.memory_space<vmem>>, vector<1x128xf32>
    %103 = vector.broadcast %102 : vector<1x128xf32> to vector<16x128xf32>
    %104 = arith.addf %101, %103 : vector<16x128xf32>
    %105 = arith.addf %33, %104 : vector<16x128xf32>
    %106 = vector.extract_strided_slice %6 {offsets = [1, 0, 0], sizes = [1, 1, 128], strides = [1, 1, 1]} : vector<2x2x128xf32> to vector<1x1x128xf32>
    %107 = vector.shape_cast %106 : vector<1x1x128xf32> to vector<128xf32>
    %108 = vector.extract_strided_slice %6 {offsets = [1, 1, 0], sizes = [1, 1, 128], strides = [1, 1, 1]} : vector<2x2x128xf32> to vector<1x1x128xf32>
    %109 = vector.shape_cast %108 : vector<1x1x128xf32> to vector<128xf32>
    %cst_49 = arith.constant dense<0.000000e+00> : vector<16xf32>
    %110 = vector.multi_reduction <add>, %105, %cst_49 [1] : vector<16x128xf32> to vector<16xf32>
    %111 = vector.shape_cast %110 : vector<16xf32> to vector<16x1xf32>
    %cst_50 = arith.constant 1.280000e+02 : f32
    %112 = vector.broadcast %cst_50 : f32 to vector<16x1xf32>
    %113 = arith.divf %111, %112 : vector<16x1xf32>
    %114 = vector.broadcast %113 : vector<16x1xf32> to vector<16x128xf32>
    %115 = arith.subf %105, %114 : vector<16x128xf32>
    %116 = arith.mulf %115, %115 : vector<16x128xf32>
    %cst_51 = arith.constant dense<0.000000e+00> : vector<16xf32>
    %117 = vector.multi_reduction <add>, %116, %cst_51 [1] : vector<16x128xf32> to vector<16xf32>
    %118 = vector.shape_cast %117 : vector<16xf32> to vector<16x1xf32>
    %cst_52 = arith.constant 1.280000e+02 : f32
    %119 = vector.broadcast %cst_52 : f32 to vector<16x1xf32>
    %120 = arith.divf %118, %119 : vector<16x1xf32>
    %121 = vector.broadcast %113 : vector<16x1xf32> to vector<16x128xf32>
    %122 = arith.subf %105, %121 : vector<16x128xf32>
    %cst_53 = arith.constant 9.99999974E-6 : f32
    %123 = vector.broadcast %cst_53 : f32 to vector<16x1xf32>
    %124 = arith.addf %120, %123 : vector<16x1xf32>
    %125 = math.rsqrt %124 : vector<16x1xf32>
    %126 = vector.broadcast %125 : vector<16x1xf32> to vector<16x128xf32>
    %127 = arith.mulf %122, %126 : vector<16x128xf32>
    %128 = vector.shape_cast %107 : vector<128xf32> to vector<1x128xf32>
    %129 = vector.broadcast %128 : vector<1x128xf32> to vector<16x128xf32>
    %130 = arith.mulf %127, %129 : vector<16x128xf32>
    %131 = vector.shape_cast %109 : vector<128xf32> to vector<1x128xf32>
    %132 = vector.broadcast %131 : vector<1x128xf32> to vector<16x128xf32>
    %133 = arith.addf %130, %132 : vector<16x128xf32>
    %134 = arith.truncf %133 : vector<16x128xf32> to vector<16x128xbf16>
    %cst_54 = arith.constant 0.000000e+00 : f32
    %135 = vector.broadcast %cst_54 : f32 to vector<16x128xf32>
    %c0_55 = arith.constant 0 : index
    %c0_56 = arith.constant 0 : index
    %136 = vector.load %arg16[%c0_55, %c0_56] : memref<1x128xf32, #tpu.memory_space<vmem>>, vector<1x128xf32>
    %137 = vector.broadcast %136 : vector<1x128xf32> to vector<16x128xf32>
    %138 = arith.addf %135, %137 : vector<16x128xf32>
    %c0_i32 = arith.constant 0 : i32
    %c2_i32 = arith.constant 2 : i32
    %139 = arith.addi %c0_i32, %c2_i32 : i32
    %c1_i32 = arith.constant 1 : i32
    %140 = scf.for %arg19 = %c0_i32 to %139 step %c1_i32 iter_args(%arg20 = %138) -> (vector<16x128xf32>)  : i32 {
      %171 = arith.index_cast %arg19 : i32 to index
      %c0_66 = arith.constant 0 : index
      %c0_67 = arith.constant 0 : index
      %172 = vector.load %arg13[%171, %c0_66, %c0_67] : memref<2x128x256xbf16, #tpu.memory_space<vmem>>, vector<1x128x256xbf16>
      %173 = vector.shape_cast %172 : vector<1x128x256xbf16> to vector<128x256xbf16>
      %cst_68 = arith.constant dense<0.000000e+00> : vector<16x256xf32>
      %174 = tpu.matmul %134, %173, %cst_68 {dimension_numbers = #tpu.dot_dimension_numbers<[1], [0], [0], [1], [0, 0, 1, 1], [], []>} : vector<16x128xbf16>, vector<128x256xbf16>, vector<16x256xf32> -> vector<16x256xf32>
      %175 = arith.index_cast %arg19 : i32 to index
      %c0_69 = arith.constant 0 : index
      %c0_70 = arith.constant 0 : index
      %176 = vector.load %arg14[%175, %c0_69, %c0_70] : memref<2x1x256xf32, #tpu.memory_space<vmem>>, vector<1x1x256xf32>
      %177 = vector.shape_cast %176 : vector<1x1x256xf32> to vector<1x256xf32>
      %178 = vector.broadcast %177 : vector<1x256xf32> to vector<16x256xf32>
      %179 = arith.addf %174, %178 : vector<16x256xf32>
      %180 = arith.mulf %179, %179 : vector<16x256xf32>
      %181 = arith.mulf %179, %180 : vector<16x256xf32>
      %cst_71 = arith.constant 4.471500e-02 : f32
      %182 = vector.broadcast %cst_71 : f32 to vector<16x256xf32>
      %183 = arith.mulf %182, %181 : vector<16x256xf32>
      %184 = arith.addf %179, %183 : vector<16x256xf32>
      %cst_72 = arith.constant 0.797884583 : f32
      %185 = vector.broadcast %cst_72 : f32 to vector<16x256xf32>
      %186 = arith.mulf %185, %184 : vector<16x256xf32>
      %187 = math.tanh %186 : vector<16x256xf32>
      %cst_73 = arith.constant 1.000000e+00 : f32
      %188 = vector.broadcast %cst_73 : f32 to vector<16x256xf32>
      %189 = arith.addf %188, %187 : vector<16x256xf32>
      %cst_74 = arith.constant 5.000000e-01 : f32
      %190 = vector.broadcast %cst_74 : f32 to vector<16x256xf32>
      %191 = arith.mulf %190, %189 : vector<16x256xf32>
      %192 = arith.mulf %179, %191 : vector<16x256xf32>
      %193 = arith.truncf %192 : vector<16x256xf32> to vector<16x256xbf16>
      %194 = arith.index_cast %arg19 : i32 to index
      %c0_75 = arith.constant 0 : index
      %c0_76 = arith.constant 0 : index
      %195 = vector.load %arg15[%194, %c0_75, %c0_76] : memref<2x256x128xbf16, #tpu.memory_space<vmem>>, vector<1x256x128xbf16>
      %196 = vector.shape_cast %195 : vector<1x256x128xbf16> to vector<256x128xbf16>
      %cst_77 = arith.constant dense<0.000000e+00> : vector<16x128xf32>
      %197 = tpu.matmul %193, %196, %cst_77 {dimension_numbers = #tpu.dot_dimension_numbers<[1], [0], [0], [1], [0, 0, 1, 1], [], []>} : vector<16x256xbf16>, vector<256x128xbf16>, vector<16x128xf32> -> vector<16x128xf32>
      %198 = arith.addf %arg20, %197 : vector<16x128xf32>
      scf.yield %198 : vector<16x128xf32>
    }
    %c2_i32_57 = arith.constant 2 : i32
    %141 = arith.addf %105, %140 : vector<16x128xf32>
    %142 = vector.extract_strided_slice %7 {offsets = [0, 0, 0], sizes = [1, 1, 128], strides = [1, 1, 1]} : vector<2x1x128xf32> to vector<1x1x128xf32>
    %143 = vector.shape_cast %142 : vector<1x1x128xf32> to vector<1x128xf32>
    %144 = vector.extract_strided_slice %7 {offsets = [1, 0, 0], sizes = [1, 1, 128], strides = [1, 1, 1]} : vector<2x1x128xf32> to vector<1x1x128xf32>
    %145 = vector.shape_cast %144 : vector<1x1x128xf32> to vector<1x128xf32>
    %cst_58 = arith.constant dense<0.000000e+00> : vector<16xf32>
    %146 = vector.multi_reduction <add>, %141, %cst_58 [1] : vector<16x128xf32> to vector<16xf32>
    %147 = vector.shape_cast %146 : vector<16xf32> to vector<16x1xf32>
    %cst_59 = arith.constant 1.280000e+02 : f32
    %148 = vector.broadcast %cst_59 : f32 to vector<16x1xf32>
    %149 = arith.divf %147, %148 : vector<16x1xf32>
    %150 = vector.broadcast %149 : vector<16x1xf32> to vector<16x128xf32>
    %151 = arith.subf %141, %150 : vector<16x128xf32>
    %152 = arith.mulf %151, %151 : vector<16x128xf32>
    %cst_60 = arith.constant dense<0.000000e+00> : vector<16xf32>
    %153 = vector.multi_reduction <add>, %152, %cst_60 [1] : vector<16x128xf32> to vector<16xf32>
    %154 = vector.shape_cast %153 : vector<16xf32> to vector<16x1xf32>
    %cst_61 = arith.constant 1.280000e+02 : f32
    %155 = vector.broadcast %cst_61 : f32 to vector<16x1xf32>
    %156 = arith.divf %154, %155 : vector<16x1xf32>
    %157 = vector.broadcast %149 : vector<16x1xf32> to vector<16x128xf32>
    %158 = arith.subf %141, %157 : vector<16x128xf32>
    %cst_62 = arith.constant 9.99999974E-6 : f32
    %159 = vector.broadcast %cst_62 : f32 to vector<16x1xf32>
    %160 = arith.addf %156, %159 : vector<16x1xf32>
    %161 = math.rsqrt %160 : vector<16x1xf32>
    %162 = vector.broadcast %161 : vector<16x1xf32> to vector<16x128xf32>
    %163 = arith.mulf %158, %162 : vector<16x128xf32>
    %164 = vector.broadcast %143 : vector<1x128xf32> to vector<16x128xf32>
    %165 = arith.mulf %163, %164 : vector<16x128xf32>
    %166 = vector.broadcast %145 : vector<1x128xf32> to vector<16x128xf32>
    %167 = arith.addf %165, %166 : vector<16x128xf32>
    %168 = vector.shape_cast %167 : vector<16x128xf32> to vector<2x8x128xf32>
    %169 = arith.truncf %168 : vector<2x8x128xf32> to vector<2x8x128xbf16>
    %c0_63 = arith.constant 0 : index
    %c0_64 = arith.constant 0 : index
    %c0_65 = arith.constant 0 : index
    %170 = vector.load %arg18[%c0_63, %c0_64, %c0_65] : memref<2x8x128xbf16, #tpu.memory_space<vmem>>, vector<2x8x128xbf16>
    tpu.vector_store %arg18[%c0_63, %c0_64, %c0_65], %169 {strides = array<i32>} : memref<2x8x128xbf16, #tpu.memory_space<vmem>>, vector<2x8x128xbf16>,
    return
  }
  func.func @transform_0(%arg0: i32) -> (i32, i32, i32) {
    %c0_i32 = arith.constant 0 : i32
    %c0_i32_0 = arith.constant 0 : i32
    %c0_i32_1 = arith.constant 0 : i32
    return %arg0, %c0_i32, %c0_i32_0 : i32, i32, i32
  }
  func.func @transform_1(%arg0: i32) -> (i32, i32, i32) {
    %c0_i32 = arith.constant 0 : i32
    %c0_i32_0 = arith.constant 0 : i32
    %c0_i32_1 = arith.constant 0 : i32
    return %arg0, %c0_i32, %c0_i32_0 : i32, i32, i32
  }
  func.func @transform_2(%arg0: i32) -> (i32, i32, i32) {
    %c0_i32 = arith.constant 0 : i32
    %c0_i32_0 = arith.constant 0 : i32
    %c0_i32_1 = arith.constant 0 : i32
    return %arg0, %c0_i32, %c0_i32_0 : i32, i32, i32
  }
  func.func @transform_3(%arg0: i32) -> (i32, i32) {
    %c0_i32 = arith.constant 0 : i32
    %c0_i32_0 = arith.constant 0 : i32
    %c0_i32_1 = arith.constant 0 : i32
    return %c0_i32, %c0_i32_0 : i32, i32
  }
  func.func @transform_4(%arg0: i32) -> (i32, i32) {
    %c0_i32 = arith.constant 0 : i32
    %c0_i32_0 = arith.constant 0 : i32
    %c0_i32_1 = arith.constant 0 : i32
    return %c0_i32, %c0_i32_0 : i32, i32
  }
  func.func @transform_5(%arg0: i32) -> (i32, i32) {
    %c0_i32 = arith.constant 0 : i32
    %c0_i32_0 = arith.constant 0 : i32
    %c0_i32_1 = arith.constant 0 : i32
    return %c0_i32, %c0_i32_0 : i32, i32
  }
  func.func @transform_6(%arg0: i32) -> (i32, i32) {
    %c0_i32 = arith.constant 0 : i32
    %c0_i32_0 = arith.constant 0 : i32
    %c0_i32_1 = arith.constant 0 : i32
    return %c0_i32, %c0_i32_0 : i32, i32
  }
  func.func @transform_7(%arg0: i32) -> (i32, i32, i32) {
    %c0_i32 = arith.constant 0 : i32
    %c0_i32_0 = arith.constant 0 : i32
    %c0_i32_1 = arith.constant 0 : i32
    %c0_i32_2 = arith.constant 0 : i32
    return %c0_i32, %c0_i32_0, %c0_i32_1 : i32, i32, i32
  }
  func.func @transform_8(%arg0: i32) -> (i32, i32) {
    %c0_i32 = arith.constant 0 : i32
    %c0_i32_0 = arith.constant 0 : i32
    %c0_i32_1 = arith.constant 0 : i32
    return %c0_i32, %c0_i32_0 : i32, i32
  }
  func.func @transform_9(%arg0: i32) -> (i32, i32) {
    %c0_i32 = arith.constant 0 : i32
    %c0_i32_0 = arith.constant 0 : i32
    %c0_i32_1 = arith.constant 0 : i32
    return %c0_i32, %c0_i32_0 : i32, i32
  }
  func.func @transform_10(%arg0: i32) -> (i32, i32) {
    %c0_i32 = arith.constant 0 : i32
    %c0_i32_0 = arith.constant 0 : i32
    %c0_i32_1 = arith.constant 0 : i32
    return %c0_i32, %c0_i32_0 : i32, i32
  }
  func.func @transform_11(%arg0: i32) -> (i32, i32) {
    %c0_i32 = arith.constant 0 : i32
    %c0_i32_0 = arith.constant 0 : i32
    %c0_i32_1 = arith.constant 0 : i32
    return %c0_i32, %c0_i32_0 : i32, i32
  }
  func.func @transform_12(%arg0: i32) -> (i32, i32, i32) {
    %c0_i32 = arith.constant 0 : i32
    %c0_i32_0 = arith.constant 0 : i32
    %c0_i32_1 = arith.constant 0 : i32
    %c0_i32_2 = arith.constant 0 : i32
    return %c0_i32, %c0_i32_0, %c0_i32_1 : i32, i32, i32
  }
  func.func @transform_13(%arg0: i32) -> (i32, i32, i32) {
    %c0_i32 = arith.constant 0 : i32
    %c0_i32_0 = arith.constant 0 : i32
    %c0_i32_1 = arith.constant 0 : i32
    %c0_i32_2 = arith.constant 0 : i32
    return %c0_i32, %c0_i32_0, %c0_i32_1 : i32, i32, i32
  }
  func.func @transform_14(%arg0: i32) -> (i32, i32, i32) {
    %c0_i32 = arith.constant 0 : i32
    %c0_i32_0 = arith.constant 0 : i32
    %c0_i32_1 = arith.constant 0 : i32
    %c0_i32_2 = arith.constant 0 : i32
    return %c0_i32, %c0_i32_0, %c0_i32_1 : i32, i32, i32
  }
  func.func @transform_15(%arg0: i32) -> (i32, i32) {
    %c0_i32 = arith.constant 0 : i32
    %c0_i32_0 = arith.constant 0 : i32
    %c0_i32_1 = arith.constant 0 : i32
    return %c0_i32, %c0_i32_0 : i32, i32
  }
  func.func @transform_16(%arg0: i32) -> (i32, i32, i32) {
    %c0_i32 = arith.constant 0 : i32
    %c0_i32_0 = arith.constant 0 : i32
    %c0_i32_1 = arith.constant 0 : i32
    %c0_i32_2 = arith.constant 0 : i32
    return %c0_i32, %c0_i32_0, %c0_i32_1 : i32, i32, i32
  }
  func.func @transform_17(%arg0: i32) -> (i32, i32, i32) {
    %c0_i32 = arith.constant 0 : i32
    %c0_i32_0 = arith.constant 0 : i32
    %c0_i32_1 = arith.constant 0 : i32
    return %arg0, %c0_i32, %c0_i32_0 : i32, i32, i32
  }
}

</mosaic_0001>

<bundles_post_ra>
// kernel: aux_mae_forward.5
= control target key start
LH: loop header
LB: loop body
LE: loop exit
PB: predicated region body
PF: predicated region fallthrough
CT: control target
= control target key end

     0   :  { %v212_v0 = vmov 0.0   ;;  %vm213_vm0 = vmmov 0   ;;  %v214_v2 = vmov 0   ;;  %s282_s2 = inlined_call_operand.vmem [shape: bf16[128,128], index: 2, kind: input, shape index: {}]   ;;  %s283_s1 = inlined_call_operand.vmem [shape: f32[16,1], index: 1, kind: input, shape index: {}]   ;;  %s284_s0 = inlined_call_operand.vmem [shape: bf16[16,128], index: 0, kind: input, shape index: {}]   ;;  %s285_s3 = inlined_call_operand.vmem [shape: f32[1,128], index: 3, kind: input, shape index: {}]   ;;  %s286_s4 = inlined_call_operand.vmem [shape: f32[16,128], index: 4, kind: output, shape index: {}]  }
   0x1   :  { %179 = vmatprep.subr.bf16.mxu0 %v212_v0  ;;  %v203_v1 = vld [vmem:[%s282_s2] sm:$0xff]   ;;  %195 = vmatprep.mubr.msk.bf16.mxu0 %vm213_vm0, %v212_v0  ;;  %v204_v3 = vld [vmem:[%s282_s2 + $0x8] sm:$0xff]   ;;  %v205_v4 = vld [vmem:[%s282_s2 + $0x10] sm:$0xff]  }
   0x2   :  { %202 = vset.pattern.permute.xlu0 %v214_v2  ;;  %180 = vmatpush3.bf16.msra.mxu0 %v203_v1  ;;  %v138_v5 = vld [vmem:[%s283_s1] sm:$0xff]  ;;  %v139_v6 = vld [vmem:[%s283_s1 + $0x8] sm:$0xff]  ;;  %v206_v7 = vld [vmem:[%s282_s2 + $0x18] sm:$0xff]  }
   0x3   :  { %181 = vmatprep.subr.bf16.mxu0 %v212_v0  ;;  %vm140_vm1 = vcmp.gt.f32.partialorder %v138_v5, 0.5  ;;  %vm141_vm2 = vcmp.gt.f32.partialorder %v139_v6, 0.5  ;;  %v207_v10 = vld [vmem:[%s282_s2 + $0x20] sm:$0xff]   ;;  %v208_v11 = vld [vmem:[%s282_s2 + $0x28] sm:$0xff]   ;;  %v209_v12 = vld [vmem:[%s282_s2 + $0x30] sm:$0xff]  }
   0x4   :  { %v142_v8 = vsel %vm140_vm1, 1, %v214_v2  ;;  %v143_v9 = vsel %vm141_vm2, 1, %v214_v2  ;;  %v210_v13 = vld [vmem:[%s282_s2 + $0x38] sm:$0xff]   ;;  %v211_v14 = vld [vmem:[%s284_s0] sm:$0xff]  }
   0x5   :  { %145 = vperm.xlu0 %202, %v142_v8   ;;  %v160_v16 = vld [vmem:[%s285_s3] ss:$0 sm:$0xff] }
   0x6   :  { %182 = vmatpush3.bf16.msra.mxu0 %v204_v3 }
   0x7   :  { %183 = vmatprep.subr.bf16.mxu0 %v212_v0 }
   0x9   :  { %148 = vperm.xlu0 %202, %v143_v9  }
   0xa   :  { %184 = vmatpush3.bf16.msra.mxu0 %v205_v4 }
   0xb   :  { %185 = vmatprep.subr.bf16.mxu0 %v212_v0 }
   0xe   :  { %186 = vmatpush3.bf16.msra.mxu0 %v206_v7 }
   0xf   :  { %187 = vmatprep.subr.bf16.mxu0 %v212_v0 }
  0x12   :  { %188 = vmatpush3.bf16.msra.mxu0 %v207_v10 }
  0x13   :  { %189 = vmatprep.subr.bf16.mxu0 %v212_v0 }
  0x16   :  { %190 = vmatpush3.bf16.msra.mxu0 %v208_v11 }
  0x17   :  { %191 = vmatprep.subr.bf16.mxu0 %v212_v0 }
  0x1a   :  { %192 = vmatpush3.bf16.msra.mxu0 %v209_v12 }
  0x1b   :  { %193 = vmatprep.subr.bf16.mxu0 %v212_v0 }
  0x1e   :  { %194 = vmatpush3.bf16.msra.mxu0 %v210_v13 }
  0x21   :  { %196 = vmatmul.mubr.bf16.vlgmr.msra.gmra.mrb[0].mxu0 %v211_v14 }
  0x84   :  { %v146_v15 = vpop.permute.xlu0 %145 }
  0x85   :  { %vm150_vm3 = vcmp.eq.s32.totalorder %v146_v15, 1 }
  0x88   :  { %v149_v18 = vpop.permute.xlu0 %148 }
  0x89   :  { %vm151_vm4 = vcmp.eq.s32.totalorder %v149_v18, 1 }
  0xf4   :  { %v131_v17 = vpop.f32.mrb[0].mxu0 }
  0xf5   :  { %v132_v19 = vadd.f32 %v160_v16, %v131_v17  ;;  %v197_v20 = vpop.f32.mrb[1].mxu0 }
  0xf6   :  { %v134_v21 = vpop.f32.mrb[2].mxu0 }
  0xf7   :  { %v152_v22 = vsel %vm150_vm3, 0.0, %v132_v19  ;;  %v135_v23 = vadd.f32 %v160_v16, %v134_v21  ;;  %v198_v24 = vpop.f32.mrb[3].mxu0 }
  0xf8   :  { %154 = vst [vmem:[%s286_s4] sm:$0xff] %v152_v22 }
  0xf9   :  { %v153_v25 = vsel %vm151_vm4, 0.0, %v135_v23 }
  0xfa   :  { %155 = vst [vmem:[%s286_s4 + $0x8] sm:$0xff] %v153_v25 }

// kernel: aux_mae_forward.3
= control target key start
LH: loop header
LB: loop body
LE: loop exit
PB: predicated region body
PF: predicated region fallthrough
CT: control target
= control target key end

     0   :  { %s2252_s24 = smov 0   ;;  %s2584_s0 = inlined_call_operand.vmem [shape: f32[4,4,8], index: 0, kind: input, shape index: {}]   ;;  %s2585_s1 = inlined_call_operand.vmem [shape: f32[4,4,128], index: 1, kind: input, shape index: {}]   ;;  %s2586_s2 = inlined_call_operand.vmem [shape: f32[4,1,4], index: 2, kind: input, shape index: {}]   ;;  %s2587_s3 = inlined_call_operand.vmem [shape: bf16[8,128], index: 3, kind: input, shape index: {}]   ;;  %s2588_s4 = inlined_call_operand.vmem [shape: f32[1,128], index: 4, kind: input, shape index: {}]   ;;  %s2589_s5 = inlined_call_operand.vmem [shape: bf16[128,128], index: 5, kind: input, shape index: {}]   ;;  %s2590_s6 = inlined_call_operand.vmem [shape: f32[1,128], index: 6, kind: input, shape index: {}]   ;;  %s2591_s7 = inlined_call_operand.vmem [shape: f32[2,2,128], index: 7, kind: input, shape index: {}]   ;;  %s2592_s8 = inlined_call_operand.vmem [shape: bf16[128,384], index: 8, kind: input, shape index: {}]   ;;  %s2593_s9 = inlined_call_operand.vmem [shape: f32[1,384], index: 9, kind: input, shape index: {}]   ;;  %s2594_s10 = inlined_call_operand.vmem [shape: bf16[128,128], index: 10, kind: input, shape index: {}]   ;;  %s2595_s11 = inlined_call_operand.vmem [shape: f32[1,128], index: 11, kind: input, shape index: {}]   ;;  %s2596_s12 = inlined_call_operand.vmem [shape: bf16[2,128,256], index: 12, kind: input, shape index: {}]   ;;  %s2597_s13 = inlined_call_operand.vmem [shape: f32[2,1,256], index: 13, kind: input, shape index: {}]   ;;  %s2598_s14 = inlined_call_operand.vmem [shape: bf16[2,256,128], index: 14, kind: input, shape index: {}]   ;;  %s2599_s15 = inlined_call_operand.vmem [shape: f32[1,128], index: 15, kind: input, shape index: {}]   ;;  %s2600_s16 = inlined_call_operand.vmem [shape: f32[2,1,128], index: 16, kind: input, shape index: {}]   ;;  %s2601_s17 = inlined_call_operand.vmem [shape: bf16[4,4,128], index: 17, kind: output, shape index: {}]  }
   0x1   :  { %2602 = sst [smem:[#allocation2_spill]] %s2584_s0 }
   0x2   :  { %2603 = sst [smem:[#allocation3_spill]] %s2585_s1 }
   0x3 LB: > { %s1773_s25 = sadd.s32 4294967295, %s2148_s24   ;;  %p1777_p0 = scmp.ge.s32.totalorder %s2148_s24, 1  ;;  %s2148_s24 = sphi %s2252_s24, %s27_s24  }
   0x4   : > { %p503_p1 = scmp.lt.s32.totalorder %s2148_s24, 5 }
   0x6   : > { %p504_p2 = pnand %p1777_p0, %p503_p1 }
   0x7   : > { %v2263_v0 = vld [vmem:[%s2600_s16] ss:$0 sm:$0xff] (!%p504_p2)  ;;  %v2268_v1 = vld [vmem:[%s2600_s16 + $0x1] ss:$0 sm:$0xff] (!%p504_p2)  ;;  %vm596_vm0 = vcmask (!%p504_p2), 1043456   ;;  %v2158_v2 = vmov (!%p504_p2), 0.0  }
   0x8   : > { %507 = sbr.rel (%p504_p2) target bundleno = 3109 (0xc25), region = 88  ;;  %1924 = vmatprep.subr.bf16.mxu0 (!%p504_p2), %v2158_v2  ;;  %v584_v3 = vld [vmem:[%s2587_s3] sm:$0xf] (!%p504_p2)  ;;  %p560_p3 = scmp.lt.s32.totalorder (!%p504_p2), %s1773_s25, 3  ;;  %1930 = vmatprep.subr.bf16.mxu1 (!%p504_p2), %v2158_v2  ;;  %vm2159_vm1 = vmmov (!%p504_p2), 0   ;;  %vm592_vm2 = vcmask (!%p504_p2), 64512  }
   0x9   : > { %v598_v4 = vsel (!%p504_p2), %vm596_vm0, %v584_v3, 0  ;;  %1926 = vmatprep.mubr.msk.bf16.mxu0 (!%p504_p2), %vm2159_vm1, %v2158_v2  ;;  %1946 = vmatprep.mubr.msk.bf16.mxu1 (!%p504_p2), %vm2159_vm1, %v2158_v2  ;;  %s2604_s21 = sld [smem:[#allocation2_spill]] (!%p504_p2)  ;;  %v2030_v7 = vld [vmem:[%s2589_s5] sm:$0xff] (!%p504_p2)   ;;  %v2031_v8 = vld [vmem:[%s2589_s5 + $0x8] sm:$0xff] (!%p504_p2)   ;;  %v2032_v9 = vld [vmem:[%s2589_s5 + $0x10] sm:$0xff] (!%p504_p2)   ;;  %s2605_s23 = sld [smem:[#allocation3_spill]] (!%p504_p2) }
   0xa   : > { %1925 = vmatpush3.bf16.msra.mxu0 (!%p504_p2), %v598_v4  ;;  %1931 = vmatpush3.bf16.msra.mxu1 (!%p504_p2), %v2030_v7  ;;  %v2033_v10 = vld [vmem:[%s2589_s5 + $0x18] sm:$0xff] (!%p504_p2)   ;;  %v2034_v11 = vld [vmem:[%s2589_s5 + $0x20] sm:$0xff] (!%p504_p2)   ;;  %v2035_v12 = vld [vmem:[%s2589_s5 + $0x28] sm:$0xff] (!%p504_p2)   ;;  %v2160_v3 = vmov (!%p504_p2), 0   ;;  %vm1114_vm3 = vcmask (!%p504_p2), 1041408   ;;  %vm1097_vm6 = vcmask (!%p504_p2), 27648  }
   0xb   : > { %1932 = vmatprep.subr.bf16.mxu1 (!%p504_p2), %v2158_v2  ;;  %v2036_v13 = vld [vmem:[%s2589_s5 + $0x30] sm:$0xff] (!%p504_p2)   ;;  %v2037_v14 = vld [vmem:[%s2589_s5 + $0x38] sm:$0xff] (!%p504_p2)   ;;  %v1781_v15 = vld [vmem:[%s2588_s4] ss:$0 sm:$0xff] (!%p504_p2)  ;;  %vm1110_vm7 = vcmask (!%p504_p2), 31744   ;;  %s2509_s1 = smov (!%p504_p2), 0  }
   0xc   : > { %v1783_v31 = vld [vmem:[%s2590_s6] ss:$0 sm:$0xff] (!%p504_p2)  ;;  %v2040_v41 = vld [vmem:[%s2592_s8 + $0x4] ss:$12 sps:$4 sm:$0xff] (!%p504_p2)   ;;  %v2041_v42 = vld [vmem:[%s2592_s8 + $0x8] ss:$12 sps:$4 sm:$0xff] (!%p504_p2)  }
   0xd   : > { %v2038_v40 = vld [vmem:[%s2592_s8] ss:$12 sps:$4 sm:$0xff] (!%p504_p2)   ;;  %v2044_v43 = vld [vmem:[%s2592_s8 + $0x1c] ss:$12 sps:$4 sm:$0xff] (!%p504_p2)   ;;  %964 = vmatprep.subr.bf16.mxu0 (!%p504_p2), %v2040_v41  ;;  %v2042_v45 = vld [vmem:[%s2592_s8 + $0x18] ss:$12 sps:$4 sm:$0xff] (!%p504_p2)  }
   0xe   : > { %1933 = vmatpush3.bf16.msra.mxu1 (!%p504_p2), %v2031_v8  ;;  %v2045_v44 = vld [vmem:[%s2592_s8 + $0x20] ss:$12 sps:$4 sm:$0xff] (!%p504_p2)   ;;  %v2046_v47 = vld [vmem:[%s2592_s8 + $0x30] ss:$12 sps:$4 sm:$0xff] (!%p504_p2)   ;;  %v2049_v53 = vld [vmem:[%s2592_s8 + $0x38] ss:$12 sps:$4 sm:$0xff] (!%p504_p2)  }
   0xf   : > { %s2608_s25 = smov (!%p560_p3, %s1773_s25), 3  ;;  %1934 = vmatprep.subr.bf16.mxu1 %v2158_v2  ;;  %v2048_v46 = vld [vmem:[%s2592_s8 + $0x34] ss:$12 sps:$4 sm:$0xff]   ;;  %v2052_v54 = vld [vmem:[%s2592_s8 + $0x4c] ss:$12 sps:$4 sm:$0xff]  }
  0x10   : > { %s1778_s18 = sshll.u32 %s2608_s25, 2  ;;  %s1780_s19 = sshll.u32 %s2608_s25, 1  ;;  %v2050_v55 = vld [vmem:[%s2592_s8 + $0x48] ss:$12 sps:$4 sm:$0xff]   ;;  %v2053_v56 = vld [vmem:[%s2592_s8 + $0x50] ss:$12 sps:$4 sm:$0xff]  }
  0x11   : > { %s563_s22 = scalar_lea.vmem %s2604_s21, %s1778_s18  ;;  %s2292_s27 = scalar_lea.vmem %s2601_s17, %s1780_s19  ;;  %v2054_v57 = vld [vmem:[%s2592_s8 + $0x60] ss:$12 sps:$4 sm:$0xff]   ;;  %v2056_v58 = vld [vmem:[%s2592_s8 + $0x64] ss:$12 sps:$4 sm:$0xff]   ;;  %v2057_v59 = vld [vmem:[%s2592_s8 + $0x68] ss:$12 sps:$4 sm:$0xff]  }
  0x12   : > { %v577_v5 = vld [vmem:[%s563_s22] sm:$0xf]  ;;  %1935 = vmatpush3.bf16.msra.mxu1 %v2032_v9  ;;  %s567_s26 = scalar_lea.vmem %s2605_s23, %s1778_s18  ;;  %v2060_v60 = vld [vmem:[%s2592_s8 + $0x7c] ss:$12 sps:$4 sm:$0xff]   ;;  %v2058_v61 = vld [vmem:[%s2592_s8 + $0x78] ss:$12 sps:$4 sm:$0xff]   ;;  %s570_s21 = scalar_lea.vmem %s2586_s2, %s2608_s25 }
  0x13   : > { %v583_v6 = vpack.c.bf16 %v577_v5, %v577_v5  ;;  %1936 = vmatprep.subr.bf16.mxu1 %v2158_v2  ;;  %v576_v32 = vld [vmem:[%s567_s26] sm:$0xf]  ;;  %v2062_v4 = vld [vmem:[%s2592_s8 + $0x90] ss:$12 sps:$4 sm:$0xff]   ;;  %v2065_v5 = vld [vmem:[%s2592_s8 + $0x98] ss:$12 sps:$4 sm:$0xff]  }
  0x14   : > { %v2061_v62 = vld [vmem:[%s2592_s8 + $0x80] ss:$12 sps:$4 sm:$0xff]   ;;  %v2066_v7 = vld [vmem:[%s2592_s8 + $0xa8] ss:$12 sps:$4 sm:$0xff]   ;;  %v2069_v8 = vld [vmem:[%s2592_s8 + $0xb0] ss:$12 sps:$4 sm:$0xff]  }
  0x15   : > { %1927 = vmatmul.mubr.msk.bf16.vlgmr.msra.gmra.mrb[0].mxu0 %vm592_vm2, %v583_v6  ;;  %v2064_v63 = vld [vmem:[%s2592_s8 + $0x94] ss:$12 sps:$4 sm:$0xff]   ;;  %v2068_v6 = vld [vmem:[%s2592_s8 + $0xac] ss:$12 sps:$4 sm:$0xff]  }
  0x16   : > { %1937 = vmatpush3.bf16.msra.mxu1 %v2033_v10  ;;  %965 = vmatpush1.bf16.msra.mxu0 %v2038_v40 }
  0x17   : > { %1938 = vmatprep.subr.bf16.mxu1 %v2158_v2  ;;  %966 = vmatprep.subr.bf16.mxu0 %v2044_v43 }
  0x18   : > { %996 = vmatprep.mubr.bf16.mxu0 %v2160_v3 }
  0x1a   : > { %1939 = vmatpush3.bf16.msra.mxu1 %v2034_v11  ;;  %967 = vmatpush1.bf16.msra.mxu0 %v2042_v45  ;;  %v776_v11 = vlaneseq  ;;  %v578_v45 = vld [vmem:[%s570_s21] sm:$0x1] }
  0x1b   : > { %1940 = vmatprep.subr.bf16.mxu1 %v2158_v2  ;;  %968 = vmatprep.subr.bf16.mxu0 %v2048_v46  ;;  %vm1089_vm4 = vcmp.gt.f32.partialorder %v578_v45, 0.5 }
  0x1c   : > { %v1090_v46 = vsel %vm1089_vm4, 1, %v2160_v3 }
  0x1e   : > { %1941 = vmatpush3.bf16.msra.mxu1 %v2035_v12  ;;  %969 = vmatpush1.bf16.msra.mxu0 %v2046_v47 }
  0x1f   : > { %1942 = vmatprep.subr.bf16.mxu1 %v2158_v2  ;;  %970 = vmatprep.subr.bf16.mxu0 %v2052_v54 }
  0x22   : > { %1943 = vmatpush3.bf16.msra.mxu1 %v2036_v13  ;;  %971 = vmatpush1.bf16.msra.mxu0 %v2050_v55  ;;  %v777_v13 = vshrl.u32 %v776_v11, 7 }
  0x23   : > { %1944 = vmatprep.subr.bf16.mxu1 %v2158_v2  ;;  %972 = vmatprep.subr.bf16.mxu0 %v2056_v58 }
  0x26   : > { %1945 = vmatpush3.bf16.msra.mxu1 %v2037_v14  ;;  %973 = vmatpush1.bf16.msra.mxu0 %v2054_v57  ;;  %v2427_v14 = vsub.s32 0, %v777_v13 }
  0x27   : > { %1950 = vmatprep.subr.bf16.mxu1 %v2158_v2  ;;  %974 = vmatprep.subr.bf16.mxu0 %v2060_v60 }
  0x28   : > { %v1094_v47 = vrot.slane %v1090_v46, %v2427_v14 }
  0x2a   : > { %975 = vmatpush1.bf16.msra.mxu0 %v2058_v61  ;;  %vm1095_vm5 = vcmp.eq.s32.totalorder %v1094_v47, 1 }
  0x2b   : > { %976 = vmatprep.subr.bf16.mxu0 %v2064_v63  ;;  %v2070_v63 = vld [vmem:[%s2594_s10] sm:$0xff]  }
  0x2e   : > { %977 = vmatpush1.bf16.msra.mxu0 %v2062_v4  ;;  %v2071_v4 = vld [vmem:[%s2594_s10 + $0x8] sm:$0xff]  }
  0x2f   : > { %978 = vmatprep.subr.bf16.mxu0 %v2068_v6  ;;  %v2073_v6 = vld [vmem:[%s2594_s10 + $0x18] sm:$0xff]  }
  0x32   : > { %979 = vmatpush1.bf16.msra.mxu0 %v2066_v7  ;;  %v2074_v7 = vld [vmem:[%s2594_s10 + $0x20] sm:$0xff]  }
  0x33   : > { %1976 = vmatprep.subr.bf16.mxu0 %v2158_v2 }
  0xe8   : > { %v634_v16 = vpop.f32.mrb[0].mxu0 }
  0xe9   : > { %v635_v17 = vadd.f32 %v1781_v15, %v634_v16  ;;  %v1928_v18 = vpop.f32.mrb[1].mxu0  ;;  %v579_v15 = vld [vmem:[%s2591_s7] sm:$0x3]  ;;  %v2432_v16 = vsub.s32 1, %v777_v13 }
  0xea   : > { %v637_v19 = vpop.f32.mrb[2].mxu0 }
  0xeb   : > { %v640_v20 = vmul.f32 %v635_v17, %v635_v17  ;;  %v1929_v21 = vpop.f32.mrb[3].mxu0 }
  0xed   : > { %v641_v22 = vmul.f32 %v640_v20, %v635_v17  ;;  %v784_v20 = vrot.slane %v579_v15, %v2432_v16 }
  0xef   : > { %v642_v23 = vmul.f32 0.044715, %v641_v22 }
  0xf1   : > { %v643_v24 = vadd.f32 %v642_v23, %v635_v17 }
  0xf3   : > { %v644_v25 = vmul.f32 0.7978846, %v643_v24  ;;  %v831_v24 = vsub.s32 2, %v777_v13 }
  0xf5   : > { %2078 = vtanh.f32 %v644_v25  ;;  %v819_v25 = vld [vmem:[%s2593_s9] sm:$0x7] }
  0xff   : > { %v2079_v26 = vpop.eup %2078 }
 0x100   : > { %v646_v27 = vadd.f32 1.0, %v2079_v26  ;;  %v832_v26 = vrot.slane %v819_v25, %v831_v24 }
 0x102   : > { %v647_v28 = vmul.f32 0.5, %v646_v27  ;;  %v828_v27 = vrot.slane %v819_v25, %v2432_v16 }
 0x104   : > { %v648_v29 = vmul.f32 %v647_v28, %v635_v17  ;;  %v779_v17 = vrot.slane %v579_v15, %v2427_v14 }
 0x106   : > { %v649_v30 = vpack.c.bf16 %v648_v29, %v648_v29 }
 0x108   : > { %1947 = vmatmul.mubr.bf16.vlgmr.msra.gmra.mrb[0].mxu1 %v649_v30 }
 0x109   : > { %1966 = vmatprep.mubr.msk.bf16.mxu1 %vm2159_vm1, %v2158_v2  ;;  %1951 = vmatpush3.bf16.msra.mxu1 %v2041_v42 }
 0x10a   : > { %1952 = vmatprep.subr.bf16.mxu1 %v2158_v2 }
 0x10d   : > { %1953 = vmatpush3.bf16.msra.mxu1 %v2045_v44 }
 0x10e   : > { %1954 = vmatprep.subr.bf16.mxu1 %v2158_v2 }
 0x111   : > { %1955 = vmatpush3.bf16.msra.mxu1 %v2049_v53 }
 0x112   : > { %1956 = vmatprep.subr.bf16.mxu1 %v2158_v2 }
 0x115   : > { %1957 = vmatpush3.bf16.msra.mxu1 %v2053_v56 }
 0x116   : > { %1958 = vmatprep.subr.bf16.mxu1 %v2158_v2 }
 0x119   : > { %1959 = vmatpush3.bf16.msra.mxu1 %v2057_v59 }
 0x11a   : > { %1960 = vmatprep.subr.bf16.mxu1 %v2158_v2 }
 0x11d   : > { %1961 = vmatpush3.bf16.msra.mxu1 %v2061_v62 }
 0x11e   : > { %1962 = vmatprep.subr.bf16.mxu1 %v2158_v2 }
 0x121   : > { %1963 = vmatpush3.bf16.msra.mxu1 %v2065_v5  ;;  %v2072_v5 = vld [vmem:[%s2594_s10 + $0x10] sm:$0xff]  }
 0x122   : > { %1964 = vmatprep.subr.bf16.mxu1 %v2158_v2 }
 0x125   : > { %1965 = vmatpush3.bf16.msra.mxu1 %v2069_v8  ;;  %v2075_v8 = vld [vmem:[%s2594_s10 + $0x28] sm:$0xff]  }
 0x126   : > { %1970 = vmatprep.subr.bf16.mxu1 %v2158_v2 }
 0x1db   : > { %v755_v33 = vpop.f32.mrb[0].mxu1 }
 0x1dc   : > { %v756_v34 = vadd.f32 %v1783_v31, %v755_v33  ;;  %v1948_v35 = vpop.f32.mrb[1].mxu1 }
 0x1dd   : > { %v758_v36 = vpop.f32.mrb[2].mxu1 }
 0x1de   : > { %v2339_v37 = vadd.f32 %v756_v34, %v576_v32  ;;  %v1949_v38 = vpop.f32.mrb[3].mxu1  ;;  %v824_v36 = vrot.slane %v819_v25, %v2427_v14 }
 0x1e0   : > { %v762_v39 = vsel %vm596_vm0, %v2339_v37, 0.0 }
 0x1e1   : > { %763 = vadd.xlane.f32.xlu0 %v762_v39 }
 0x26e   : > { %v764_v48 = vpop.xlane.xlu0 %763 }
 0x26f   : > { %v766_v49 = vmul.f32 0.0078125, %v764_v48 }
 0x271   : > { %v767_v50 = vsub.f32 %v2339_v37, %v766_v49 }
 0x273   : > { %v768_v51 = vmul.f32 %v767_v50, %v767_v50 }
 0x275   : > { %v769_v52 = vsel %vm596_vm0, %v768_v51, 0.0 }
 0x276   : > { %770 = vadd.xlane.f32.xlu0 %v769_v52 }
 0x303   : > { %v771_v9 = vpop.xlane.xlu0 %770 }
 0x304   : > { %v772_v10 = vmul.f32 0.0078125, %v771_v9  ;;  %v2076_v9 = vld [vmem:[%s2594_s10 + $0x30] sm:$0xff]  }
 0x306   : > { %v773_v12 = vadd.f32 1e-05, %v772_v10  ;;  %v2077_v10 = vld [vmem:[%s2594_s10 + $0x38] sm:$0xff]  }
 0x308   : > { %2080 = vrsqrt.f32 %v773_v12 }
 0x312   : > { %v2081_v18 = vpop.eup %2080 }
 0x313   : > { %v775_v19 = vmul.f32 %v2081_v18, %v767_v50  ;;  %v1817_v18 = vld [vmem:[%s2595_s11] ss:$0 sm:$0xff] }
 0x315   : > { %v780_v21 = vmul.f32 %v779_v17, %v775_v19 }
 0x317   : > { %v785_v22 = vadd.f32 %v784_v20, %v780_v21 }
 0x319   : > { %v786_v23 = vpack.c.bf16 %v785_v22, %v785_v22 }
 0x31b   : > { %997 = vmatmul.mubr.bf16.vlgmr.msra.gmra.mrb[4].mxu0 %v786_v23  ;;  %1967 = vmatmul.mubr.bf16.vlgmr.msra.gmra.mrb[4].mxu1 %v786_v23 }
 0x31c   : > { %1972 = vmatprep.mubr.msk.bf16.mxu1 %vm2159_vm1, %v2158_v2  ;;  %1978 = vmatprep.mubr.msk.bf16.mxu0 %vm2159_vm1, %v2158_v2 }
 0x3ee   : > { %v998_v28 = vpop.f32.mrb[4].mxu0  ;;  %v1039_v29 = vpop.f32.mrb[4].mxu1 }
 0x3ef   : > { %v1040_v30 = vadd.f32 %v1039_v29, %v832_v26  ;;  %v1000_v31 = vpop.f32.mrb[5].mxu0  ;;  %v1968_v32 = vpop.f32.mrb[5].mxu1  ;;  %v999_v43 = vadd.f32 %v998_v28, %v824_v36 }
 0x3f0   : > { %v1001_v33 = vadd.f32 %v1000_v31, %v828_v27  ;;  %v1002_v34 = vpop.f32.mrb[6].mxu0  ;;  %v1042_v35 = vpop.f32.mrb[6].mxu1 }
 0x3f1   : > { %v1047_v38 = vpack.c.bf16 %v1040_v30, %v1040_v30  ;;  %v1003_v39 = vpop.f32.mrb[7].mxu0  ;;  %v1969_v40 = vpop.f32.mrb[7].mxu1  ;;  %v1045_v44 = vpack.c.bf16 %v999_v43, %v999_v43  ;;  %v1826_v30 = vld [vmem:[%s2599_s15] ss:$0 sm:$0xff]  }
 0x3f2   : > { %v1046_v41 = vpack.c.bf16 %v1001_v33, %v1001_v33  ;;  %v580_v33 = vld [vmem:[%s2591_s7 + $0x2] sm:$0x3] }
 0x3f3   : > { %v1116_v42 = vsel %vm1114_vm3, %v1047_v38, 0  ;;  %v1287_v34 = vrot.slane %v580_v33, %v2427_v14  ;;  %v1292_v36 = vrot.slane %v580_v33, %v2432_v16 }
 0x3f4   : > { %1971 = vmatpush3.bf16.xpose.msra.mxu1 %v1046_v41  ;;  %1977 = vmatpush3.bf16.msra.mxu0 %v1116_v42 }
 0x3f5   : > { %1982 = vmatprep.subr.bf16.mxu0 %v2158_v2 }
 0x3fb   : > { %1973 = vmatmul.mubr.bf16.vlgmr.msra.gmra.mrb[8].mxu1 %v1045_v44 }
 0x4ce   : > { %v1082_v48 = vpop.f32.mrb[8].mxu1 }
 0x4cf   : > { %v1088_v49 = vmul.f32 0.088388346, %v1082_v48  ;;  %v1974_v50 = vpop.f32.mrb[9].mxu1 }
 0x4d0   : > { %v1085_v51 = vpop.f32.mrb[10].mxu1 }
 0x4d1   : > { %v1975_v52 = vpop.f32.mrb[11].mxu1  ;;  %v1096_v53 = vsel %vm1095_vm5, -1e+30, %v1088_v49 }
 0x4d2   : > { %v1098_v54 = vsel %vm1097_vm6, %v1096_v53, -inf }
 0x4d3   : > { %1099 = vmax.xlane.f32.xlu1 %v1098_v54 }
 0x560   : > { %v1100_v55 = vpop.xlane.xlu1 %1099 }
 0x561   : > { %v1101_v56 = vsub.f32 %v1096_v53, %v1100_v55 }
 0x563   : > { %v1102_v57 = vmul.f32 1.442695, %v1101_v56 }
 0x565   : > { %2082 = vpow2.f32 %v1102_v57 }
 0x56f   : > { %v2083_v58 = vpop.eup %2082 }
 0x570   : > { %v1104_v59 = vsel %vm1097_vm6, %v2083_v58, 0.0 }
 0x571   : > { %1105 = vadd.xlane.f32.xlu1 %v1104_v59 }
 0x5fe   : > { %v1106_v60 = vpop.xlane.xlu1 %1105 }
 0x5ff   : > { %2084 = vrcp.f32 %v1106_v60 }
 0x609   : > { %v2085_v61 = vpop.eup %2084 }
 0x60a   : > { %v1108_v62 = vmul.f32 %v2085_v61, %v2083_v58 }
 0x60c   : > { %v1109_v3 = vpack.c.bf16 %v1108_v62, %v1108_v62 }
 0x60e   : > { %1979 = vmatmul.mubr.msk.bf16.vlgmr.msra.gmra.mrb[8].mxu0 %vm1110_vm7, %v1109_v3 }
 0x60f   : > { %1983 = vmatpush3.bf16.msra.mxu0 %v2070_v63  ;;  %1998 = vmatprep.mubr.msk.bf16.mxu0 %vm2159_vm1, %v2158_v2 }
 0x610   : > { %1984 = vmatprep.subr.bf16.mxu0 %v2158_v2 }
 0x613   : > { %1985 = vmatpush3.bf16.msra.mxu0 %v2071_v4 }
 0x614   : > { %1986 = vmatprep.subr.bf16.mxu0 %v2158_v2 }
 0x617   : > { %1987 = vmatpush3.bf16.msra.mxu0 %v2072_v5 }
 0x618   : > { %1988 = vmatprep.subr.bf16.mxu0 %v2158_v2 }
 0x61b   : > { %1989 = vmatpush3.bf16.msra.mxu0 %v2073_v6 }
 0x61c   : > { %1990 = vmatprep.subr.bf16.mxu0 %v2158_v2 }
 0x61f   : > { %1991 = vmatpush3.bf16.msra.mxu0 %v2074_v7 }
 0x620   : > { %1992 = vmatprep.subr.bf16.mxu0 %v2158_v2 }
 0x623   : > { %1993 = vmatpush3.bf16.msra.mxu0 %v2075_v8 }
 0x624   : > { %1994 = vmatprep.subr.bf16.mxu0 %v2158_v2 }
 0x627   : > { %1995 = vmatpush3.bf16.msra.mxu0 %v2076_v9 }
 0x628   : > { %1996 = vmatprep.subr.bf16.mxu0 %v2158_v2 }
 0x62b   : > { %1997 = vmatpush3.bf16.msra.mxu0 %v2077_v10 }
 0x6e1   : > { %v1152_v11 = vpop.f32.mrb[8].mxu0 }
 0x6e2   : > { %v1158_v12 = vpack.c.bf16 %v1152_v11, %v1152_v11  ;;  %v1980_v13 = vpop.f32.mrb[9].mxu0 }
 0x6e3   : > { %v1155_v15 = vpop.f32.mrb[10].mxu0 }
 0x6e4   : > { %v1981_v17 = vpop.f32.mrb[11].mxu0  ;;  %1999 = vmatmul.mubr.bf16.vlgmr.msra.gmra.mrb[12].mxu0 %v1158_v12 }
 0x7b7   : > { %v1264_v19 = vpop.f32.mrb[12].mxu0 }
 0x7b8   : > { %v1265_v20 = vadd.f32 %v1817_v18, %v1264_v19  ;;  %v2000_v21 = vpop.f32.mrb[13].mxu0 }
 0x7b9   : > { %v1267_v22 = vpop.f32.mrb[14].mxu0 }
 0x7ba   : > { %v2001_v2 = vpop.f32.mrb[15].mxu0  ;;  %v2489_v23 = vadd.f32 %v1265_v20, %v2339_v37 }
 0x7bc   : > { %v1271_v24 = vsel %vm596_vm0, %v2489_v23, 0.0 }
 0x7bd   : > { %1272 = vadd.xlane.f32.xlu0 %v1271_v24 }
 0x84a   : > { %v1273_v25 = vpop.xlane.xlu0 %1272 }
 0x84b   : > { %v1274_v26 = vmul.f32 0.0078125, %v1273_v25 }
 0x84d   : > { %v1275_v27 = vsub.f32 %v2489_v23, %v1274_v26 }
 0x84f   : > { %v1276_v28 = vmul.f32 %v1275_v27, %v1275_v27 }
 0x851   : > { %v1277_v29 = vsel %vm596_vm0, %v1276_v28, 0.0 }
 0x852   : > { %1278 = vadd.xlane.f32.xlu1 %v1277_v29 }
 0x8df   : > { %v1279_v31 = vpop.xlane.xlu1 %1278 }
 0x8e0   : > { %v1280_v32 = vmul.f32 0.0078125, %v1279_v31 }
 0x8e2   : > { %v1281_v37 = vadd.f32 1e-05, %v1280_v32 }
 0x8e4   : > { %2086 = vrsqrt.f32 %v1281_v37 }
 0x8ee   : > { %v2087_v35 = vpop.eup %2086 }
 0x8ef   : > { %v1283_v38 = vmul.f32 %v2087_v35, %v1275_v27 }
 0x8f1   : > { %v1288_v39 = vmul.f32 %v1287_v34, %v1283_v38 }
 0x8f3   : > { %v2503_v40 = vadd.f32 %v1292_v36, %v1288_v39 }
 0x8f5   : > { %v1294_v41 = vpack.c.bf16 %v2503_v40, %v2503_v40 }
 0x8f6 LB: >> { %v2161_v42 = vmov 0   ;;  %s1867_s19 = sshll.u32 %s2156_s1, 7  ;;  %s1829_s28 = sshll.u32 %s2156_s1, 1  ;;  %s2156_s1 = sphi %s2509_s1, %s1308_s1   ;;  %v2152_v30 = vphi %v1826_v30, %v2606_v30  }
 0x8f7   : >> { %1455 = vmatprep.mubr.bf16.mxu0 %v2161_v42  ;;  %s2521_s25 = scalar_lea.vmem %s2596_s12, %s1867_s19  ;;  %s2533_s26 = scalar_lea.vmem %s2598_s14, %s1867_s19 }
 0x8f8   : >> { %v2088_v43 = vld [vmem:[%s2521_s25 + $0x4] ss:$8 sps:$4 sm:$0xff]   ;;  %v2090_v44 = vld [vmem:[%s2521_s25] ss:$8 sps:$4 sm:$0xff]   ;;  %v2091_v45 = vld [vmem:[%s2521_s25 + $0x14] ss:$8 sps:$4 sm:$0xff]   ;;  %s1330_s30 = scalar_lea.vmem %s2597_s13, %s1829_s28 }
 0x8f9   : >> { %1423 = vmatprep.subr.bf16.mxu0 %v2088_v43  ;;  %v2093_v46 = vld [vmem:[%s2521_s25 + $0x10] ss:$8 sps:$4 sm:$0xff]   ;;  %v2094_v47 = vld [vmem:[%s2521_s25 + $0x24] ss:$8 sps:$4 sm:$0xff]   ;;  %v2096_v48 = vld [vmem:[%s2521_s25 + $0x20] ss:$8 sps:$4 sm:$0xff]  }
 0x8fa   : >> { %1424 = vmatpush1.bf16.msra.mxu0 %v2090_v44  ;;  %v2097_v49 = vld [vmem:[%s2521_s25 + $0x34] ss:$8 sps:$4 sm:$0xff]   ;;  %v2099_v50 = vld [vmem:[%s2521_s25 + $0x30] ss:$8 sps:$4 sm:$0xff]   ;;  %v2100_v51 = vld [vmem:[%s2521_s25 + $0x44] ss:$8 sps:$4 sm:$0xff]  }
 0x8fb   : >> { %1425 = vmatprep.subr.bf16.mxu0 %v2091_v45  ;;  %v2102_v52 = vld [vmem:[%s2521_s25 + $0x40] ss:$8 sps:$4 sm:$0xff]   ;;  %v2103_v53 = vld [vmem:[%s2521_s25 + $0x54] ss:$8 sps:$4 sm:$0xff]   ;;  %v2105_v54 = vld [vmem:[%s2521_s25 + $0x50] ss:$8 sps:$4 sm:$0xff]  }
 0x8fc   : >> { %v2106_v55 = vld [vmem:[%s2521_s25 + $0x64] ss:$8 sps:$4 sm:$0xff]   ;;  %v2108_v56 = vld [vmem:[%s2521_s25 + $0x60] ss:$8 sps:$4 sm:$0xff]   ;;  %v2109_v57 = vld [vmem:[%s2521_s25 + $0x74] ss:$8 sps:$4 sm:$0xff]  }
 0x8fd   : >> { %v2111_v58 = vld [vmem:[%s2521_s25 + $0x70] ss:$8 sps:$4 sm:$0xff]   ;;  %v2112_v59 = vld [vmem:[%s2533_s26 + $0x40] sm:$0xff]   ;;  %v2114_v61 = vld [vmem:[%s2533_s26 + $0x48] sm:$0xff]   ;;  %s1308_s1 = sadd.s32 1, %s2156_s1  }
 0x8fe   : >> { %1426 = vmatpush1.bf16.msra.mxu0 %v2093_v46  ;;  %v2113_v60 = vld [vmem:[%s2533_s26] sm:$0xff]   ;;  %1902 = vmatprep.subr.bf16.mxu1 %v2112_v59  ;;  %v2115_v62 = vld [vmem:[%s2533_s26 + $0x8] sm:$0xff]   ;;  %v2116_v63 = vld [vmem:[%s2533_s26 + $0x50] sm:$0xff]   ;;  %p1305_p4 = scmp.ge.s32.totalorder %s1308_s1, 2  }
 0x8ff   : >> { %1427 = vmatprep.subr.bf16.mxu0 %v2094_v47  ;;  %1903 = vmatpush3.bf16.msra.mxu1 %v2113_v60  ;;  %v2117_v3 = vld [vmem:[%s2533_s26 + $0x10] sm:$0xff]   ;;  %v2118_v4 = vld [vmem:[%s2533_s26 + $0x58] sm:$0xff]   ;;  %v2120_v6 = vld [vmem:[%s2533_s26 + $0x60] sm:$0xff]  }
 0x900   : >> { %1904 = vmatprep.subr.bf16.mxu1 %v2114_v61  ;;  %v2119_v5 = vld [vmem:[%s2533_s26 + $0x18] sm:$0xff]   ;;  %v2121_v7 = vld [vmem:[%s2533_s26 + $0x20] sm:$0xff]   ;;  %v2122_v8 = vld [vmem:[%s2533_s26 + $0x68] sm:$0xff]  }
 0x901   : >> { %v2123_v9 = vld [vmem:[%s2533_s26 + $0x28] sm:$0xff]   ;;  %v2124_v10 = vld [vmem:[%s2533_s26 + $0x70] sm:$0xff]   ;;  %v2126_v12 = vld [vmem:[%s2533_s26 + $0x78] sm:$0xff]  }
 0x902   : >> { %1428 = vmatpush1.bf16.msra.mxu0 %v2096_v48  ;;  %v2125_v11 = vld [vmem:[%s2533_s26 + $0x30] sm:$0xff]   ;;  %v2127_v13 = vld [vmem:[%s2533_s26 + $0x38] sm:$0xff]   ;;  %v1331_v15 = vld [vmem:[%s1330_s30] sm:$0x3] }
 0x903   : >> { %1429 = vmatprep.subr.bf16.mxu0 %v2097_v49  ;;  %1905 = vmatpush3.bf16.msra.mxu1 %v2115_v62  ;;  %v1336_v17 = vrot.slane %v1331_v15, %v2427_v14  ;;  %v1340_v18 = vrot.slane %v1331_v15, %v2432_v16 }
 0x904   : >> { %1906 = vmatprep.subr.bf16.mxu1 %v2116_v63 }
 0x906   : >> { %1430 = vmatpush1.bf16.msra.mxu0 %v2099_v50 }
 0x907   : >> { %1431 = vmatprep.subr.bf16.mxu0 %v2100_v51  ;;  %1907 = vmatpush3.bf16.msra.mxu1 %v2117_v3 }
 0x908   : >> { %1908 = vmatprep.subr.bf16.mxu1 %v2118_v4 }
 0x90a   : >> { %1432 = vmatpush1.bf16.msra.mxu0 %v2102_v52 }
 0x90b   : >> { %1433 = vmatprep.subr.bf16.mxu0 %v2103_v53  ;;  %1909 = vmatpush3.bf16.msra.mxu1 %v2119_v5 }
 0x90c   : >> { %1910 = vmatprep.subr.bf16.mxu1 %v2120_v6 }
 0x90e   : >> { %1434 = vmatpush1.bf16.msra.mxu0 %v2105_v54 }
 0x90f   : >> { %1435 = vmatprep.subr.bf16.mxu0 %v2106_v55  ;;  %1911 = vmatpush3.bf16.msra.mxu1 %v2121_v7 }
 0x910   : >> { %1912 = vmatprep.subr.bf16.mxu1 %v2122_v8 }
 0x912   : >> { %1436 = vmatpush1.bf16.msra.mxu0 %v2108_v56 }
 0x913   : >> { %1437 = vmatprep.subr.bf16.mxu0 %v2109_v57  ;;  %1913 = vmatpush3.bf16.msra.mxu1 %v2123_v9 }
 0x914   : >> { %1914 = vmatprep.subr.bf16.mxu1 %v2124_v10 }
 0x916   : >> { %1438 = vmatpush1.bf16.msra.mxu0 %v2111_v58 }
 0x917   : >> { %1915 = vmatpush3.bf16.msra.mxu1 %v2125_v11 }
 0x918   : >> { %1916 = vmatprep.subr.bf16.mxu1 %v2126_v12 }
 0x919   : >> { %1456 = vmatmul.mubr.bf16.vlgmr.msra.gmra.mrb[0].mxu0 %v1294_v41 }
 0x91b   : >> { %1917 = vmatpush3.bf16.msra.mxu1 %v2127_v13 }
 0x9ec   : >> { %v1457_v19 = vpop.f32.mrb[0].mxu0 }
 0x9ed   : >> { %v1458_v20 = vadd.f32 %v1457_v19, %v1336_v17  ;;  %v1459_v21 = vpop.f32.mrb[1].mxu0 }
 0x9ee   : >> { %v1460_v22 = vadd.f32 %v1459_v21, %v1340_v18  ;;  %v1461_v2 = vpop.f32.mrb[2].mxu0 }
 0x9ef   : >> { %v1464_v24 = vmul.f32 %v1458_v20, %v1458_v20  ;;  %v1462_v25 = vpop.f32.mrb[3].mxu0 }
 0x9f0   : >> { %v1465_v26 = vmul.f32 %v1460_v22, %v1460_v22 }
 0x9f1   : >> { %v1466_v27 = vmul.f32 %v1464_v24, %v1458_v20 }
 0x9f2   : >> { %v1467_v28 = vmul.f32 %v1465_v26, %v1460_v22 }
 0x9f3   : >> { %v1468_v29 = vmul.f32 0.044715, %v1466_v27 }
 0x9f4   : >> { %v1469_v31 = vmul.f32 0.044715, %v1467_v28 }
 0x9f5   : >> { %v1470_v32 = vadd.f32 %v1468_v29, %v1458_v20 }
 0x9f6   : >> { %v1471_v37 = vadd.f32 %v1469_v31, %v1460_v22 }
 0x9f7   : >> { %v1472_v33 = vmul.f32 0.7978846, %v1470_v32 }
 0x9f8   : >> { %v1473_v34 = vmul.f32 0.7978846, %v1471_v37 }
 0x9f9   : >> { %2128 = vtanh.f32 %v1472_v33 }
 0x9fa   : >> { %2130 = vtanh.f32 %v1473_v34 }
 0xa03   : >> { %v2129_v35 = vpop.eup %2128 }
 0xa04   : >> { %v2131_v36 = vpop.eup %2130  ;;  %v1476_v38 = vadd.f32 1.0, %v2129_v35 }
 0xa05   : >> { %v1477_v39 = vadd.f32 1.0, %v2131_v36 }
 0xa06   : >> { %v1478_v42 = vmul.f32 0.5, %v1476_v38 }
 0xa07   : >> { %v1479_v43 = vmul.f32 0.5, %v1477_v39 }
 0xa08   : >> { %v1480_v44 = vmul.f32 %v1478_v42, %v1458_v20 }
 0xa09   : >> { %v1481_v45 = vmul.f32 %v1479_v43, %v1460_v22 }
 0xa0a   : >> { %v1482_v47 = vpack.c.bf16 %v1480_v44, %v1480_v44 }
 0xa0b   : >> { %v1483_v46 = vpack.c.bf16 %v1481_v45, %v1481_v45 }
 0xa0d   : >> { %1646 = vmatprep.mubr.bf16.mxu1 %v1483_v46 }
 0xa0e   : >> { %1647 = vmatmul.mubr.bf16.vlgmr.msra.gmra.mrb[0].mxu1 %v1482_v47 }
 0xae1   : >> { %v1918_v48 = vpop.f32.mrb[0].mxu1  ;;  %1307 = sbr.rel (!%p1305_p4) target bundleno = 2294 (0x8f6), region = 134 }
 0xae2   : >> { %v1919_v49 = vpop.f32.mrb[1].mxu1 }
 0xae3   : >> { %v1920_v50 = vadd.f32 %v1919_v49, %v1918_v48  ;;  %v1921_v51 = vpop.f32.mrb[2].mxu1 }
 0xae4   : >> { %v1922_v52 = vpop.f32.mrb[3].mxu1 }
 0xae5   : >> { %v1654_v53 = vadd.f32 %v2152_v30, %v1920_v50  }
 0xae7   : >> { %v2606_v30 = vmov %v1654_v53  ;;  %v1655_v54 = vadd.f32 (%p1305_p4), %v1654_v53, %v2489_v23 }
 0xae9   : > { %v1656_v55 = vsel %vm596_vm0, %v1655_v54, 0.0 }
 0xaea   : > { %1657 = vadd.xlane.f32.xlu0 %v1656_v55 }
 0xb77   : > { %v1658_v56 = vpop.xlane.xlu0 %1657 }
 0xb78   : > { %v1659_v57 = vmul.f32 0.0078125, %v1658_v56 }
 0xb7a   : > { %v1660_v58 = vsub.f32 %v1655_v54, %v1659_v57 }
 0xb7c   : > { %v1661_v59 = vmul.f32 %v1660_v58, %v1660_v58 }
 0xb7e   : > { %v1662_v30 = vsel %vm596_vm0, %v1661_v59, 0.0 }
 0xb7f   : > { %1663 = vadd.xlane.f32.xlu0 %v1662_v30 }
 0xc0c   : > { %v1664_v60 = vpop.xlane.xlu0 %1663 }
 0xc0d   : > { %v1665_v61 = vmul.f32 0.0078125, %v1664_v60 }
 0xc0f   : > { %v1666_v62 = vadd.f32 1e-05, %v1665_v61 }
 0xc11   : > { %2132 = vrsqrt.f32 %v1666_v62 }
 0xc1b   : > { %v2133_v63 = vpop.eup %2132 }
 0xc1c   : > { %v1668_v3 = vmul.f32 %v2133_v63, %v1660_v58 }
 0xc1e   : > { %v1675_v14 = vmul.f32 %v2263_v0, %v1668_v3 }
 0xc20   : > { %v1682_v16 = vadd.f32 %v2268_v1, %v1675_v14 }
 0xc22   : > { %v1683_v23 = vpack.c.bf16 %v1682_v16, %v1682_v16 }
 0xc24   : > { %1684 = vst [vmem:[%s2292_s27] sm:$0x3] %v1683_v23 }
 0xc25 PF: > { %s27_s24 = sadd.s32 1, %s2148_s24  }
 0xc26   : > { %p24_p5 = scmp.ge.s32.totalorder %s27_s24, 6  }
 0xc28   :  { %26 = sbr.rel (!%p24_p5) target bundleno = 3 (0x3), region = 145 }

// kernel: aux_mae_forward.4
= control target key start
LH: loop header
LB: loop body
LE: loop exit
PB: predicated region body
PF: predicated region fallthrough
CT: control target
= control target key end

     0   :  { %s2526_s24 = smov 0   ;;  %s2905_s0 = inlined_call_operand.vmem [shape: f32[4,8,8], index: 0, kind: input, shape index: {}]   ;;  %s2906_s1 = inlined_call_operand.vmem [shape: bf16[4,8,128], index: 1, kind: input, shape index: {}]   ;;  %s2907_s2 = inlined_call_operand.vmem [shape: f32[4,1,8], index: 2, kind: input, shape index: {}]   ;;  %s2908_s3 = inlined_call_operand.vmem [shape: bf16[8,128], index: 3, kind: input, shape index: {}]   ;;  %s2909_s4 = inlined_call_operand.vmem [shape: f32[1,128], index: 4, kind: input, shape index: {}]   ;;  %s2910_s5 = inlined_call_operand.vmem [shape: bf16[128,128], index: 5, kind: input, shape index: {}]   ;;  %s2911_s6 = inlined_call_operand.vmem [shape: f32[1,128], index: 6, kind: input, shape index: {}]   ;;  %s2912_s7 = inlined_call_operand.vmem [shape: f32[2,2,128], index: 7, kind: input, shape index: {}]   ;;  %s2913_s8 = inlined_call_operand.vmem [shape: bf16[128,384], index: 8, kind: input, shape index: {}]   ;;  %s2914_s9 = inlined_call_operand.vmem [shape: f32[1,384], index: 9, kind: input, shape index: {}]   ;;  %s2915_s10 = inlined_call_operand.vmem [shape: bf16[128,128], index: 10, kind: input, shape index: {}]   ;;  %s2916_s11 = inlined_call_operand.vmem [shape: f32[1,128], index: 11, kind: input, shape index: {}]   ;;  %s2917_s12 = inlined_call_operand.vmem [shape: bf16[2,128,256], index: 12, kind: input, shape index: {}]   ;;  %s2918_s13 = inlined_call_operand.vmem [shape: f32[2,1,256], index: 13, kind: input, shape index: {}]   ;;  %s2919_s14 = inlined_call_operand.vmem [shape: bf16[2,256,128], index: 14, kind: input, shape index: {}]   ;;  %s2920_s15 = inlined_call_operand.vmem [shape: f32[1,128], index: 15, kind: input, shape index: {}]   ;;  %s2921_s16 = inlined_call_operand.vmem [shape: f32[2,1,128], index: 16, kind: input, shape index: {}]   ;;  %s2922_s17 = inlined_call_operand.vmem [shape: bf16[4,8,128], index: 17, kind: output, shape index: {}]  }
   0x1   :  { %2923 = sst [smem:[#allocation2_spill]] %s2905_s0 }
   0x2   :  { %2924 = sst [smem:[#allocation3_spill]] %s2906_s1 }
   0x3 LB: > { %s1985_s25 = sadd.s32 4294967295, %s2418_s24   ;;  %p1989_p0 = scmp.ge.s32.totalorder %s2418_s24, 1  ;;  %s2418_s24 = sphi %s2526_s24, %s27_s24  }
   0x4   : > { %p509_p1 = scmp.lt.s32.totalorder %s2418_s24, 3 }
   0x6   : > { %p510_p2 = pnand %p1989_p0, %p509_p1 }
   0x7   : > { %v2537_v0 = vld [vmem:[%s2921_s16] ss:$0 sm:$0xff] (!%p510_p2)  ;;  %v2542_v1 = vld [vmem:[%s2921_s16 + $0x1] ss:$0 sm:$0xff] (!%p510_p2)  ;;  %vm619_vm0 = vcmask (!%p510_p2), 1043456   ;;  %v2432_v2 = vmov (!%p510_p2), 0.0  }
   0x8   : > { %513 = sbr.rel (%p510_p2) target bundleno = 3125 (0xc35), region = 88  ;;  %2154 = vmatprep.subr.bf16.mxu0 (!%p510_p2), %v2432_v2  ;;  %v607_v3 = vld [vmem:[%s2908_s3] sm:$0xf] (!%p510_p2)  ;;  %s1990_s18 = sshll.u32 (!%p510_p2), %s1985_s25, 1  ;;  %2160 = vmatprep.subr.bf16.mxu1 (!%p510_p2), %v2432_v2  ;;  %vm2433_vm1 = vmmov (!%p510_p2), 0   ;;  %vm615_vm2 = vcmask (!%p510_p2), 64512  }
   0x9   : > { %v621_v4 = vsel (!%p510_p2), %vm619_vm0, %v607_v3, 0  ;;  %2156 = vmatprep.mubr.msk.bf16.mxu0 (!%p510_p2), %vm2433_vm1, %v2432_v2  ;;  %p571_p3 = scmp.lt.s32.totalorder (!%p510_p2), %s1990_s18, 3  ;;  %2176 = vmatprep.mubr.msk.bf16.mxu1 (!%p510_p2), %vm2433_vm1, %v2432_v2  ;;  %s2925_s21 = sld [smem:[#allocation2_spill]] (!%p510_p2)  ;;  %v2280_v8 = vld [vmem:[%s2910_s5] sm:$0xff] (!%p510_p2)   ;;  %v2281_v9 = vld [vmem:[%s2910_s5 + $0x8] sm:$0xff] (!%p510_p2)   ;;  %v2282_v10 = vld [vmem:[%s2910_s5 + $0x10] sm:$0xff] (!%p510_p2)  }
   0xa   : > { %2155 = vmatpush3.bf16.msra.mxu0 (!%p510_p2), %v621_v4  ;;  %2161 = vmatpush3.bf16.msra.mxu1 (!%p510_p2), %v2280_v8  ;;  %v2283_v11 = vld [vmem:[%s2910_s5 + $0x18] sm:$0xff] (!%p510_p2)   ;;  %v2284_v12 = vld [vmem:[%s2910_s5 + $0x20] sm:$0xff] (!%p510_p2)   ;;  %v2285_v13 = vld [vmem:[%s2910_s5 + $0x28] sm:$0xff] (!%p510_p2)   ;;  %s2823_s29 = smov (!%p510_p2), 0  }
   0xb   : > { %2162 = vmatprep.subr.bf16.mxu1 (!%p510_p2), %v2432_v2  ;;  %v2286_v14 = vld [vmem:[%s2910_s5 + $0x30] sm:$0xff] (!%p510_p2)   ;;  %v2287_v15 = vld [vmem:[%s2910_s5 + $0x38] sm:$0xff] (!%p510_p2)   ;;  %v1997_v16 = vld [vmem:[%s2909_s4] ss:$0 sm:$0xff] (!%p510_p2) }
   0xc   : > { %v1999_v43 = vld [vmem:[%s2911_s6] ss:$0 sm:$0xff] (!%p510_p2)  ;;  %v2290_v55 = vld [vmem:[%s2913_s8 + $0x4] ss:$12 sps:$4 sm:$0xff] (!%p510_p2)   ;;  %v2291_v56 = vld [vmem:[%s2913_s8 + $0x8] ss:$12 sps:$4 sm:$0xff] (!%p510_p2)  }
   0xd   : > { %v2288_v54 = vld [vmem:[%s2913_s8] ss:$12 sps:$4 sm:$0xff] (!%p510_p2)   ;;  %v2294_v57 = vld [vmem:[%s2913_s8 + $0x1c] ss:$12 sps:$4 sm:$0xff] (!%p510_p2)   ;;  %1010 = vmatprep.subr.bf16.mxu0 (!%p510_p2), %v2290_v55  ;;  %v2292_v58 = vld [vmem:[%s2913_s8 + $0x18] ss:$12 sps:$4 sm:$0xff] (!%p510_p2)  }
   0xe   : > { %2163 = vmatpush3.bf16.msra.mxu1 (!%p510_p2), %v2281_v9  ;;  %v2296_v8 = vld [vmem:[%s2913_s8 + $0x30] ss:$12 sps:$4 sm:$0xff] (!%p510_p2)   ;;  %v2299_v9 = vld [vmem:[%s2913_s8 + $0x38] ss:$12 sps:$4 sm:$0xff] (!%p510_p2)  }
   0xf   : > { %s2931_s18 = smov (!%p571_p3, %s1990_s18), 3  ;;  %2164 = vmatprep.subr.bf16.mxu1 %v2432_v2 }
  0x10   : > { %s1991_s19 = sshll.u32 %s2931_s18, 3  ;;  %s1993_s27 = sshll.u32 %s2931_s18, 2 }
  0x11   : > { %s574_s22 = scalar_lea.vmem %s2925_s21, %s1991_s19  ;;  %s2599_s0 = scalar_lea.vmem %s2922_s17, %s1993_s27 }
  0x12   : > { %v598_v5 = vld [vmem:[%s574_s22] sm:$0xff]  ;;  %v599_v6 = vld [vmem:[%s574_s22 + $0x8] sm:$0xff]  ;;  %2165 = vmatpush3.bf16.msra.mxu1 %v2282_v10  ;;  %s2926_s21 = sld [smem:[#allocation3_spill]]  ;;  %s585_s1 = scalar_lea.vmem %s2907_s2, %s2931_s18 }
  0x13   : > { %v606_v7 = vpack.c.bf16 %v599_v6, %v598_v5  ;;  %2166 = vmatprep.subr.bf16.mxu1 %v2432_v2  ;;  %v2295_v6 = vld [vmem:[%s2913_s8 + $0x20] ss:$12 sps:$4 sm:$0xff]  }
  0x14   : > { %v2302_v10 = vld [vmem:[%s2913_s8 + $0x4c] ss:$12 sps:$4 sm:$0xff]  }
  0x15   : > { %2157 = vmatmul.mubr.msk.bf16.vlgmr.msra.gmra.mrb[0].mxu0 %vm615_vm2, %v606_v7  ;;  %v2298_v7 = vld [vmem:[%s2913_s8 + $0x34] ss:$12 sps:$4 sm:$0xff]  }
  0x16   : > { %2167 = vmatpush3.bf16.msra.mxu1 %v2283_v11  ;;  %1011 = vmatpush1.bf16.msra.mxu0 %v2288_v54  ;;  %v2300_v11 = vld [vmem:[%s2913_s8 + $0x48] ss:$12 sps:$4 sm:$0xff]  }
  0x17   : > { %2168 = vmatprep.subr.bf16.mxu1 %v2432_v2  ;;  %1012 = vmatprep.subr.bf16.mxu0 %v2294_v57 }
  0x18   : > { %s580_s22 = scalar_lea.vmem %s2926_s21, %s1993_s27 }
  0x19   : > { %v2087_v42 = vld [vmem:[%s580_s22] sm:$0xff]  }
  0x1a   : > { %2169 = vmatpush3.bf16.msra.mxu1 %v2284_v12  ;;  %v2088_v44 = vunpack.c.l.bf16 %v2087_v42  ;;  %v2089_v50 = vunpack.c.h.bf16 %v2087_v42  ;;  %1013 = vmatpush1.bf16.msra.mxu0 %v2292_v58  ;;  %v2303_v12 = vld [vmem:[%s2913_s8 + $0x50] ss:$12 sps:$4 sm:$0xff]  }
  0x1b   : > { %2170 = vmatprep.subr.bf16.mxu1 %v2432_v2  ;;  %1014 = vmatprep.subr.bf16.mxu0 %v2298_v7 }
  0x1e   : > { %2171 = vmatpush3.bf16.msra.mxu1 %v2285_v13  ;;  %1015 = vmatpush1.bf16.msra.mxu0 %v2296_v8  ;;  %v2306_v13 = vld [vmem:[%s2913_s8 + $0x64] ss:$12 sps:$4 sm:$0xff]  }
  0x1f   : > { %2172 = vmatprep.subr.bf16.mxu1 %v2432_v2  ;;  %1016 = vmatprep.subr.bf16.mxu0 %v2302_v10 }
  0x22   : > { %2173 = vmatpush3.bf16.msra.mxu1 %v2286_v14  ;;  %1017 = vmatpush1.bf16.msra.mxu0 %v2300_v11  ;;  %v2304_v14 = vld [vmem:[%s2913_s8 + $0x60] ss:$12 sps:$4 sm:$0xff]  }
  0x23   : > { %2174 = vmatprep.subr.bf16.mxu1 %v2432_v2  ;;  %1018 = vmatprep.subr.bf16.mxu0 %v2306_v13 }
  0x26   : > { %2175 = vmatpush3.bf16.msra.mxu1 %v2287_v15  ;;  %v2307_v15 = vld [vmem:[%s2913_s8 + $0x68] ss:$12 sps:$4 sm:$0xff]   ;;  %1019 = vmatpush1.bf16.msra.mxu0 %v2304_v14  ;;  %v600_v14 = vld [vmem:[%s585_s1] sm:$0x1] }
  0x27   : > { %2180 = vmatprep.subr.bf16.mxu1 %v2432_v2  ;;  %vm1182_vm3 = vcmp.gt.f32.partialorder %v600_v14, 0.5  ;;  %v2034_v14 = vld [vmem:[%s2916_s11] ss:$0 sm:$0xff] }
  0xe8   : > { %v657_v17 = vpop.f32.mrb[0].mxu0 }
  0xe9   : > { %v658_v18 = vadd.f32 %v1997_v16, %v657_v17  ;;  %v2158_v19 = vpop.f32.mrb[1].mxu0  ;;  %v2308_v17 = vld [vmem:[%s2913_s8 + $0x78] ss:$12 sps:$4 sm:$0xff]  }
  0xea   : > { %v660_v20 = vpop.f32.mrb[2].mxu0  ;;  %v2314_v19 = vld [vmem:[%s2913_s8 + $0x94] ss:$12 sps:$4 sm:$0xff]  }
  0xeb   : > { %v664_v21 = vmul.f32 %v658_v18, %v658_v18  ;;  %v661_v22 = vadd.f32 %v1997_v16, %v660_v20  ;;  %v2159_v23 = vpop.f32.mrb[3].mxu0  ;;  %v2310_v16 = vld [vmem:[%s2913_s8 + $0x7c] ss:$12 sps:$4 sm:$0xff]  }
  0xec   : > { %1020 = vmatprep.subr.bf16.mxu0 %v2310_v16  ;;  %v2312_v20 = vld [vmem:[%s2913_s8 + $0x90] ss:$12 sps:$4 sm:$0xff]   ;;  %v2316_v23 = vld [vmem:[%s2913_s8 + $0xa8] ss:$12 sps:$4 sm:$0xff]   ;;  %v601_v16 = vld [vmem:[%s585_s1 + $0x1] sm:$0x1] }
  0xed   : > { %v666_v24 = vmul.f32 %v664_v21, %v658_v18  ;;  %v665_v25 = vmul.f32 %v661_v22, %v661_v22  ;;  %1021 = vmatpush1.bf16.msra.mxu0 %v2308_v17  ;;  %v2315_v21 = vld [vmem:[%s2913_s8 + $0x98] ss:$12 sps:$4 sm:$0xff]   ;;  %vm1183_vm4 = vcmp.gt.f32.partialorder %v601_v16, 0.5 }
  0xee   : > { %1022 = vmatprep.subr.bf16.mxu0 %v2314_v19 }
  0xef   : > { %v668_v26 = vmul.f32 0.044715, %v666_v24  ;;  %v667_v27 = vmul.f32 %v665_v25, %v661_v22  ;;  %v2319_v24 = vld [vmem:[%s2913_s8 + $0xb0] ss:$12 sps:$4 sm:$0xff]   ;;  %v2434_v25 = vmov 0  }
  0xf0   : > { %1042 = vmatprep.mubr.bf16.mxu0 %v2434_v25 }
  0xf1   : > { %v670_v28 = vadd.f32 %v668_v26, %v658_v18  ;;  %v669_v29 = vmul.f32 0.044715, %v667_v27  ;;  %1023 = vmatpush1.bf16.msra.mxu0 %v2312_v20 }
  0xf3   : > { %v672_v30 = vmul.f32 0.7978846, %v670_v28  ;;  %v671_v31 = vadd.f32 %v669_v29, %v661_v22 }
  0xf5   : > { %2328 = vtanh.f32 %v672_v30  ;;  %v673_v32 = vmul.f32 0.7978846, %v671_v31  ;;  %v820_v30 = vlaneseq }
  0xf7   : > { %2330 = vtanh.f32 %v673_v32 }
  0xff   : > { %v2329_v33 = vpop.eup %2328 }
 0x100   : > { %v676_v34 = vadd.f32 1.0, %v2329_v33  ;;  %v821_v33 = vshrl.u32 %v820_v30, 7 }
 0x101   : > { %v2331_v35 = vpop.eup %2330 }
 0x102   : > { %v677_v36 = vadd.f32 1.0, %v2331_v35  ;;  %v678_v37 = vmul.f32 0.5, %v676_v34  ;;  %v2712_v34 = vsub.s32 0, %v821_v33  ;;  %v602_v35 = vld [vmem:[%s2912_s7] sm:$0x3] }
 0x104   : > { %v679_v38 = vmul.f32 0.5, %v677_v36  ;;  %v680_v39 = vmul.f32 %v678_v37, %v658_v18  ;;  %v2311_v18 = vld [vmem:[%s2913_s8 + $0x80] ss:$12 sps:$4 sm:$0xff]  }
 0x106   : > { %v681_v40 = vmul.f32 %v679_v38, %v661_v22  ;;  %v2318_v22 = vld [vmem:[%s2913_s8 + $0xac] ss:$12 sps:$4 sm:$0xff]   ;;  %v823_v38 = vrot.slane %v602_v35, %v2712_v34 }
 0x107   : > { %1024 = vmatprep.subr.bf16.mxu0 %v2318_v22 }
 0x108   : > { %v682_v41 = vpack.c.bf16 %v681_v40, %v680_v39  ;;  %1025 = vmatpush1.bf16.msra.mxu0 %v2316_v23  ;;  %v2719_v39 = vsub.s32 1, %v821_v33 }
 0x109   : > { %2200 = vmatprep.subr.bf16.mxu0 %v2432_v2 }
 0x10a   : > { %2177 = vmatmul.mubr.bf16.vlgmr.msra.gmra.mrb[0].mxu1 %v682_v41 }
 0x10b   : > { %2196 = vmatprep.mubr.msk.bf16.mxu1 %vm2433_vm1, %v2432_v2  ;;  %2181 = vmatpush3.bf16.msra.mxu1 %v2291_v56 }
 0x10c   : > { %2182 = vmatprep.subr.bf16.mxu1 %v2432_v2 }
 0x10f   : > { %2183 = vmatpush3.bf16.msra.mxu1 %v2295_v6 }
 0x110   : > { %2184 = vmatprep.subr.bf16.mxu1 %v2432_v2 }
 0x113   : > { %2185 = vmatpush3.bf16.msra.mxu1 %v2299_v9 }
 0x114   : > { %2186 = vmatprep.subr.bf16.mxu1 %v2432_v2 }
 0x117   : > { %2187 = vmatpush3.bf16.msra.mxu1 %v2303_v12 }
 0x118   : > { %2188 = vmatprep.subr.bf16.mxu1 %v2432_v2 }
 0x11b   : > { %2189 = vmatpush3.bf16.msra.mxu1 %v2307_v15  ;;  %v1184_v15 = vsel %vm1182_vm3, 1, %v2434_v25 }
 0x11c   : > { %2190 = vmatprep.subr.bf16.mxu1 %v2432_v2  ;;  %v1189_v17 = vrot.slane %v1184_v15, %v2712_v34 }
 0x11e   : > { %vm1194_vm5 = vcmp.eq.s32.totalorder %v1189_v17, 1 }
 0x11f   : > { %2191 = vmatpush3.bf16.msra.mxu1 %v2311_v18 }
 0x120   : > { %2192 = vmatprep.subr.bf16.mxu1 %v2432_v2 }
 0x123   : > { %2193 = vmatpush3.bf16.msra.mxu1 %v2315_v21  ;;  %v1185_v21 = vsel %vm1183_vm4, 1, %v2434_v25 }
 0x124   : > { %2194 = vmatprep.subr.bf16.mxu1 %v2432_v2 }
 0x127   : > { %2195 = vmatpush3.bf16.msra.mxu1 %v2319_v24 }
 0x128   : > { %2224 = vmatprep.subr.bf16.mxu1 %v2432_v2 }
 0x1dd   : > { %v788_v45 = vpop.f32.mrb[0].mxu1 }
 0x1de   : > { %v789_v46 = vadd.f32 %v1999_v43, %v788_v45  ;;  %v2178_v47 = vpop.f32.mrb[1].mxu1 }
 0x1df   : > { %v791_v48 = vpop.f32.mrb[2].mxu1 }
 0x1e0   : > { %v2614_v49 = vadd.f32 %v2088_v44, %v789_v46  ;;  %v792_v51 = vadd.f32 %v1999_v43, %v791_v48  ;;  %v2179_v52 = vpop.f32.mrb[3].mxu1  ;;  %v829_v43 = vrot.slane %v602_v35, %v2719_v39  ;;  %v865_v48 = vld [vmem:[%s2914_s9] sm:$0x7] }
 0x1e2   : > { %797 = vadd.xlane.f32.xlu0 %v2614_v49  ;;  %v2617_v53 = vadd.f32 %v2089_v50, %v792_v51  ;;  %v877_v50 = vsub.s32 2, %v821_v33  ;;  %v874_v51 = vrot.slane %v865_v48, %v2719_v39 }
 0x1e4   : > { %v878_v55 = vrot.slane %v865_v48, %v877_v50  ;;  %v2323_v50 = vld [vmem:[%s2915_s10 + $0x18] sm:$0xff]  }
 0x1e6   : > { %799 = vadd.xlane.f32.xlu0 %v2617_v53 }
 0x26f   : > { %v798_v59 = vpop.xlane.xlu0 %797 }
 0x270   : > { %v802_v60 = vmul.f32 0.0078125, %v798_v59 }
 0x272   : > { %v2637_v61 = vsub.f32 %v2614_v49, %v802_v60 }
 0x273   : > { %v800_v62 = vpop.xlane.xlu0 %799 }
 0x274   : > { %v803_v63 = vmul.f32 0.0078125, %v800_v62  ;;  %v806_v3 = vmul.f32 %v2637_v61, %v2637_v61 }
 0x276   : > { %v2642_v4 = vsub.f32 %v2617_v53, %v803_v63  ;;  %808 = vadd.xlane.f32.xlu1 %v806_v3 }
 0x278   : > { %v807_v5 = vmul.f32 %v2642_v4, %v2642_v4 }
 0x27a   : > { %810 = vadd.xlane.f32.xlu1 %v807_v5 }
 0x303   : > { %v809_v26 = vpop.xlane.xlu1 %808 }
 0x304   : > { %v812_v27 = vmul.f32 0.0078125, %v809_v26 }
 0x306   : > { %v814_v28 = vadd.f32 1e-05, %v812_v27  ;;  %v1193_v27 = vrot.slane %v1185_v21, %v2712_v34 }
 0x307   : > { %v811_v29 = vpop.xlane.xlu1 %810 }
 0x308   : > { %2332 = vrsqrt.f32 %v814_v28  ;;  %v813_v31 = vmul.f32 0.0078125, %v811_v29  ;;  %vm1195_vm6 = vcmp.eq.s32.totalorder %v1193_v27, 1 }
 0x30a   : > { %v815_v32 = vadd.f32 1e-05, %v813_v31 }
 0x30c   : > { %2334 = vrsqrt.f32 %v815_v32 }
 0x312   : > { %v2333_v36 = vpop.eup %2332 }
 0x313   : > { %v818_v37 = vmul.f32 %v2333_v36, %v2637_v61  ;;  %v870_v61 = vrot.slane %v865_v48, %v2712_v34  ;;  %v2322_v48 = vld [vmem:[%s2915_s10 + $0x10] sm:$0xff]  }
 0x315   : > { %v824_v42 = vmul.f32 %v823_v38, %v818_v37 }
 0x316   : > { %v2335_v40 = vpop.eup %2334 }
 0x317   : > { %v819_v41 = vmul.f32 %v2335_v40, %v2642_v4  ;;  %v830_v45 = vadd.f32 %v829_v43, %v824_v42 }
 0x319   : > { %v825_v44 = vmul.f32 %v823_v38, %v819_v41 }
 0x31b   : > { %v831_v46 = vadd.f32 %v829_v43, %v825_v44 }
 0x31d   : > { %v832_v47 = vpack.c.bf16 %v831_v46, %v830_v45  ;;  %v2320_v46 = vld [vmem:[%s2915_s10] sm:$0xff]  }
 0x31f   : > { %1043 = vmatmul.mubr.bf16.vlgmr.msra.gmra.mrb[4].mxu0 %v832_v47  ;;  %2197 = vmatmul.mubr.bf16.vlgmr.msra.gmra.mrb[4].mxu1 %v832_v47  ;;  %v2321_v47 = vld [vmem:[%s2915_s10 + $0x8] sm:$0xff]  }
 0x320   : > { %2202 = vmatprep.mubr.msk.bf16.mxu0 %vm2433_vm1, %v2432_v2  ;;  %2240 = vmatprep.mubr.msk.bf16.mxu1 %vm2433_vm1, %v2432_v2 }
 0x321   : > { %2225 = vmatpush3.bf16.msra.mxu1 %v2320_v46 }
 0x322   : > { %2226 = vmatprep.subr.bf16.mxu1 %v2432_v2 }
 0x325   : > { %2227 = vmatpush3.bf16.msra.mxu1 %v2321_v47 }
 0x326   : > { %2228 = vmatprep.subr.bf16.mxu1 %v2432_v2 }
 0x329   : > { %2229 = vmatpush3.bf16.msra.mxu1 %v2322_v48 }
 0x32a   : > { %2230 = vmatprep.subr.bf16.mxu1 %v2432_v2 }
 0x32d   : > { %2231 = vmatpush3.bf16.msra.mxu1 %v2323_v50 }
 0x32e   : > { %2232 = vmatprep.subr.bf16.mxu1 %v2432_v2 }
 0x3f2   : > { %v1044_v52 = vpop.f32.mrb[4].mxu0  ;;  %v1087_v54 = vpop.f32.mrb[4].mxu1 }
 0x3f3   : > { %v1046_v56 = vpop.f32.mrb[5].mxu0  ;;  %v2198_v57 = vpop.f32.mrb[5].mxu1  ;;  %v1045_v5 = vadd.f32 %v1044_v52, %v870_v61  ;;  %v1088_v9 = vadd.f32 %v1087_v54, %v878_v55 }
 0x3f4   : > { %v1047_v58 = vadd.f32 %v1046_v56, %v874_v51  ;;  %v1048_v59 = vpop.f32.mrb[6].mxu0  ;;  %v1090_v60 = vpop.f32.mrb[6].mxu1 }
 0x3f5   : > { %v2732_v62 = vadd.f32 %v1090_v60, %v878_v55  ;;  %v1050_v63 = vpop.f32.mrb[7].mxu0  ;;  %v2199_v3 = vpop.f32.mrb[7].mxu1  ;;  %v1094_v7 = vpack.c.bf16 %v1045_v5, %v1045_v5  ;;  %v1049_v10 = vadd.f32 %v1048_v59, %v870_v61  ;;  %v1098_v11 = vpack.c.bf16 %v1088_v9, %v1088_v9 }
 0x3f6   : > { %v1096_v4 = vpack.c.bf16 %v1047_v58, %v1047_v58  ;;  %v1051_v6 = vadd.f32 %v1050_v63, %v874_v51  ;;  %v2324_v51 = vld [vmem:[%s2915_s10 + $0x20] sm:$0xff]   ;;  %v2325_v3 = vld [vmem:[%s2915_s10 + $0x28] sm:$0xff]  }
 0x3f7   : > { %v1095_v12 = vpack.c.bf16 %v1049_v10, %v1049_v10  ;;  %v1226_v13 = vsel %vm619_vm0, %v1098_v11, 0  ;;  %2233 = vmatpush3.bf16.msra.mxu1 %v2324_v51  ;;  %v1099_v56 = vpack.c.bf16 %v2732_v62, %v2732_v62  ;;  %v2326_v62 = vld [vmem:[%s2915_s10 + $0x30] sm:$0xff]  }
 0x3f8   : > { %2201 = vmatpush3.bf16.xpose.msra.mxu0 %v1096_v4  ;;  %v1097_v8 = vpack.c.bf16 %v1051_v6, %v1051_v6  ;;  %2234 = vmatprep.subr.bf16.mxu1 %v2432_v2  ;;  %v2327_v4 = vld [vmem:[%s2915_s10 + $0x38] sm:$0xff]  }
 0x3f9   : > { %2206 = vmatprep.subr.bf16.mxu0 %v2432_v2  ;;  %v1272_v59 = vsel %vm619_vm0, %v1099_v56, 0 }
 0x3fb   : > { %2235 = vmatpush3.bf16.msra.mxu1 %v2325_v3 }
 0x3fc   : > { %2236 = vmatprep.subr.bf16.mxu1 %v2432_v2 }
 0x3ff   : > { %2203 = vmatmul.mubr.bf16.vlgmr.msra.gmra.mrb[8].mxu0 %v1094_v7  ;;  %2237 = vmatpush3.bf16.msra.mxu1 %v2326_v62 }
 0x400   : > { %2207 = vmatpush3.bf16.xpose.msra.mxu0 %v1097_v8  ;;  %2208 = vmatprep.mubr.msk.bf16.mxu0 %vm2433_vm1, %v2432_v2 }
 0x401   : > { %2212 = vmatprep.subr.bf16.mxu0 %v2432_v2  ;;  %2238 = vmatprep.subr.bf16.mxu1 %v2432_v2 }
 0x403   : > { %2239 = vmatpush3.bf16.msra.mxu1 %v2327_v4 }
 0x407   : > { %2209 = vmatmul.mubr.bf16.vlgmr.msra.gmra.mrb[12].mxu0 %v1095_v12 }
 0x408   : > { %2213 = vmatpush3.bf16.msra.mxu0 %v1226_v13  ;;  %2214 = vmatprep.mubr.msk.bf16.mxu0 %vm2433_vm1, %v2432_v2 }
 0x409   : > { %2218 = vmatprep.subr.bf16.mxu0 %v2432_v2 }
 0x4d2   : > { %v1134_v18 = vpop.f32.mrb[8].mxu0 }
 0x4d3   : > { %v1180_v19 = vmul.f32 0.088388346, %v1134_v18  ;;  %v2204_v20 = vpop.f32.mrb[9].mxu0 }
 0x4d4   : > { %v1137_v22 = vpop.f32.mrb[10].mxu0 }
 0x4d5   : > { %v2205_v23 = vpop.f32.mrb[11].mxu0  ;;  %v1196_v24 = vsel %vm1194_vm5, -1e+30, %v1180_v19 }
 0x4d6   : > { %v1198_v26 = vsel %vm615_vm2, %v1196_v24, -inf }
 0x4d7   : > { %1199 = vmax.xlane.f32.xlu0 %v1198_v26 }
 0x4da   : > { %v1174_v28 = vpop.f32.mrb[12].mxu0 }
 0x4db   : > { %v1181_v29 = vmul.f32 0.088388346, %v1174_v28  ;;  %v2210_v30 = vpop.f32.mrb[13].mxu0 }
 0x4dc   : > { %v1177_v31 = vpop.f32.mrb[14].mxu0 }
 0x4dd   : > { %v2211_v32 = vpop.f32.mrb[15].mxu0  ;;  %v1197_v33 = vsel %vm1195_vm6, -1e+30, %v1181_v29 }
 0x4de   : > { %v1201_v35 = vsel %vm615_vm2, %v1197_v33, -inf }
 0x4df   : > { %1202 = vmax.xlane.f32.xlu1 %v1201_v35 }
 0x564   : > { %v1200_v36 = vpop.xlane.xlu0 %1199 }
 0x565   : > { %v1204_v25 = vsub.f32 %v1196_v24, %v1200_v36 }
 0x567   : > { %v1206_v37 = vmul.f32 1.442695, %v1204_v25  ;;  %v603_v25 = vld [vmem:[%s2912_s7 + $0x2] sm:$0x3] }
 0x569   : > { %2336 = vpow2.f32 %v1206_v37  ;;  %v1454_v37 = vrot.slane %v603_v25, %v2712_v34 }
 0x56c   : > { %v1203_v38 = vpop.xlane.xlu1 %1202 }
 0x56d   : > { %v1205_v40 = vsub.f32 %v1197_v33, %v1203_v38 }
 0x56f   : > { %v1208_v41 = vmul.f32 1.442695, %v1205_v40 }
 0x571   : > { %2338 = vpow2.f32 %v1208_v41 }
 0x573   : > { %v2337_v42 = vpop.eup %2336 }
 0x574   : > { %v1210_v43 = vsel %vm615_vm2, %v2337_v42, 0.0 }
 0x575   : > { %1211 = vadd.xlane.f32.xlu0 %v1210_v43 }
 0x57b   : > { %v2339_v44 = vpop.eup %2338 }
 0x57c   : > { %v1213_v45 = vsel %vm615_vm2, %v2339_v44, 0.0 }
 0x57d   : > { %1214 = vadd.xlane.f32.xlu1 %v1213_v45 }
 0x602   : > { %v1212_v52 = vpop.xlane.xlu0 %1211 }
 0x603   : > { %2340 = vrcp.f32 %v1212_v52 }
 0x60a   : > { %v1215_v54 = vpop.xlane.xlu1 %1214 }
 0x60b   : > { %2342 = vrcp.f32 %v1215_v54 }
 0x60d   : > { %v2341_v55 = vpop.eup %2340 }
 0x60e   : > { %v1218_v57 = vmul.f32 %v2341_v55, %v2337_v42  ;;  %v1460_v42 = vrot.slane %v603_v25, %v2719_v39 }
 0x610   : > { %v1220_v58 = vpack.c.bf16 %v1218_v57, %v1218_v57 }
 0x612   : > { %2215 = vmatmul.mubr.msk.bf16.vlgmr.msra.gmra.mrb[16].mxu0 %vm615_vm2, %v1220_v58 }
 0x613   : > { %2219 = vmatpush3.bf16.msra.mxu0 %v1272_v59  ;;  %2220 = vmatprep.mubr.msk.bf16.mxu0 %vm2433_vm1, %v2432_v2 }
 0x615   : > { %v2343_v60 = vpop.eup %2342 }
 0x616   : > { %v1219_v61 = vmul.f32 %v2343_v60, %v2339_v44 }
 0x618   : > { %v1221_v63 = vpack.c.bf16 %v1219_v61, %v1219_v61 }
 0x61a   : > { %2221 = vmatmul.mubr.msk.bf16.vlgmr.msra.gmra.mrb[20].mxu0 %vm615_vm2, %v1221_v63 }
 0x6e5   : > { %v1262_v5 = vpop.f32.mrb[16].mxu0 }
 0x6e6   : > { %v2216_v6 = vpop.f32.mrb[17].mxu0 }
 0x6e7   : > { %v1265_v7 = vpop.f32.mrb[18].mxu0 }
 0x6e8   : > { %v2217_v8 = vpop.f32.mrb[19].mxu0 }
 0x6ed   : > { %v1308_v9 = vpop.f32.mrb[20].mxu0 }
 0x6ee   : > { %v1314_v10 = vpack.c.bf16 %v1308_v9, %v1262_v5  ;;  %v2222_v11 = vpop.f32.mrb[21].mxu0 }
 0x6ef   : > { %v1311_v12 = vpop.f32.mrb[22].mxu0 }
 0x6f0   : > { %v2223_v13 = vpop.f32.mrb[23].mxu0  ;;  %2241 = vmatmul.mubr.bf16.vlgmr.msra.gmra.mrb[8].mxu1 %v1314_v10 }
 0x7c3   : > { %v1420_v2 = vpop.f32.mrb[8].mxu1 }
 0x7c4   : > { %v1421_v15 = vadd.f32 %v2034_v14, %v1420_v2  ;;  %v2242_v16 = vpop.f32.mrb[9].mxu1 }
 0x7c5   : > { %v1423_v17 = vpop.f32.mrb[10].mxu1 }
 0x7c6   : > { %v1424_v18 = vadd.f32 %v2034_v14, %v1423_v17  ;;  %v2243_v19 = vpop.f32.mrb[11].mxu1  ;;  %v2796_v20 = vadd.f32 %v1421_v15, %v2614_v49  ;;  %v2043_v49 = vld [vmem:[%s2920_s15] ss:$0 sm:$0xff]  }
 0x7c7   : > { %v2927_v50 = vmov %v2043_v49 }
 0x7c8   : > { %1429 = vadd.xlane.f32.xlu0 %v2796_v20  ;;  %v2800_v21 = vadd.f32 %v1424_v18, %v2617_v53 }
 0x7ca   : > { %1431 = vadd.xlane.f32.xlu1 %v2800_v21 }
 0x855   : > { %v1430_v22 = vpop.xlane.xlu0 %1429 }
 0x856   : > { %v1433_v23 = vmul.f32 0.0078125, %v1430_v22 }
 0x857   : > { %v1432_v24 = vpop.xlane.xlu1 %1431 }
 0x858   : > { %v1435_v26 = vsub.f32 %v2796_v20, %v1433_v23  ;;  %v1434_v27 = vmul.f32 0.0078125, %v1432_v24 }
 0x85a   : > { %v1436_v28 = vsub.f32 %v2800_v21, %v1434_v27  ;;  %v1437_v29 = vmul.f32 %v1435_v26, %v1435_v26 }
 0x85c   : > { %1439 = vadd.xlane.f32.xlu0 %v1437_v29  ;;  %v1438_v30 = vmul.f32 %v1436_v28, %v1436_v28 }
 0x85e   : > { %1441 = vadd.xlane.f32.xlu1 %v1438_v30 }
 0x8e9   : > { %v1440_v53 = vpop.xlane.xlu0 %1439 }
 0x8ea   : > { %v1443_v31 = vmul.f32 0.0078125, %v1440_v53 }
 0x8eb   : > { %v1442_v32 = vpop.xlane.xlu1 %1441 }
 0x8ec   : > { %v1445_v33 = vadd.f32 1e-05, %v1443_v31  ;;  %v1444_v35 = vmul.f32 0.0078125, %v1442_v32 }
 0x8ee   : > { %2344 = vrsqrt.f32 %v1445_v33  ;;  %v1446_v36 = vadd.f32 1e-05, %v1444_v35 }
 0x8f0   : > { %2346 = vrsqrt.f32 %v1446_v36 }
 0x8f8   : > { %v2345_v38 = vpop.eup %2344 }
 0x8f9   : > { %v1449_v40 = vmul.f32 %v2345_v38, %v1435_v26 }
 0x8fa   : > { %v2347_v41 = vpop.eup %2346 }
 0x8fb   : > { %v1455_v43 = vmul.f32 %v1454_v37, %v1449_v40  ;;  %v1450_v44 = vmul.f32 %v2347_v41, %v1436_v28 }
 0x8fd   : > { %v1456_v45 = vmul.f32 %v1454_v37, %v1450_v44  ;;  %v2813_v46 = vadd.f32 %v1460_v42, %v1455_v43 }
 0x8ff   : > { %v2815_v47 = vadd.f32 %v1460_v42, %v1456_v45 }
 0x901   : > { %v1463_v48 = vpack.c.bf16 %v2815_v47, %v2813_v46 }
 0x902 LB: >> { %v2435_v51 = vmov 0   ;;  %s2084_s30 = sshll.u32 %s2430_s29, 7  ;;  %s2046_s23 = sshll.u32 %s2430_s29, 1  ;;  %s2430_s29 = sphi %s2823_s29, %s1477_s29   ;;  %v2426_v49 = vphi %v2043_v49, %v2929_v49   ;;  %v2422_v50 = vphi %v2927_v50, %v2928_v50  }
 0x903   : >> { %1625 = vmatprep.mubr.bf16.mxu0 %v2435_v51  ;;  %s2838_s18 = scalar_lea.vmem %s2917_s12, %s2084_s30  ;;  %s2850_s22 = scalar_lea.vmem %s2919_s14, %s2084_s30 }
 0x904   : >> { %v2348_v52 = vld [vmem:[%s2838_s18 + $0x4] ss:$8 sps:$4 sm:$0xff]   ;;  %v2350_v54 = vld [vmem:[%s2838_s18] ss:$8 sps:$4 sm:$0xff]   ;;  %v2351_v55 = vld [vmem:[%s2838_s18 + $0x14] ss:$8 sps:$4 sm:$0xff]   ;;  %s1500_s27 = scalar_lea.vmem %s2918_s13, %s2046_s23 }
 0x905   : >> { %1593 = vmatprep.subr.bf16.mxu0 %v2348_v52  ;;  %v2353_v56 = vld [vmem:[%s2838_s18 + $0x10] ss:$8 sps:$4 sm:$0xff]   ;;  %v2354_v57 = vld [vmem:[%s2838_s18 + $0x24] ss:$8 sps:$4 sm:$0xff]   ;;  %v2356_v58 = vld [vmem:[%s2838_s18 + $0x20] ss:$8 sps:$4 sm:$0xff]  }
 0x906   : >> { %1594 = vmatpush1.bf16.msra.mxu0 %v2350_v54  ;;  %v2357_v59 = vld [vmem:[%s2838_s18 + $0x34] ss:$8 sps:$4 sm:$0xff]   ;;  %v2359_v60 = vld [vmem:[%s2838_s18 + $0x30] ss:$8 sps:$4 sm:$0xff]   ;;  %v2360_v61 = vld [vmem:[%s2838_s18 + $0x44] ss:$8 sps:$4 sm:$0xff]  }
 0x907   : >> { %1595 = vmatprep.subr.bf16.mxu0 %v2351_v55  ;;  %v2362_v63 = vld [vmem:[%s2838_s18 + $0x40] ss:$8 sps:$4 sm:$0xff]   ;;  %v2363_v3 = vld [vmem:[%s2838_s18 + $0x54] ss:$8 sps:$4 sm:$0xff]   ;;  %v2365_v62 = vld [vmem:[%s2838_s18 + $0x50] ss:$8 sps:$4 sm:$0xff]  }
 0x908   : >> { %v2366_v4 = vld [vmem:[%s2838_s18 + $0x64] ss:$8 sps:$4 sm:$0xff]   ;;  %v2368_v5 = vld [vmem:[%s2838_s18 + $0x60] ss:$8 sps:$4 sm:$0xff]   ;;  %v2369_v6 = vld [vmem:[%s2838_s18 + $0x74] ss:$8 sps:$4 sm:$0xff]  }
 0x909   : >> { %v2371_v7 = vld [vmem:[%s2838_s18 + $0x70] ss:$8 sps:$4 sm:$0xff]   ;;  %v2372_v8 = vld [vmem:[%s2850_s22 + $0x40] sm:$0xff]   ;;  %v2374_v10 = vld [vmem:[%s2850_s22 + $0x48] sm:$0xff]   ;;  %s1477_s29 = sadd.s32 1, %s2430_s29  }
 0x90a   : >> { %1596 = vmatpush1.bf16.msra.mxu0 %v2353_v56  ;;  %v2373_v9 = vld [vmem:[%s2850_s22] sm:$0xff]   ;;  %2132 = vmatprep.subr.bf16.mxu1 %v2372_v8  ;;  %v2375_v11 = vld [vmem:[%s2850_s22 + $0x8] sm:$0xff]   ;;  %v2376_v12 = vld [vmem:[%s2850_s22 + $0x50] sm:$0xff]   ;;  %p1474_p4 = scmp.ge.s32.totalorder %s1477_s29, 2  }
 0x90b   : >> { %1597 = vmatprep.subr.bf16.mxu0 %v2354_v57  ;;  %2133 = vmatpush3.bf16.msra.mxu1 %v2373_v9  ;;  %v2377_v13 = vld [vmem:[%s2850_s22 + $0x10] sm:$0xff]   ;;  %v2378_v14 = vld [vmem:[%s2850_s22 + $0x58] sm:$0xff]   ;;  %v2380_v15 = vld [vmem:[%s2850_s22 + $0x60] sm:$0xff]  }
 0x90c   : >> { %2134 = vmatprep.subr.bf16.mxu1 %v2374_v10  ;;  %v2379_v2 = vld [vmem:[%s2850_s22 + $0x18] sm:$0xff]   ;;  %v2381_v16 = vld [vmem:[%s2850_s22 + $0x20] sm:$0xff]   ;;  %v2382_v17 = vld [vmem:[%s2850_s22 + $0x68] sm:$0xff]  }
 0x90d   : >> { %v2383_v18 = vld [vmem:[%s2850_s22 + $0x28] sm:$0xff]   ;;  %v2384_v19 = vld [vmem:[%s2850_s22 + $0x70] sm:$0xff]   ;;  %v2386_v23 = vld [vmem:[%s2850_s22 + $0x78] sm:$0xff]  }
 0x90e   : >> { %1598 = vmatpush1.bf16.msra.mxu0 %v2356_v58  ;;  %v2385_v22 = vld [vmem:[%s2850_s22 + $0x30] sm:$0xff]   ;;  %v2387_v24 = vld [vmem:[%s2850_s22 + $0x38] sm:$0xff]   ;;  %v1501_v26 = vld [vmem:[%s1500_s27] sm:$0x3] }
 0x90f   : >> { %1599 = vmatprep.subr.bf16.mxu0 %v2357_v59  ;;  %2135 = vmatpush3.bf16.msra.mxu1 %v2375_v11  ;;  %v1506_v27 = vrot.slane %v1501_v26, %v2712_v34  ;;  %v1510_v28 = vrot.slane %v1501_v26, %v2719_v39 }
 0x910   : >> { %2136 = vmatprep.subr.bf16.mxu1 %v2376_v12 }
 0x912   : >> { %1600 = vmatpush1.bf16.msra.mxu0 %v2359_v60 }
 0x913   : >> { %1601 = vmatprep.subr.bf16.mxu0 %v2360_v61  ;;  %2137 = vmatpush3.bf16.msra.mxu1 %v2377_v13 }
 0x914   : >> { %2138 = vmatprep.subr.bf16.mxu1 %v2378_v14 }
 0x916   : >> { %1602 = vmatpush1.bf16.msra.mxu0 %v2362_v63 }
 0x917   : >> { %1603 = vmatprep.subr.bf16.mxu0 %v2363_v3  ;;  %2139 = vmatpush3.bf16.msra.mxu1 %v2379_v2 }
 0x918   : >> { %2140 = vmatprep.subr.bf16.mxu1 %v2380_v15 }
 0x91a   : >> { %1604 = vmatpush1.bf16.msra.mxu0 %v2365_v62 }
 0x91b   : >> { %1605 = vmatprep.subr.bf16.mxu0 %v2366_v4  ;;  %2141 = vmatpush3.bf16.msra.mxu1 %v2381_v16 }
 0x91c   : >> { %2142 = vmatprep.subr.bf16.mxu1 %v2382_v17 }
 0x91e   : >> { %1606 = vmatpush1.bf16.msra.mxu0 %v2368_v5 }
 0x91f   : >> { %1607 = vmatprep.subr.bf16.mxu0 %v2369_v6  ;;  %2143 = vmatpush3.bf16.msra.mxu1 %v2383_v18 }
 0x920   : >> { %2144 = vmatprep.subr.bf16.mxu1 %v2384_v19 }
 0x922   : >> { %1608 = vmatpush1.bf16.msra.mxu0 %v2371_v7 }
 0x923   : >> { %2145 = vmatpush3.bf16.msra.mxu1 %v2385_v22 }
 0x924   : >> { %2146 = vmatprep.subr.bf16.mxu1 %v2386_v23 }
 0x925   : >> { %1626 = vmatmul.mubr.bf16.vlgmr.msra.gmra.mrb[0].mxu0 %v1463_v48 }
 0x927   : >> { %2147 = vmatpush3.bf16.msra.mxu1 %v2387_v24 }
 0x9f8   : >> { %v1627_v29 = vpop.f32.mrb[0].mxu0 }
 0x9f9   : >> { %v1628_v30 = vadd.f32 %v1627_v29, %v1506_v27  ;;  %v1629_v53 = vpop.f32.mrb[1].mxu0 }
 0x9fa   : >> { %v1630_v31 = vadd.f32 %v1629_v53, %v1510_v28  ;;  %v1631_v32 = vpop.f32.mrb[2].mxu0 }
 0x9fb   : >> { %v1636_v33 = vmul.f32 %v1628_v30, %v1628_v30  ;;  %v1632_v35 = vadd.f32 %v1631_v32, %v1506_v27  ;;  %v1633_v36 = vpop.f32.mrb[3].mxu0 }
 0x9fc   : >> { %v1637_v25 = vmul.f32 %v1630_v31, %v1630_v31  ;;  %v1634_v37 = vadd.f32 %v1633_v36, %v1510_v28 }
 0x9fd   : >> { %v1640_v38 = vmul.f32 %v1636_v33, %v1628_v30  ;;  %v1638_v40 = vmul.f32 %v1632_v35, %v1632_v35 }
 0x9fe   : >> { %v1641_v41 = vmul.f32 %v1637_v25, %v1630_v31  ;;  %v1639_v42 = vmul.f32 %v1634_v37, %v1634_v37 }
 0x9ff   : >> { %v1644_v43 = vmul.f32 0.044715, %v1640_v38  ;;  %v1642_v44 = vmul.f32 %v1638_v40, %v1632_v35 }
 0xa00   : >> { %v1645_v45 = vmul.f32 0.044715, %v1641_v41  ;;  %v1643_v51 = vmul.f32 %v1639_v42, %v1634_v37 }
 0xa01   : >> { %v1648_v52 = vadd.f32 %v1644_v43, %v1628_v30  ;;  %v1646_v54 = vmul.f32 0.044715, %v1642_v44 }
 0xa02   : >> { %v1647_v55 = vmul.f32 0.044715, %v1643_v51  ;;  %v1649_v56 = vadd.f32 %v1645_v45, %v1630_v31 }
 0xa03   : >> { %v1652_v57 = vmul.f32 0.7978846, %v1648_v52  ;;  %v1650_v58 = vadd.f32 %v1646_v54, %v1632_v35 }
 0xa04   : >> { %v1651_v59 = vadd.f32 %v1647_v55, %v1634_v37  ;;  %v1653_v60 = vmul.f32 0.7978846, %v1649_v56 }
 0xa05   : >> { %2388 = vtanh.f32 %v1652_v57  ;;  %v1654_v61 = vmul.f32 0.7978846, %v1650_v58 }
 0xa06   : >> { %v1655_v63 = vmul.f32 0.7978846, %v1651_v59  ;;  %2390 = vtanh.f32 %v1653_v60 }
 0xa07   : >> { %2392 = vtanh.f32 %v1654_v61 }
 0xa08   : >> { %2394 = vtanh.f32 %v1655_v63 }
 0xa0f   : >> { %v2389_v3 = vpop.eup %2388 }
 0xa10   : >> { %v2391_v62 = vpop.eup %2390  ;;  %v1660_v4 = vadd.f32 1.0, %v2389_v3 }
 0xa11   : >> { %v2393_v5 = vpop.eup %2392  ;;  %v1661_v6 = vadd.f32 1.0, %v2391_v62 }
 0xa12   : >> { %v2395_v7 = vpop.eup %2394  ;;  %v1662_v8 = vadd.f32 1.0, %v2393_v5  ;;  %v1664_v9 = vmul.f32 0.5, %v1660_v4 }
 0xa13   : >> { %v1663_v10 = vadd.f32 1.0, %v2395_v7  ;;  %v1665_v11 = vmul.f32 0.5, %v1661_v6 }
 0xa14   : >> { %v1666_v12 = vmul.f32 0.5, %v1662_v8  ;;  %v1668_v14 = vmul.f32 %v1664_v9, %v1628_v30 }
 0xa15   : >> { %v1667_v13 = vmul.f32 0.5, %v1663_v10  ;;  %v1669_v15 = vmul.f32 %v1665_v11, %v1630_v31 }
 0xa16   : >> { %v1670_v2 = vmul.f32 %v1666_v12, %v1632_v35 }
 0xa17   : >> { %v1671_v16 = vmul.f32 %v1667_v13, %v1634_v37 }
 0xa18   : >> { %v1672_v17 = vpack.c.bf16 %v1670_v2, %v1668_v14 }
 0xa19   : >> { %v1673_v18 = vpack.c.bf16 %v1671_v16, %v1669_v15 }
 0xa1b   : >> { %1836 = vmatprep.mubr.bf16.mxu1 %v1673_v18 }
 0xa1c   : >> { %1837 = vmatmul.mubr.bf16.vlgmr.msra.gmra.mrb[0].mxu1 %v1672_v17 }
 0xaef   : >> { %v2148_v19 = vpop.f32.mrb[0].mxu1 }
 0xaf0   : >> { %v2149_v22 = vpop.f32.mrb[1].mxu1 }
 0xaf1   : >> { %v2150_v23 = vadd.f32 %v2149_v22, %v2148_v19  ;;  %v2151_v24 = vpop.f32.mrb[2].mxu1  ;;  %1476 = sbr.rel (!%p1474_p4) target bundleno = 2306 (0x902), region = 134 }
 0xaf2   : >> { %v2152_v26 = vpop.f32.mrb[3].mxu1 }
 0xaf3   : >> { %v1845_v27 = vadd.f32 %v2426_v49, %v2150_v23   ;;  %v2153_v28 = vadd.f32 %v2152_v26, %v2151_v24 }
 0xaf5   : >> { %v1846_v29 = vadd.f32 %v2422_v50, %v2153_v28   ;;  %v2929_v49 = vmov %v1845_v27  ;;  %v1847_v30 = vadd.f32 (%p1474_p4), %v1845_v27, %v2796_v20 }
 0xaf7   : >> { %v2928_v50 = vmov %v1846_v29  ;;  %1849 = vadd.xlane.f32.xlu0 (%p1474_p4), %v1847_v30  ;;  %v1848_v53 = vadd.f32 (%p1474_p4), %v1846_v29, %v2800_v21 }
 0xafb   : > { %1851 = vadd.xlane.f32.xlu0 %v1848_v53 }
 0xb84   : > { %v1850_v49 = vpop.xlane.xlu0 %1849 }
 0xb85   : > { %v1853_v31 = vmul.f32 0.0078125, %v1850_v49 }
 0xb87   : > { %v1855_v32 = vsub.f32 %v1847_v30, %v1853_v31 }
 0xb88   : > { %v1852_v33 = vpop.xlane.xlu0 %1851 }
 0xb89   : > { %v1854_v35 = vmul.f32 0.0078125, %v1852_v33  ;;  %v1857_v36 = vmul.f32 %v1855_v32, %v1855_v32 }
 0xb8b   : > { %v1856_v25 = vsub.f32 %v1848_v53, %v1854_v35  ;;  %1859 = vadd.xlane.f32.xlu1 %v1857_v36 }
 0xb8d   : > { %v1858_v37 = vmul.f32 %v1856_v25, %v1856_v25 }
 0xb8f   : > { %1861 = vadd.xlane.f32.xlu1 %v1858_v37 }
 0xc18   : > { %v1860_v38 = vpop.xlane.xlu1 %1859 }
 0xc19   : > { %v1863_v40 = vmul.f32 0.0078125, %v1860_v38 }
 0xc1b   : > { %v1865_v41 = vadd.f32 1e-05, %v1863_v40 }
 0xc1c   : > { %v1862_v34 = vpop.xlane.xlu1 %1861 }
 0xc1d   : > { %2396 = vrsqrt.f32 %v1865_v41  ;;  %v1864_v39 = vmul.f32 0.0078125, %v1862_v34 }
 0xc1f   : > { %v1866_v20 = vadd.f32 1e-05, %v1864_v39 }
 0xc21   : > { %2398 = vrsqrt.f32 %v1866_v20 }
 0xc27   : > { %v2397_v21 = vpop.eup %2396 }
 0xc28   : > { %v1869_v46 = vmul.f32 %v2397_v21, %v1855_v32 }
 0xc2a   : > { %v1877_v48 = vmul.f32 %v2537_v0, %v1869_v46 }
 0xc2b   : > { %v2399_v47 = vpop.eup %2398 }
 0xc2c   : > { %v1870_v50 = vmul.f32 %v2399_v47, %v1856_v25  ;;  %v1885_v43 = vadd.f32 %v2542_v1, %v1877_v48 }
 0xc2e   : > { %v1878_v42 = vmul.f32 %v2537_v0, %v1870_v50 }
 0xc30   : > { %v1886_v44 = vadd.f32 %v2542_v1, %v1878_v42 }
 0xc32   : > { %v2093_v45 = vpack.c.bf16 %v1886_v44, %v1885_v43 }
 0xc34   : > { %2094 = vst [vmem:[%s2599_s0] sm:$0xff] %v2093_v45  }
 0xc35 PF: > { %s27_s24 = sadd.s32 1, %s2418_s24  }
 0xc36   : > { %p24_p5 = scmp.ge.s32.totalorder %s27_s24, 4  }
 0xc38   :  { %26 = sbr.rel (!%p24_p5) target bundleno = 3 (0x3), region = 145 }

</bundles_post_ra>
